<compile_context>
chip_gen: v7x
topology: tpu7x:2x2x1
jax: 0.10.0
libtpu: 0.0.40
codegen_flags: <defaults>
</compile_context>

<pallas_src>
import functools

import numpy as np
import jax
import jax.numpy as jnp
from jax.experimental import pallas as pl
from jax.experimental.pallas import tpu as pltpu

C_PAD = 128  # lane-dense channel width carried through the whole network


# ----------------------------------------------------------------------------
# Pallas kernels
# ----------------------------------------------------------------------------
def _conv_pool_kernel(a_ref, w_ref, b_ref, p_ref, o_ref):
    """One image: relu(im2col @ W + b) then 2x2 avg pool (as an MXU matmul).

    a_ref: (HW, 9*C_PAD) bf16   w_ref: (9*C_PAD, C_PAD) bf16
    b_ref: (1, C_PAD) f32       p_ref: (HW/4, HW) f32    o_ref: (HW/4, C_PAD) bf16
    """
    acc = jnp.dot(a_ref[...], w_ref[...], preferred_element_type=jnp.float32)
    acc = jnp.maximum(acc + b_ref[...], 0.0)
    pooled = jnp.dot(p_ref[...], acc, preferred_element_type=jnp.float32)
    o_ref[...] = pooled.astype(o_ref.dtype)


def _conv_kernel(a_ref, w_ref, b_ref, o_ref):
    """relu(im2col @ W + b) for one image (fused SED|ASC branch conv)."""
    acc = jnp.dot(a_ref[...], w_ref[...], preferred_element_type=jnp.float32)
    o_ref[...] = jnp.maximum(acc + b_ref[...], 0.0).astype(o_ref.dtype)


def _sed_tail_kernel(x_ref, m_ref, w1_ref, b1_ref, w2_ref, b2_ref, o_ref):
    """Fused: frequency mean (matmul) -> tanh projection -> sigmoid head."""
    x = x_ref[...]                                                    # (T*F, C) bf16
    m = jnp.dot(m_ref[...], x, preferred_element_type=jnp.float32)    # (T, C) freq mean
    h1 = jnp.tanh(jnp.dot(m.astype(jnp.bfloat16), w1_ref[...],
                          preferred_element_type=jnp.float32) + b1_ref[...])
    h2 = jax.nn.sigmoid(jnp.dot(h1.astype(jnp.bfloat16), w2_ref[...],
                                preferred_element_type=jnp.float32) + b2_ref[...])
    o_ref[0] = h2


def _asc_tail_kernel(x_ref, w1_ref, b1_ref, w2_ref, b2_ref, o_ref):
    """Fused: global average pool -> FC ReLU -> FC logits."""
    x = x_ref[...].astype(jnp.float32)                                # (HW, C)
    m = jnp.mean(x, axis=0, keepdims=True)                            # (1, C)
    h1 = jnp.maximum(jnp.dot(m.astype(jnp.bfloat16), w1_ref[...],
                             preferred_element_type=jnp.float32) + b1_ref[...], 0.0)
    h2 = jnp.dot(h1.astype(jnp.bfloat16), w2_ref[...],
                 preferred_element_type=jnp.float32) + b2_ref[...]
    o_ref[0] = h2


# ----------------------------------------------------------------------------
# JAX-side glue (layout only) + pallas_call wrappers
# ----------------------------------------------------------------------------
def _im2col_3x3(x):
    """x: [B, H, W, C] (NHWC) -> [B*H*W, 9*C]; patch order (ky, kx, c), no transpose."""
    B, H, W, C = x.shape
    xp = jnp.pad(x, ((0, 0), (1, 1), (1, 1), (0, 0)))
    cols = jnp.concatenate(
        [xp[:, ky:ky + H, kx:kx + W, :] for ky in range(3) for kx in range(3)],
        axis=-1)
    return cols.reshape(B * H * W, 9 * C)


def _pool_matrix(H, W):
    """Compile-time constant [H/2*W/2, H*W] 2x2 average-pool matrix (f32)."""
    Ho, Wo = H // 2, W // 2
    P = np.zeros((Ho * Wo, H * W), np.float32)
    for i in range(Ho):
        for j in range(Wo):
            for di in range(2):
                for dj in range(2):
                    P[i * Wo + j, (2 * i + di) * W + (2 * j + dj)] = 0.25
    return jnp.asarray(P)


def _freq_mean_matrix(T, F):
    """Compile-time constant [T, T*F] frequency-mean matrix (bf16, 1/F exact)."""
    M = np.zeros((T, T * F), np.float32)
    for t in range(T):
        M[t, t * F:(t + 1) * F] = 1.0 / F
    return jnp.asarray(M, dtype=jnp.bfloat16)


def conv3x3_pool(x, w, b):
    """Conv3x3(pad=1) + ReLU + AvgPool2x2 on NHWC with lane-dense channels."""
    B, H, W, C = x.shape
    assert C == C_PAD and (H * W) % 8 == 0
    K = 9 * C_PAD
    Ho, Wo = H // 2, W // 2
    a = _im2col_3x3(x)                                   # [B*H*W, 9*C_PAD] bf16
    P = _pool_matrix(H, W)
    out = pl.pallas_call(
        _conv_pool_kernel,
        out_shape=jax.ShapeDtypeStruct((B * Ho * Wo, C_PAD), jnp.bfloat16),
        grid=(B,),
        in_specs=[
            pl.BlockSpec((H * W, K), lambda i: (i, 0)),
            pl.BlockSpec((K, C_PAD), lambda i: (0, 0)),
            pl.BlockSpec((1, C_PAD), lambda i: (0, 0)),
            pl.BlockSpec((Ho * Wo, H * W), lambda i: (0, 0)),
        ],
        out_specs=pl.BlockSpec((Ho * Wo, C_PAD), lambda i: (i, 0)),
        compiler_params=pltpu.CompilerParams(dimension_semantics=("parallel",)),
    )(a, w, b, P)
    return out.reshape(B, Ho, Wo, C_PAD)


def conv3x3(x, w, b):
    """Conv3x3(pad=1) + ReLU on NHWC; returns flat [B*H*W, C_PAD]."""
    B, H, W, C = x.shape
    assert C == C_PAD and (H * W) % 8 == 0
    K = 9 * C_PAD
    a = _im2col_3x3(x)
    return pl.pallas_call(
        _conv_kernel,
        out_shape=jax.ShapeDtypeStruct((B * H * W, C_PAD), jnp.bfloat16),
        grid=(B,),
        in_specs=[
            pl.BlockSpec((H * W, K), lambda i: (i, 0)),
            pl.BlockSpec((K, C_PAD), lambda i: (0, 0)),
            pl.BlockSpec((1, C_PAD), lambda i: (0, 0)),
        ],
        out_specs=pl.BlockSpec((H * W, C_PAD), lambda i: (i, 0)),
        compiler_params=pltpu.CompilerParams(dimension_semantics=("parallel",)),
    )(a, w, b)


def sed_tail(branch, B, T, Fr, w1, b1, w2, b2):
    """branch: [B*T*Fr, C_PAD] bf16 -> [B, T, C_PAD] f32 (sigmoid, padded lanes)."""
    M = _freq_mean_matrix(T, Fr)
    return pl.pallas_call(
        _sed_tail_kernel,
        out_shape=jax.ShapeDtypeStruct((B, T, C_PAD), jnp.float32),
        grid=(B,),
        in_specs=[
            pl.BlockSpec((T * Fr, C_PAD), lambda i: (i, 0)),
            pl.BlockSpec((T, T * Fr), lambda i: (0, 0)),
            pl.BlockSpec((C_PAD, C_PAD), lambda i: (0, 0)),
            pl.BlockSpec((1, C_PAD), lambda i: (0, 0)),
            pl.BlockSpec((C_PAD, C_PAD), lambda i: (0, 0)),
            pl.BlockSpec((1, C_PAD), lambda i: (0, 0)),
        ],
        out_specs=pl.BlockSpec((1, T, C_PAD), lambda i: (i, 0, 0)),
        compiler_params=pltpu.CompilerParams(dimension_semantics=("parallel",)),
    )(branch, M, w1, b1, w2, b2)


def asc_tail(branch, B, HW, w1, b1, w2, b2):
    """branch: [B*HW, C_PAD] bf16 -> [B, C_PAD] f32 logits (padded lanes)."""
    out = pl.pallas_call(
        _asc_tail_kernel,
        out_shape=jax.ShapeDtypeStruct((B, 1, C_PAD), jnp.float32),
        grid=(B,),
        in_specs=[
            pl.BlockSpec((HW, C_PAD), lambda i: (i, 0)),
            pl.BlockSpec((C_PAD, C_PAD), lambda i: (0, 0)),
            pl.BlockSpec((1, C_PAD), lambda i: (0, 0)),
            pl.BlockSpec((C_PAD, C_PAD), lambda i: (0, 0)),
            pl.BlockSpec((1, C_PAD), lambda i: (0, 0)),
        ],
        out_specs=pl.BlockSpec((1, 1, C_PAD), lambda i: (i, 0, 0)),
        compiler_params=pltpu.CompilerParams(dimension_semantics=("parallel",)),
    )(branch, w1, b1, w2, b2)
    return out[:, 0, :]


# ----------------------------------------------------------------------------
# MSHE_B forward
# ----------------------------------------------------------------------------
def mshe_b_forward(x, p, cfg):
    B, C, H, W = x.shape
    # NCHW -> NHWC, pad channels to the lane-dense width once, cast to bf16.
    xh = jnp.transpose(x, (0, 2, 3, 1))
    xh = jnp.pad(xh, ((0, 0), (0, 0), (0, 0), (0, C_PAD - C))).astype(jnp.bfloat16)

    # Encoder_Layers: 2 x [Conv3x3 -> BN(id @ init) -> ReLU -> AvgPool2x2 -> Dropout(id)]
    h = conv3x3_pool(xh, p["enc_w1"], p["enc_b1"])             # [B, H/2, W/2, 128]
    h = conv3x3_pool(h, p["enc_w2"], p["enc_b2"])              # [B, H/4, W/4, 128]

    Bh, T, Fr, _ = h.shape
    # Fused SED|ASC branch conv (one GEMM): sed filters in lanes [0:sed_f),
    # asc filters in lanes [sed_f:sed_f+asc_f); padded lanes are exact zeros.
    br = conv3x3(h, p["br_w"], p["br_b"])                      # [B*T*Fr, 128]

    # SED_Conformer: freq-mean -> temporal block (TODO(synk): tanh stand-in) -> sigmoid head
    sed = sed_tail(br, Bh, T, Fr, p["sed_rnn_w"], p["sed_rnn_b"],
                   p["sed_fc_w"], p["sed_fc_b"])               # [B, T, 128]
    sed_out = sed[:, :, :cfg["sed_class"]]

    # ASC_CNN: global avg pool -> FC ReLU -> FC logits
    asc = asc_tail(br, Bh, T * Fr, p["asc_fc1_w"], p["asc_fc1_b"],
                   p["asc_fc2_w"], p["asc_fc2_b"])             # [B, 128]
    asc_out = asc[:, :cfg["asc_class"]]
    return sed_out, asc_out


# ----------------------------------------------------------------------------
# Deterministic parameter construction (real-sized weights packed lane-dense)
# ----------------------------------------------------------------------------
def _pack_conv(w, f_offset=0):
    """[F, C, 3, 3] -> [9*C_PAD, C_PAD] bf16, patch order (ky, kx, c)."""
    F, C, _, _ = w.shape
    full = np.zeros((3, 3, C_PAD, C_PAD), np.float32)
    full[:, :, :C, f_offset:f_offset + F] = np.transpose(np.asarray(w), (2, 3, 1, 0))
    return jnp.asarray(full.reshape(9 * C_PAD, C_PAD), dtype=jnp.bfloat16)


def _pack_bias(b, f_offset=0):
    full = np.zeros((1, C_PAD), np.float32)
    full[0, f_offset:f_offset + b.shape[0]] = np.asarray(b)
    return jnp.asarray(full)


def _pack_fc(w, in_offset=0, out_offset=0):
    cin, cout = w.shape
    full = np.zeros((C_PAD, C_PAD), np.float32)
    full[in_offset:in_offset + cin, out_offset:out_offset + cout] = np.asarray(w)
    return jnp.asarray(full, dtype=jnp.bfloat16)


def init_params(args, key):
    ks = iter(jax.random.split(key, 16))

    def conv(kf, cin, cout):
        return (jax.random.normal(kf, (cout, cin, 3, 3), jnp.float32) / np.sqrt(cin * 9),
                jnp.zeros((cout,), jnp.float32))

    def fc(kf, cin, cout):
        return (jax.random.normal(kf, (cin, cout), jnp.float32) / np.sqrt(cin),
                jnp.zeros((cout,), jnp.float32))

    ef, sf, af = args["encoder_filter"], args["sed_filter"], args["asc_filter"]
    asc_off = sf  # asc branch lanes start right after the sed lanes

    enc_w1, enc_b1 = conv(next(ks), args["channel"], ef)
    enc_w2, enc_b2 = conv(next(ks), ef, ef)
    sed_w1, sed_b1 = conv(next(ks), ef, sf)
    asc_w1, asc_b1 = conv(next(ks), ef, af)
    sed_rnn_w, sed_rnn_b = fc(next(ks), sf, args["sed_rnn_dim"])
    sed_fc_w, sed_fc_b = fc(next(ks), args["sed_rnn_dim"], args["sed_class"])
    asc_fc1_w, asc_fc1_b = fc(next(ks), af, args["asc_fc"])
    asc_fc2_w, asc_fc2_b = fc(next(ks), args["asc_fc"], args["asc_class"])

    return {
        "enc_w1": _pack_conv(enc_w1), "enc_b1": _pack_bias(enc_b1),
        "enc_w2": _pack_conv(enc_w2), "enc_b2": _pack_bias(enc_b2),
        # fused SED|ASC branch conv (disjoint output lane ranges)
        "br_w": _pack_conv(sed_w1) + _pack_conv(asc_w1, f_offset=asc_off),
        "br_b": _pack_bias(sed_b1) + _pack_bias(asc_b1, f_offset=asc_off),
        "sed_rnn_w": _pack_fc(sed_rnn_w), "sed_rnn_b": _pack_bias(sed_rnn_b),
        "sed_fc_w": _pack_fc(sed_fc_w), "sed_fc_b": _pack_bias(sed_fc_b),
        "asc_fc1_w": _pack_fc(asc_fc1_w, in_offset=asc_off), "asc_fc1_b": _pack_bias(asc_fc1_b),
        "asc_fc2_w": _pack_fc(asc_fc2_w), "asc_fc2_b": _pack_bias(asc_fc2_b),
    }


if __name__ == "__main__":
    args = dict(channel=1, encoder_filter=16, dropout=0.2,
                sed_filter=16, sed_rnn_dim=32, sed_class=4,
                asc_filter=16, asc_fc=32, asc_class=3)

    key = jax.random.PRNGKey(0)
    k_x, k_p = jax.random.split(key)
    x = jax.random.normal(k_x, (2, args["channel"], 16, 16), jnp.float32)  # NCHW
    params = init_params(args, k_p)

    fwd = jax.jit(functools.partial(mshe_b_forward, cfg=args))
    sed_out, asc_out = fwd(x, params)
    jax.block_until_ready((sed_out, asc_out))

    assert sed_out.shape == (2, 4, args["sed_class"])   # [B, T/4, sed_class]
    assert asc_out.shape == (2, args["asc_class"])      # [B, asc_class]
    print("KERNEL_OK")
</pallas_src>

<mosaic_0001>
module attributes {stable_mosaic.version = 11 : i64} {
  func.func @_conv_pool_kernel(%arg0: i32, %arg1: memref<256x1152xbf16, #tpu.memory_space<vmem>>, %arg2: memref<1152x128xbf16, #tpu.memory_space<vmem>>, %arg3: memref<1x128xf32, #tpu.memory_space<vmem>>, %arg4: memref<64x256xf32, #tpu.memory_space<vmem>>, %arg5: memref<64x128xbf16, #tpu.memory_space<vmem>>) attributes {dimension_semantics = [#tpu.dimension_semantics<parallel>], iteration_bounds = array<i64: 2>, scalar_prefetch = 0 : i64, scratch_operands = 0 : i64, tpu.core_type = #tpu.core_type<tc>, window_params = [{transform_indices = @transform_0, window_bounds = array<i64: 256, 1152>}, {pipeline_mode = #tpu.pipeline_mode<synchronous>, transform_indices = @transform_1, window_bounds = array<i64: 1152, 128>}, {pipeline_mode = #tpu.pipeline_mode<synchronous>, transform_indices = @transform_2, window_bounds = array<i64: 1, 128>}, {pipeline_mode = #tpu.pipeline_mode<synchronous>, transform_indices = @transform_3, window_bounds = array<i64: 64, 256>}, {transform_indices = @transform_4, window_bounds = array<i64: 64, 128>}]} {
    %c0 = arith.constant 0 : index
    %c0_0 = arith.constant 0 : index
    %0 = vector.load %arg1[%c0, %c0_0] : memref<256x1152xbf16, #tpu.memory_space<vmem>>, vector<256x1152xbf16>
    %c0_1 = arith.constant 0 : index
    %c0_2 = arith.constant 0 : index
    %1 = vector.load %arg2[%c0_1, %c0_2] : memref<1152x128xbf16, #tpu.memory_space<vmem>>, vector<1152x128xbf16>
    %cst = arith.constant dense<0.000000e+00> : vector<256x128xf32>
    %2 = tpu.matmul %0, %1, %cst {dimension_numbers = #tpu.dot_dimension_numbers<[1], [0], [0], [1], [0, 0, 1, 1], [], []>} : vector<256x1152xbf16>, vector<1152x128xbf16>, vector<256x128xf32> -> vector<256x128xf32>
    %c0_3 = arith.constant 0 : index
    %c0_4 = arith.constant 0 : index
    %3 = vector.load %arg3[%c0_3, %c0_4] : memref<1x128xf32, #tpu.memory_space<vmem>>, vector<1x128xf32>
    %4 = vector.broadcast %3 : vector<1x128xf32> to vector<256x128xf32>
    %5 = arith.addf %2, %4 : vector<256x128xf32>
    %cst_5 = arith.constant 0.000000e+00 : f32
    %6 = vector.broadcast %cst_5 : f32 to vector<256x128xf32>
    %7 = arith.maximumf %5, %6 : vector<256x128xf32>
    %c0_6 = arith.constant 0 : index
    %c0_7 = arith.constant 0 : index
    %8 = vector.load %arg4[%c0_6, %c0_7] : memref<64x256xf32, #tpu.memory_space<vmem>>, vector<64x256xf32>
    %cst_8 = arith.constant dense<0.000000e+00> : vector<64x128xf32>
    %9 = tpu.matmul %8, %7, %cst_8 {dimension_numbers = #tpu.dot_dimension_numbers<[1], [0], [0], [1], [0, 0, 1, 1], [], []>} : vector<64x256xf32>, vector<256x128xf32>, vector<64x128xf32> -> vector<64x128xf32>
    %10 = arith.truncf %9 : vector<64x128xf32> to vector<64x128xbf16>
    %c0_9 = arith.constant 0 : index
    %c0_10 = arith.constant 0 : index
    %11 = vector.load %arg5[%c0_9, %c0_10] : memref<64x128xbf16, #tpu.memory_space<vmem>>, vector<64x128xbf16>
    tpu.vector_store %arg5[%c0_9, %c0_10], %10 {strides = array<i32>} : memref<64x128xbf16, #tpu.memory_space<vmem>>, vector<64x128xbf16>,
    return
  }
  func.func @transform_0(%arg0: i32) -> (i32, i32) {
    %c0_i32 = arith.constant 0 : i32
    %c0_i32_0 = arith.constant 0 : i32
    return %arg0, %c0_i32 : i32, i32
  }
  func.func @transform_1(%arg0: i32) -> (i32, i32) {
    %c0_i32 = arith.constant 0 : i32
    %c0_i32_0 = arith.constant 0 : i32
    %c0_i32_1 = arith.constant 0 : i32
    return %c0_i32, %c0_i32_0 : i32, i32
  }
  func.func @transform_2(%arg0: i32) -> (i32, i32) {
    %c0_i32 = arith.constant 0 : i32
    %c0_i32_0 = arith.constant 0 : i32
    %c0_i32_1 = arith.constant 0 : i32
    return %c0_i32, %c0_i32_0 : i32, i32
  }
  func.func @transform_3(%arg0: i32) -> (i32, i32) {
    %c0_i32 = arith.constant 0 : i32
    %c0_i32_0 = arith.constant 0 : i32
    %c0_i32_1 = arith.constant 0 : i32
    return %c0_i32, %c0_i32_0 : i32, i32
  }
  func.func @transform_4(%arg0: i32) -> (i32, i32) {
    %c0_i32 = arith.constant 0 : i32
    %c0_i32_0 = arith.constant 0 : i32
    return %arg0, %c0_i32 : i32, i32
  }
}

module attributes {stable_mosaic.version = 11 : i64} {
  func.func @_conv_pool_kernel(%arg0: i32, %arg1: memref<64x1152xbf16, #tpu.memory_space<vmem>>, %arg2: memref<1152x128xbf16, #tpu.memory_space<vmem>>, %arg3: memref<1x128xf32, #tpu.memory_space<vmem>>, %arg4: memref<16x64xf32, #tpu.memory_space<vmem>>, %arg5: memref<16x128xbf16, #tpu.memory_space<vmem>>) attributes {dimension_semantics = [#tpu.dimension_semantics<parallel>], iteration_bounds = array<i64: 2>, scalar_prefetch = 0 : i64, scratch_operands = 0 : i64, tpu.core_type = #tpu.core_type<tc>, window_params = [{transform_indices = @transform_0, window_bounds = array<i64: 64, 1152>}, {pipeline_mode = #tpu.pipeline_mode<synchronous>, transform_indices = @transform_1, window_bounds = array<i64: 1152, 128>}, {pipeline_mode = #tpu.pipeline_mode<synchronous>, transform_indices = @transform_2, window_bounds = array<i64: 1, 128>}, {pipeline_mode = #tpu.pipeline_mode<synchronous>, transform_indices = @transform_3, window_bounds = array<i64: 16, 64>}, {transform_indices = @transform_4, window_bounds = array<i64: 16, 128>}]} {
    %c0 = arith.constant 0 : index
    %c0_0 = arith.constant 0 : index
    %0 = vector.load %arg1[%c0, %c0_0] : memref<64x1152xbf16, #tpu.memory_space<vmem>>, vector<64x1152xbf16>
    %c0_1 = arith.constant 0 : index
    %c0_2 = arith.constant 0 : index
    %1 = vector.load %arg2[%c0_1, %c0_2] : memref<1152x128xbf16, #tpu.memory_space<vmem>>, vector<1152x128xbf16>
    %cst = arith.constant dense<0.000000e+00> : vector<64x128xf32>
    %2 = tpu.matmul %0, %1, %cst {dimension_numbers = #tpu.dot_dimension_numbers<[1], [0], [0], [1], [0, 0, 1, 1], [], []>} : vector<64x1152xbf16>, vector<1152x128xbf16>, vector<64x128xf32> -> vector<64x128xf32>
    %c0_3 = arith.constant 0 : index
    %c0_4 = arith.constant 0 : index
    %3 = vector.load %arg3[%c0_3, %c0_4] : memref<1x128xf32, #tpu.memory_space<vmem>>, vector<1x128xf32>
    %4 = vector.broadcast %3 : vector<1x128xf32> to vector<64x128xf32>
    %5 = arith.addf %2, %4 : vector<64x128xf32>
    %cst_5 = arith.constant 0.000000e+00 : f32
    %6 = vector.broadcast %cst_5 : f32 to vector<64x128xf32>
    %7 = arith.maximumf %5, %6 : vector<64x128xf32>
    %c0_6 = arith.constant 0 : index
    %c0_7 = arith.constant 0 : index
    %8 = vector.load %arg4[%c0_6, %c0_7] : memref<16x64xf32, #tpu.memory_space<vmem>>, vector<16x64xf32>
    %cst_8 = arith.constant dense<0.000000e+00> : vector<16x128xf32>
    %9 = tpu.matmul %8, %7, %cst_8 {dimension_numbers = #tpu.dot_dimension_numbers<[1], [0], [0], [1], [0, 0, 1, 1], [], []>} : vector<16x64xf32>, vector<64x128xf32>, vector<16x128xf32> -> vector<16x128xf32>
    %10 = arith.truncf %9 : vector<16x128xf32> to vector<16x128xbf16>
    %c0_9 = arith.constant 0 : index
    %c0_10 = arith.constant 0 : index
    %11 = vector.load %arg5[%c0_9, %c0_10] : memref<16x128xbf16, #tpu.memory_space<vmem>>, vector<16x128xbf16>
    tpu.vector_store %arg5[%c0_9, %c0_10], %10 {strides = array<i32>} : memref<16x128xbf16, #tpu.memory_space<vmem>>, vector<16x128xbf16>,
    return
  }
  func.func @transform_0(%arg0: i32) -> (i32, i32) {
    %c0_i32 = arith.constant 0 : i32
    %c0_i32_0 = arith.constant 0 : i32
    return %arg0, %c0_i32 : i32, i32
  }
  func.func @transform_1(%arg0: i32) -> (i32, i32) {
    %c0_i32 = arith.constant 0 : i32
    %c0_i32_0 = arith.constant 0 : i32
    %c0_i32_1 = arith.constant 0 : i32
    return %c0_i32, %c0_i32_0 : i32, i32
  }
  func.func @transform_2(%arg0: i32) -> (i32, i32) {
    %c0_i32 = arith.constant 0 : i32
    %c0_i32_0 = arith.constant 0 : i32
    %c0_i32_1 = arith.constant 0 : i32
    return %c0_i32, %c0_i32_0 : i32, i32
  }
  func.func @transform_3(%arg0: i32) -> (i32, i32) {
    %c0_i32 = arith.constant 0 : i32
    %c0_i32_0 = arith.constant 0 : i32
    %c0_i32_1 = arith.constant 0 : i32
    return %c0_i32, %c0_i32_0 : i32, i32
  }
  func.func @transform_4(%arg0: i32) -> (i32, i32) {
    %c0_i32 = arith.constant 0 : i32
    %c0_i32_0 = arith.constant 0 : i32
    return %arg0, %c0_i32 : i32, i32
  }
}

module attributes {stable_mosaic.version = 11 : i64} {
  func.func @_conv_kernel(%arg0: i32, %arg1: memref<16x1152xbf16, #tpu.memory_space<vmem>>, %arg2: memref<1152x128xbf16, #tpu.memory_space<vmem>>, %arg3: memref<1x128xf32, #tpu.memory_space<vmem>>, %arg4: memref<16x128xbf16, #tpu.memory_space<vmem>>) attributes {dimension_semantics = [#tpu.dimension_semantics<parallel>], iteration_bounds = array<i64: 2>, scalar_prefetch = 0 : i64, scratch_operands = 0 : i64, tpu.core_type = #tpu.core_type<tc>, window_params = [{transform_indices = @transform_0, window_bounds = array<i64: 16, 1152>}, {pipeline_mode = #tpu.pipeline_mode<synchronous>, transform_indices = @transform_1, window_bounds = array<i64: 1152, 128>}, {pipeline_mode = #tpu.pipeline_mode<synchronous>, transform_indices = @transform_2, window_bounds = array<i64: 1, 128>}, {transform_indices = @transform_3, window_bounds = array<i64: 16, 128>}]} {
    %c0 = arith.constant 0 : index
    %c0_0 = arith.constant 0 : index
    %0 = vector.load %arg1[%c0, %c0_0] : memref<16x1152xbf16, #tpu.memory_space<vmem>>, vector<16x1152xbf16>
    %c0_1 = arith.constant 0 : index
    %c0_2 = arith.constant 0 : index
    %1 = vector.load %arg2[%c0_1, %c0_2] : memref<1152x128xbf16, #tpu.memory_space<vmem>>, vector<1152x128xbf16>
    %cst = arith.constant dense<0.000000e+00> : vector<16x128xf32>
    %2 = tpu.matmul %0, %1, %cst {dimension_numbers = #tpu.dot_dimension_numbers<[1], [0], [0], [1], [0, 0, 1, 1], [], []>} : vector<16x1152xbf16>, vector<1152x128xbf16>, vector<16x128xf32> -> vector<16x128xf32>
    %c0_3 = arith.constant 0 : index
    %c0_4 = arith.constant 0 : index
    %3 = vector.load %arg3[%c0_3, %c0_4] : memref<1x128xf32, #tpu.memory_space<vmem>>, vector<1x128xf32>
    %4 = vector.broadcast %3 : vector<1x128xf32> to vector<16x128xf32>
    %5 = arith.addf %2, %4 : vector<16x128xf32>
    %cst_5 = arith.constant 0.000000e+00 : f32
    %6 = vector.broadcast %cst_5 : f32 to vector<16x128xf32>
    %7 = arith.maximumf %5, %6 : vector<16x128xf32>
    %8 = arith.truncf %7 : vector<16x128xf32> to vector<16x128xbf16>
    %c0_6 = arith.constant 0 : index
    %c0_7 = arith.constant 0 : index
    %9 = vector.load %arg4[%c0_6, %c0_7] : memref<16x128xbf16, #tpu.memory_space<vmem>>, vector<16x128xbf16>
    tpu.vector_store %arg4[%c0_6, %c0_7], %8 {strides = array<i32>} : memref<16x128xbf16, #tpu.memory_space<vmem>>, vector<16x128xbf16>,
    return
  }
  func.func @transform_0(%arg0: i32) -> (i32, i32) {
    %c0_i32 = arith.constant 0 : i32
    %c0_i32_0 = arith.constant 0 : i32
    return %arg0, %c0_i32 : i32, i32
  }
  func.func @transform_1(%arg0: i32) -> (i32, i32) {
    %c0_i32 = arith.constant 0 : i32
    %c0_i32_0 = arith.constant 0 : i32
    %c0_i32_1 = arith.constant 0 : i32
    return %c0_i32, %c0_i32_0 : i32, i32
  }
  func.func @transform_2(%arg0: i32) -> (i32, i32) {
    %c0_i32 = arith.constant 0 : i32
    %c0_i32_0 = arith.constant 0 : i32
    %c0_i32_1 = arith.constant 0 : i32
    return %c0_i32, %c0_i32_0 : i32, i32
  }
  func.func @transform_3(%arg0: i32) -> (i32, i32) {
    %c0_i32 = arith.constant 0 : i32
    %c0_i32_0 = arith.constant 0 : i32
    return %arg0, %c0_i32 : i32, i32
  }
}

module attributes {stable_mosaic.version = 11 : i64} {
  func.func @_asc_tail_kernel(%arg0: i32, %arg1: memref<16x128xbf16, #tpu.memory_space<vmem>>, %arg2: memref<128x128xbf16, #tpu.memory_space<vmem>>, %arg3: memref<1x128xf32, #tpu.memory_space<vmem>>, %arg4: memref<128x128xbf16, #tpu.memory_space<vmem>>, %arg5: memref<1x128xf32, #tpu.memory_space<vmem>>, %arg6: memref<1x1x128xf32, #tpu.memory_space<vmem>>) attributes {dimension_semantics = [#tpu.dimension_semantics<parallel>], iteration_bounds = array<i64: 2>, scalar_prefetch = 0 : i64, scratch_operands = 0 : i64, tpu.core_type = #tpu.core_type<tc>, window_params = [{transform_indices = @transform_0, window_bounds = array<i64: 16, 128>}, {pipeline_mode = #tpu.pipeline_mode<synchronous>, transform_indices = @transform_1, window_bounds = array<i64: 128, 128>}, {pipeline_mode = #tpu.pipeline_mode<synchronous>, transform_indices = @transform_2, window_bounds = array<i64: 1, 128>}, {pipeline_mode = #tpu.pipeline_mode<synchronous>, transform_indices = @transform_3, window_bounds = array<i64: 128, 128>}, {pipeline_mode = #tpu.pipeline_mode<synchronous>, transform_indices = @transform_4, window_bounds = array<i64: 1, 128>}, {transform_indices = @transform_5, window_bounds = array<i64: 1, 1, 128>}]} {
    %c0 = arith.constant 0 : index
    %c0_0 = arith.constant 0 : index
    %0 = vector.load %arg1[%c0, %c0_0] : memref<16x128xbf16, #tpu.memory_space<vmem>>, vector<16x128xbf16>
    %1 = arith.extf %0 : vector<16x128xbf16> to vector<16x128xf32>
    %cst = arith.constant dense<0.000000e+00> : vector<128xf32>
    %2 = vector.multi_reduction <add>, %1, %cst [0] : vector<16x128xf32> to vector<128xf32>
    %3 = vector.shape_cast %2 : vector<128xf32> to vector<1x128xf32>
    %cst_1 = arith.constant 1.600000e+01 : f32
    %4 = vector.broadcast %cst_1 : f32 to vector<1x128xf32>
    %5 = arith.divf %3, %4 : vector<1x128xf32>
    %6 = arith.truncf %5 : vector<1x128xf32> to vector<1x128xbf16>
    %c0_2 = arith.constant 0 : index
    %c0_3 = arith.constant 0 : index
    %7 = vector.load %arg2[%c0_2, %c0_3] : memref<128x128xbf16, #tpu.memory_space<vmem>>, vector<128x128xbf16>
    %cst_4 = arith.constant dense<0.000000e+00> : vector<1x128xf32>
    %8 = tpu.matmul %6, %7, %cst_4 {dimension_numbers = #tpu.dot_dimension_numbers<[1], [0], [0], [1], [0, 0, 1, 1], [], []>} : vector<1x128xbf16>, vector<128x128xbf16>, vector<1x128xf32> -> vector<1x128xf32>
    %c0_5 = arith.constant 0 : index
    %c0_6 = arith.constant 0 : index
    %9 = vector.load %arg3[%c0_5, %c0_6] : memref<1x128xf32, #tpu.memory_space<vmem>>, vector<1x128xf32>
    %10 = arith.addf %8, %9 : vector<1x128xf32>
    %cst_7 = arith.constant 0.000000e+00 : f32
    %11 = vector.broadcast %cst_7 : f32 to vector<1x128xf32>
    %12 = arith.maximumf %10, %11 : vector<1x128xf32>
    %13 = arith.truncf %12 : vector<1x128xf32> to vector<1x128xbf16>
    %c0_8 = arith.constant 0 : index
    %c0_9 = arith.constant 0 : index
    %14 = vector.load %arg4[%c0_8, %c0_9] : memref<128x128xbf16, #tpu.memory_space<vmem>>, vector<128x128xbf16>
    %cst_10 = arith.constant dense<0.000000e+00> : vector<1x128xf32>
    %15 = tpu.matmul %13, %14, %cst_10 {dimension_numbers = #tpu.dot_dimension_numbers<[1], [0], [0], [1], [0, 0, 1, 1], [], []>} : vector<1x128xbf16>, vector<128x128xbf16>, vector<1x128xf32> -> vector<1x128xf32>
    %c0_11 = arith.constant 0 : index
    %c0_12 = arith.constant 0 : index
    %16 = vector.load %arg5[%c0_11, %c0_12] : memref<1x128xf32, #tpu.memory_space<vmem>>, vector<1x128xf32>
    %17 = arith.addf %15, %16 : vector<1x128xf32>
    %c0_13 = arith.constant 0 : index
    %c0_14 = arith.constant 0 : index
    %c0_15 = arith.constant 0 : index
    %18 = vector.load %arg6[%c0_13, %c0_14, %c0_15] : memref<1x1x128xf32, #tpu.memory_space<vmem>>, vector<1x1x128xf32>
    %19 = vector.shape_cast %18 : vector<1x1x128xf32> to vector<1x128xf32>
    %20 = vector.shape_cast %17 : vector<1x128xf32> to vector<1x1x128xf32>
    tpu.vector_store %arg6[%c0_13, %c0_14, %c0_15], %20 {strides = array<i32>} : memref<1x1x128xf32, #tpu.memory_space<vmem>>, vector<1x1x128xf32>,
    return
  }
  func.func @transform_0(%arg0: i32) -> (i32, i32) {
    %c0_i32 = arith.constant 0 : i32
    %c0_i32_0 = arith.constant 0 : i32
    return %arg0, %c0_i32 : i32, i32
  }
  func.func @transform_1(%arg0: i32) -> (i32, i32) {
    %c0_i32 = arith.constant 0 : i32
    %c0_i32_0 = arith.constant 0 : i32
    %c0_i32_1 = arith.constant 0 : i32
    return %c0_i32, %c0_i32_0 : i32, i32
  }
  func.func @transform_2(%arg0: i32) -> (i32, i32) {
    %c0_i32 = arith.constant 0 : i32
    %c0_i32_0 = arith.constant 0 : i32
    %c0_i32_1 = arith.constant 0 : i32
    return %c0_i32, %c0_i32_0 : i32, i32
  }
  func.func @transform_3(%arg0: i32) -> (i32, i32) {
    %c0_i32 = arith.constant 0 : i32
    %c0_i32_0 = arith.constant 0 : i32
    %c0_i32_1 = arith.constant 0 : i32
    return %c0_i32, %c0_i32_0 : i32, i32
  }
  func.func @transform_4(%arg0: i32) -> (i32, i32) {
    %c0_i32 = arith.constant 0 : i32
    %c0_i32_0 = arith.constant 0 : i32
    %c0_i32_1 = arith.constant 0 : i32
    return %c0_i32, %c0_i32_0 : i32, i32
  }
  func.func @transform_5(%arg0: i32) -> (i32, i32, i32) {
    %c0_i32 = arith.constant 0 : i32
    %c0_i32_0 = arith.constant 0 : i32
    %c0_i32_1 = arith.constant 0 : i32
    return %arg0, %c0_i32, %c0_i32_0 : i32, i32, i32
  }
}

module attributes {stable_mosaic.version = 11 : i64} {
  func.func @_sed_tail_kernel(%arg0: i32, %arg1: memref<16x128xbf16, #tpu.memory_space<vmem>>, %arg2: memref<4x16xbf16, #tpu.memory_space<vmem>>, %arg3: memref<128x128xbf16, #tpu.memory_space<vmem>>, %arg4: memref<1x128xf32, #tpu.memory_space<vmem>>, %arg5: memref<128x128xbf16, #tpu.memory_space<vmem>>, %arg6: memref<1x128xf32, #tpu.memory_space<vmem>>, %arg7: memref<1x4x128xf32, #tpu.memory_space<vmem>>) attributes {dimension_semantics = [#tpu.dimension_semantics<parallel>], iteration_bounds = array<i64: 2>, scalar_prefetch = 0 : i64, scratch_operands = 0 : i64, tpu.core_type = #tpu.core_type<tc>, window_params = [{transform_indices = @transform_0, window_bounds = array<i64: 16, 128>}, {pipeline_mode = #tpu.pipeline_mode<synchronous>, transform_indices = @transform_1, window_bounds = array<i64: 4, 16>}, {pipeline_mode = #tpu.pipeline_mode<synchronous>, transform_indices = @transform_2, window_bounds = array<i64: 128, 128>}, {pipeline_mode = #tpu.pipeline_mode<synchronous>, transform_indices = @transform_3, window_bounds = array<i64: 1, 128>}, {pipeline_mode = #tpu.pipeline_mode<synchronous>, transform_indices = @transform_4, window_bounds = array<i64: 128, 128>}, {pipeline_mode = #tpu.pipeline_mode<synchronous>, transform_indices = @transform_5, window_bounds = array<i64: 1, 128>}, {transform_indices = @transform_6, window_bounds = array<i64: 1, 4, 128>}]} {
    %c0 = arith.constant 0 : index
    %c0_0 = arith.constant 0 : index
    %0 = vector.load %arg1[%c0, %c0_0] : memref<16x128xbf16, #tpu.memory_space<vmem>>, vector<16x128xbf16>
    %c0_1 = arith.constant 0 : index
    %c0_2 = arith.constant 0 : index
    %1 = vector.load %arg2[%c0_1, %c0_2] : memref<4x16xbf16, #tpu.memory_space<vmem>>, vector<4x16xbf16>
    %cst = arith.constant dense<0.000000e+00> : vector<4x128xf32>
    %2 = tpu.matmul %1, %0, %cst {dimension_numbers = #tpu.dot_dimension_numbers<[1], [0], [0], [1], [0, 0, 1, 1], [], []>} : vector<4x16xbf16>, vector<16x128xbf16>, vector<4x128xf32> -> vector<4x128xf32>
    %3 = arith.truncf %2 : vector<4x128xf32> to vector<4x128xbf16>
    %c0_3 = arith.constant 0 : index
    %c0_4 = arith.constant 0 : index
    %4 = vector.load %arg3[%c0_3, %c0_4] : memref<128x128xbf16, #tpu.memory_space<vmem>>, vector<128x128xbf16>
    %cst_5 = arith.constant dense<0.000000e+00> : vector<4x128xf32>
    %5 = tpu.matmul %3, %4, %cst_5 {dimension_numbers = #tpu.dot_dimension_numbers<[1], [0], [0], [1], [0, 0, 1, 1], [], []>} : vector<4x128xbf16>, vector<128x128xbf16>, vector<4x128xf32> -> vector<4x128xf32>
    %c0_6 = arith.constant 0 : index
    %c0_7 = arith.constant 0 : index
    %6 = vector.load %arg4[%c0_6, %c0_7] : memref<1x128xf32, #tpu.memory_space<vmem>>, vector<1x128xf32>
    %7 = vector.broadcast %6 : vector<1x128xf32> to vector<4x128xf32>
    %8 = arith.addf %5, %7 : vector<4x128xf32>
    %9 = math.tanh %8 : vector<4x128xf32>
    %10 = arith.truncf %9 : vector<4x128xf32> to vector<4x128xbf16>
    %c0_8 = arith.constant 0 : index
    %c0_9 = arith.constant 0 : index
    %11 = vector.load %arg5[%c0_8, %c0_9] : memref<128x128xbf16, #tpu.memory_space<vmem>>, vector<128x128xbf16>
    %cst_10 = arith.constant dense<0.000000e+00> : vector<4x128xf32>
    %12 = tpu.matmul %10, %11, %cst_10 {dimension_numbers = #tpu.dot_dimension_numbers<[1], [0], [0], [1], [0, 0, 1, 1], [], []>} : vector<4x128xbf16>, vector<128x128xbf16>, vector<4x128xf32> -> vector<4x128xf32>
    %c0_11 = arith.constant 0 : index
    %c0_12 = arith.constant 0 : index
    %13 = vector.load %arg6[%c0_11, %c0_12] : memref<1x128xf32, #tpu.memory_space<vmem>>, vector<1x128xf32>
    %14 = vector.broadcast %13 : vector<1x128xf32> to vector<4x128xf32>
    %15 = arith.addf %12, %14 : vector<4x128xf32>
    %16 = arith.negf %15 : vector<4x128xf32>
    %17 = math.exp %16 : vector<4x128xf32>
    %cst_13 = arith.constant 1.000000e+00 : f32
    %18 = vector.broadcast %cst_13 : f32 to vector<4x128xf32>
    %19 = arith.addf %18, %17 : vector<4x128xf32>
    %20 = arith.divf %18, %19 : vector<4x128xf32>
    %c0_14 = arith.constant 0 : index
    %c0_15 = arith.constant 0 : index
    %c0_16 = arith.constant 0 : index
    %21 = vector.load %arg7[%c0_14, %c0_15, %c0_16] : memref<1x4x128xf32, #tpu.memory_space<vmem>>, vector<1x4x128xf32>
    %22 = vector.shape_cast %21 : vector<1x4x128xf32> to vector<4x128xf32>
    %23 = vector.shape_cast %20 : vector<4x128xf32> to vector<1x4x128xf32>
    tpu.vector_store %arg7[%c0_14, %c0_15, %c0_16], %23 {strides = array<i32>} : memref<1x4x128xf32, #tpu.memory_space<vmem>>, vector<1x4x128xf32>,
    return
  }
  func.func @transform_0(%arg0: i32) -> (i32, i32) {
    %c0_i32 = arith.constant 0 : i32
    %c0_i32_0 = arith.constant 0 : i32
    return %arg0, %c0_i32 : i32, i32
  }
  func.func @transform_1(%arg0: i32) -> (i32, i32) {
    %c0_i32 = arith.constant 0 : i32
    %c0_i32_0 = arith.constant 0 : i32
    %c0_i32_1 = arith.constant 0 : i32
    return %c0_i32, %c0_i32_0 : i32, i32
  }
  func.func @transform_2(%arg0: i32) -> (i32, i32) {
    %c0_i32 = arith.constant 0 : i32
    %c0_i32_0 = arith.constant 0 : i32
    %c0_i32_1 = arith.constant 0 : i32
    return %c0_i32, %c0_i32_0 : i32, i32
  }
  func.func @transform_3(%arg0: i32) -> (i32, i32) {
    %c0_i32 = arith.constant 0 : i32
    %c0_i32_0 = arith.constant 0 : i32
    %c0_i32_1 = arith.constant 0 : i32
    return %c0_i32, %c0_i32_0 : i32, i32
  }
  func.func @transform_4(%arg0: i32) -> (i32, i32) {
    %c0_i32 = arith.constant 0 : i32
    %c0_i32_0 = arith.constant 0 : i32
    %c0_i32_1 = arith.constant 0 : i32
    return %c0_i32, %c0_i32_0 : i32, i32
  }
  func.func @transform_5(%arg0: i32) -> (i32, i32) {
    %c0_i32 = arith.constant 0 : i32
    %c0_i32_0 = arith.constant 0 : i32
    %c0_i32_1 = arith.constant 0 : i32
    return %c0_i32, %c0_i32_0 : i32, i32
  }
  func.func @transform_6(%arg0: i32) -> (i32, i32, i32) {
    %c0_i32 = arith.constant 0 : i32
    %c0_i32_0 = arith.constant 0 : i32
    %c0_i32_1 = arith.constant 0 : i32
    return %arg0, %c0_i32, %c0_i32_0 : i32, i32, i32
  }
}

</mosaic_0001>

<bundles_post_ra>
// kernel: mshe_b_forward.5
= control target key start
LH: loop header
LB: loop body
LE: loop exit
PB: predicated region body
PF: predicated region fallthrough
CT: control target
= control target key end

     0   :  { %s3935_s15 = smov 0   ;;  %s4619_s0 = inlined_call_operand.vmem [shape: bf16[512,1152], index: 0, kind: input, shape index: {}]   ;;  %s4620_s1 = inlined_call_operand.vmem [shape: bf16[1152,128], index: 1, kind: input, shape index: {}]   ;;  %s4621_s2 = inlined_call_operand.vmem [shape: f32[1,128], index: 2, kind: input, shape index: {}]   ;;  %s4622_s3 = inlined_call_operand.vmem [shape: f32[64,256], index: 3, kind: input, shape index: {}]   ;;  %s4623_s4 = inlined_call_operand.vmem [shape: bf16[128,128], index: 4, kind: output, shape index: {}]  }
   0x1 LB: > { %s2738_s16 = sadd.s32 4294967295, %s3908_s15   ;;  %p2742_p0 = scmp.ge.s32.totalorder %s3908_s15, 1  ;;  %s3908_s15 = sphi %s3935_s15, %s14_s15  }
   0x2   : > { %p164_p1 = scmp.lt.s32.totalorder %s3908_s15, 3 }
   0x4   : > { %p165_p2 = pnand %p2742_p0, %p164_p1 }
   0x5   : > { %v3622_v0 = vld [vmem:[%s4620_s1 + $0x40] sm:$0xff] (!%p165_p2)   ;;  %v3626_v4 = vld [vmem:[%s4620_s1 + $0x48] sm:$0xff] (!%p165_p2)   ;;  %v3630_v8 = vld [vmem:[%s4620_s1 + $0x50] sm:$0xff] (!%p165_p2)   ;;  %s2743_s21 = sshll.u32 (!%p165_p2), %s2738_s16, 5  ;;  %s2745_s9 = sshll.u32 (!%p165_p2), %s2738_s16, 3 }
   0x6   : > { %168 = sbr.rel (%p165_p2) target bundleno = 825 (0x339), region = 36  ;;  %v3623_v1 = vld [vmem:[%s4620_s1] sm:$0xff] (!%p165_p2)   ;;  %3005 = vmatprep.subr.bf16.mxu0 (!%p165_p2), %v3622_v0  ;;  %v3627_v5 = vld [vmem:[%s4620_s1 + $0x8] sm:$0xff] (!%p165_p2)   ;;  %v3631_v9 = vld [vmem:[%s4620_s1 + $0x10] sm:$0xff] (!%p165_p2)   ;;  %p192_p3 = scmp.lt.s32.totalorder (!%p165_p2), %s2743_s21, 63 }
   0x7   : > { %v3624_v2 = vld [vmem:[%s4620_s1 + $0xc0] sm:$0xff] (!%p165_p2)   ;;  %3006 = vmatpush3.bf16.msra.mxu0 (!%p165_p2), %v3623_v1  ;;  %v3628_v6 = vld [vmem:[%s4620_s1 + $0xc8] sm:$0xff] (!%p165_p2)   ;;  %v3632_v10 = vld [vmem:[%s4620_s1 + $0xd0] sm:$0xff] (!%p165_p2)   ;;  %p199_p4 = scmp.lt.s32.totalorder (!%p165_p2), %s2745_s9, 15 }
   0x8   : > { %v3625_v3 = vld [vmem:[%s4620_s1 + $0x80] sm:$0xff] (!%p165_p2)   ;;  %3117 = vmatprep.subr.bf16.mxu1 (!%p165_p2), %v3624_v2  ;;  %3007 = vmatprep.subr.bf16.mxu0 (!%p165_p2), %v3626_v4  ;;  %v3629_v7 = vld [vmem:[%s4620_s1 + $0x88] sm:$0xff] (!%p165_p2)   ;;  %v3633_v11 = vld [vmem:[%s4620_s1 + $0x90] sm:$0xff] (!%p165_p2)  }
   0x9   : > { %3118 = vmatpush3.bf16.msra.mxu1 (!%p165_p2), %v3625_v3  ;;  %v3634_v12 = vld [vmem:[%s4620_s1 + $0x58] sm:$0xff] (!%p165_p2)   ;;  %v3638_v16 = vld [vmem:[%s4620_s1 + $0x60] sm:$0xff] (!%p165_p2)   ;;  %v3642_v20 = vld [vmem:[%s4620_s1 + $0x68] sm:$0xff] (!%p165_p2)  }
   0xa   : > { %3119 = vmatprep.subr.bf16.mxu1 (!%p165_p2), %v3628_v6  ;;  %v3635_v13 = vld [vmem:[%s4620_s1 + $0x18] sm:$0xff] (!%p165_p2)   ;;  %v3639_v17 = vld [vmem:[%s4620_s1 + $0x20] sm:$0xff] (!%p165_p2)   ;;  %v3643_v21 = vld [vmem:[%s4620_s1 + $0x28] sm:$0xff] (!%p165_p2)  }
   0xb   : > { %3008 = vmatpush3.bf16.msra.mxu0 (!%p165_p2), %v3627_v5  ;;  %v3636_v14 = vld [vmem:[%s4620_s1 + $0xd8] sm:$0xff] (!%p165_p2)   ;;  %v3640_v18 = vld [vmem:[%s4620_s1 + $0xe0] sm:$0xff] (!%p165_p2)   ;;  %v3644_v22 = vld [vmem:[%s4620_s1 + $0xe8] sm:$0xff] (!%p165_p2)  }
   0xc   : > { %3009 = vmatprep.subr.bf16.mxu0 (!%p165_p2), %v3630_v8  ;;  %v3637_v15 = vld [vmem:[%s4620_s1 + $0x98] sm:$0xff] (!%p165_p2)   ;;  %v3641_v19 = vld [vmem:[%s4620_s1 + $0xa0] sm:$0xff] (!%p165_p2)   ;;  %v3645_v23 = vld [vmem:[%s4620_s1 + $0xa8] sm:$0xff] (!%p165_p2)  }
   0xd   : > { %3120 = vmatpush3.bf16.msra.mxu1 %v3629_v7  ;;  %s4625_s21 = smov (!%p192_p3, %s2743_s21), 63  ;;  %v3646_v24 = vld [vmem:[%s4620_s1 + $0x70] sm:$0xff]   ;;  %v3650_v28 = vld [vmem:[%s4620_s1 + $0x78] sm:$0xff]   ;;  %v3729_v53 = vld [vmem:[%s4620_s1 + $0x140] sm:$0xff]   ;;  %s4627_s9 = smov (!%p199_p4, %s2745_s9), 15 }
   0xe   : > { %3121 = vmatprep.subr.bf16.mxu1 %v3632_v10  ;;  %s3613_s20 = smul.u32 36, %s4625_s21  ;;  %v3647_v25 = vld [vmem:[%s4620_s1 + $0x30] sm:$0xff]   ;;  %v3651_v29 = vld [vmem:[%s4620_s1 + $0x38] sm:$0xff]   ;;  %v3732_v55 = vld [vmem:[%s4620_s1 + $0x100] sm:$0xff]   ;;  %s2746_s10 = sshll.u32 %s4627_s9, 2 }
   0xf   : > { %3010 = vmatpush3.bf16.msra.mxu0 %v3631_v9  ;;  %v3648_v26 = vld [vmem:[%s4620_s1 + $0xf0] sm:$0xff]   ;;  %v3652_v30 = vld [vmem:[%s4620_s1 + $0xf8] sm:$0xff]   ;;  %v3734_v57 = vld [vmem:[%s4620_s1 + $0x1c0] sm:$0xff]   ;;  %s202_s13 = scalar_lea.vmem %s4623_s4, %s2746_s10 }
  0x10   : > { %3011 = vmatprep.subr.bf16.mxu0 %v3634_v12  ;;  %v3649_v27 = vld [vmem:[%s4620_s1 + $0xb0] sm:$0xff]   ;;  %s4035_s5 = scalar_lea.vmem %s4619_s0, %s3613_s20  ;;  %v3656_v33 = vld [vmem:[%s4620_s1 + $0xb8] sm:$0xff]   ;;  %v3735_v59 = vld [vmem:[%s4620_s1 + $0x180] sm:$0xff]  }
  0x11   : > { %3122 = vmatpush3.bf16.msra.mxu1 %v3633_v11  ;;  %v3653_v31 = vld [vmem:[%s4035_s5] ss:$36 sps:$4 sm:$0xff]   ;;  %v3657_v34 = vld [vmem:[%s4035_s5 + $0x8] ss:$36 sps:$4 sm:$0xff]   ;;  %v3663_v37 = vld [vmem:[%s4035_s5 + $0x54] ss:$36 sps:$4 sm:$0xff]  }
  0x12   : > { %3123 = vmatprep.subr.bf16.mxu1 %v3636_v14  ;;  %v3655_v32 = vld [vmem:[%s4035_s5 + $0x4] ss:$36 sps:$4 sm:$0xff]   ;;  %v3659_v35 = vld [vmem:[%s4035_s5 + $0xc] ss:$36 sps:$4 sm:$0xff]   ;;  %v3666_v39 = vld [vmem:[%s4035_s5 + $0x94] ss:$36 sps:$4 sm:$0xff]  }
  0x13   : > { %3012 = vmatpush3.bf16.msra.mxu0 %v3635_v13  ;;  %1716 = vmatprep.mubr.bf16.mxu0 %v3655_v32  ;;  %v3660_v36 = vld [vmem:[%s4035_s5 + $0x4c] ss:$36 sps:$4 sm:$0xff]   ;;  %v3669_v41 = vld [vmem:[%s4035_s5 + $0x9c] ss:$36 sps:$4 sm:$0xff]   ;;  %v3675_v45 = vld [vmem:[%s4035_s5 + $0xe4] ss:$36 sps:$4 sm:$0xff]  }
  0x14   : > { %3013 = vmatprep.subr.bf16.mxu0 %v3638_v16  ;;  %1877 = vmatprep.mubr.bf16.mxu1 %v3659_v35  ;;  %v3662_v38 = vld [vmem:[%s4035_s5 + $0x48] ss:$36 sps:$4 sm:$0xff]   ;;  %v3665_v40 = vld [vmem:[%s4035_s5 + $0x50] ss:$36 sps:$4 sm:$0xff]   ;;  %v3672_v43 = vld [vmem:[%s4035_s5 + $0xdc] ss:$36 sps:$4 sm:$0xff]  }
  0x15   : > { %3124 = vmatpush3.bf16.msra.mxu1 %v3637_v15  ;;  %v3668_v42 = vld [vmem:[%s4035_s5 + $0x90] ss:$36 sps:$4 sm:$0xff]   ;;  %v3671_v44 = vld [vmem:[%s4035_s5 + $0x98] ss:$36 sps:$4 sm:$0xff]   ;;  %v3678_v47 = vld [vmem:[%s4035_s5 + $0x124] ss:$36 sps:$4 sm:$0xff]  }
  0x16   : > { %3125 = vmatprep.subr.bf16.mxu1 %v3640_v18  ;;  %v3674_v46 = vld [vmem:[%s4035_s5 + $0xd8] ss:$36 sps:$4 sm:$0xff]   ;;  %v3677_v48 = vld [vmem:[%s4035_s5 + $0xe0] ss:$36 sps:$4 sm:$0xff]   ;;  %v3681_v49 = vld [vmem:[%s4035_s5 + $0x12c] ss:$36 sps:$4 sm:$0xff]  }
  0x17   : > { %3014 = vmatpush3.bf16.msra.mxu0 %v3639_v17  ;;  %v3680_v50 = vld [vmem:[%s4035_s5 + $0x120] ss:$36 sps:$4 sm:$0xff]   ;;  %v3684_v51 = vld [vmem:[%s4035_s5 + $0x16c] ss:$36 sps:$4 sm:$0xff]   ;;  %v3687_v54 = vld [vmem:[%s4035_s5 + $0x174] ss:$36 sps:$4 sm:$0xff]  }
  0x18   : > { %3015 = vmatprep.subr.bf16.mxu0 %v3642_v20  ;;  %v3683_v52 = vld [vmem:[%s4035_s5 + $0x128] ss:$36 sps:$4 sm:$0xff]   ;;  %v3690_v58 = vld [vmem:[%s4035_s5 + $0x1b4] ss:$36 sps:$4 sm:$0xff]   ;;  %v3693_v0 = vld [vmem:[%s4035_s5 + $0x1bc] ss:$36 sps:$4 sm:$0xff]  }
  0x19   : > { %3126 = vmatpush3.bf16.msra.mxu1 %v3641_v19  ;;  %v3686_v56 = vld [vmem:[%s4035_s5 + $0x168] ss:$36 sps:$4 sm:$0xff]   ;;  %v3689_v63 = vld [vmem:[%s4035_s5 + $0x170] ss:$36 sps:$4 sm:$0xff]   ;;  %v3696_v5 = vld [vmem:[%s4035_s5 + $0x1fc] ss:$36 sps:$4 sm:$0xff]  }
  0x1a   : > { %3127 = vmatprep.subr.bf16.mxu1 %v3644_v22  ;;  %v3736_v60 = vld [vmem:[%s4620_s1 + $0x148] sm:$0xff]   ;;  %v3743_v2 = vld [vmem:[%s4620_s1 + $0x150] sm:$0xff]   ;;  %v3695_v6 = vld [vmem:[%s4035_s5 + $0x1b8] ss:$36 sps:$4 sm:$0xff]  }
  0x1b   : > { %3016 = vmatpush3.bf16.msra.mxu0 %v3643_v21  ;;  %v3737_v61 = vld [vmem:[%s4620_s1 + $0x108] sm:$0xff]   ;;  %v3692_v3 = vld [vmem:[%s4035_s5 + $0x1b0] ss:$36 sps:$4 sm:$0xff]   ;;  %v3750_v10 = vld [vmem:[%s4620_s1 + $0x158] sm:$0xff]  }
  0x1c   : > { %3017 = vmatprep.subr.bf16.mxu0 %v3646_v24  ;;  %v3738_v62 = vld [vmem:[%s4620_s1 + $0x1c8] sm:$0xff]   ;;  %v3746_v4 = vld [vmem:[%s4620_s1 + $0x110] sm:$0xff]   ;;  %v3751_v11 = vld [vmem:[%s4620_s1 + $0x118] sm:$0xff]  }
  0x1d   : > { %3128 = vmatpush3.bf16.msra.mxu1 %v3645_v23  ;;  %v3741_v1 = vld [vmem:[%s4620_s1 + $0x188] sm:$0xff]   ;;  %v3748_v7 = vld [vmem:[%s4620_s1 + $0x1d0] sm:$0xff]   ;;  %v3752_v12 = vld [vmem:[%s4620_s1 + $0x1d8] sm:$0xff]  }
  0x1e   : > { %3129 = vmatprep.subr.bf16.mxu1 %v3648_v26  ;;  %v3699_v8 = vld [vmem:[%s4035_s5 + $0x204] ss:$36 sps:$4 sm:$0xff]   ;;  %v3749_v9 = vld [vmem:[%s4620_s1 + $0x190] sm:$0xff]   ;;  %v3698_v13 = vld [vmem:[%s4035_s5 + $0x1f8] ss:$36 sps:$4 sm:$0xff]  }
  0x1f   : > { %3018 = vmatpush3.bf16.msra.mxu0 %v3647_v25  ;;  %v3755_v14 = vld [vmem:[%s4620_s1 + $0x198] sm:$0xff]   ;;  %v3757_v15 = vld [vmem:[%s4620_s1 + $0x160] sm:$0xff]   ;;  %v3705_v18 = vld [vmem:[%s4035_s5 + $0x24c] ss:$36 sps:$4 sm:$0xff]  }
  0x20   : > { %3019 = vmatprep.subr.bf16.mxu0 %v3650_v28  ;;  %v3701_v16 = vld [vmem:[%s4035_s5 + $0x200] ss:$36 sps:$4 sm:$0xff]   ;;  %v3764_v22 = vld [vmem:[%s4620_s1 + $0x168] sm:$0xff]   ;;  %v3777_v35 = vld [vmem:[%s4620_s1 + $0x1b0] sm:$0xff]  }
  0x21   : > { %3130 = vmatpush3.bf16.msra.mxu1 %v3649_v27  ;;  %v3702_v17 = vld [vmem:[%s4035_s5 + $0x244] ss:$36 sps:$4 sm:$0xff]   ;;  %v3708_v26 = vld [vmem:[%s4035_s5 + $0x28c] ss:$36 sps:$4 sm:$0xff]  }
  0x22   : > { %3131 = vmatprep.subr.bf16.mxu1 %v3652_v30  ;;  %v3760_v19 = vld [vmem:[%s4620_s1 + $0x120] sm:$0xff]   ;;  %v3765_v24 = vld [vmem:[%s4620_s1 + $0x128] sm:$0xff]   ;;  %v3711_v30 = vld [vmem:[%s4035_s5 + $0x294] ss:$36 sps:$4 sm:$0xff]  }
  0x23   : > { %3020 = vmatpush3.bf16.msra.mxu0 %v3651_v29  ;;  %v3762_v20 = vld [vmem:[%s4620_s1 + $0x1e0] sm:$0xff]   ;;  %v3766_v25 = vld [vmem:[%s4620_s1 + $0x1e8] sm:$0xff]   ;;  %v3771_v29 = vld [vmem:[%s4620_s1 + $0x170] sm:$0xff]  }
  0x24   : > { %3229 = vmatprep.subr.bf16.mxu0 %v3729_v53  ;;  %v3763_v21 = vld [vmem:[%s4620_s1 + $0x1a0] sm:$0xff]   ;;  %v3769_v27 = vld [vmem:[%s4620_s1 + $0x1a8] sm:$0xff]   ;;  %v3744_v53 = vld [vmem:[%s4035_s5 + $0x3b4] ss:$36 sps:$4 sm:$0xff]  }
  0x25   : > { %3132 = vmatpush3.bf16.msra.mxu1 %v3656_v33  ;;  %v3704_v23 = vld [vmem:[%s4035_s5 + $0x240] ss:$36 sps:$4 sm:$0xff]   ;;  %v3707_v28 = vld [vmem:[%s4035_s5 + $0x248] ss:$36 sps:$4 sm:$0xff]   ;;  %v3776_v33 = vld [vmem:[%s4620_s1 + $0x1f0] sm:$0xff]  }
  0x26   : > { %1717 = vmatmul.mubr.bf16.vlgmr.msra.gmra.mrb[0].mxu0 %v3653_v31  ;;  %3341 = vmatprep.subr.bf16.mxu1 %v3734_v57  ;;  %v3774_v31 = vld [vmem:[%s4620_s1 + $0x130] sm:$0xff]   ;;  %v3710_v32 = vld [vmem:[%s4035_s5 + $0x288] ss:$36 sps:$4 sm:$0xff]   ;;  %v3758_v57 = vld [vmem:[%s4035_s5 + $0x3fc] ss:$36 sps:$4 sm:$0xff]  }
  0x27   : > { %1724 = vmatprep.mubr.bf16.mxu0 %v3660_v36  ;;  %3230 = vmatpush3.bf16.msra.mxu0 %v3732_v55  ;;  %v3778_v36 = vld [vmem:[%s4620_s1 + $0x178] sm:$0xff]  }
  0x28   : > { %1878 = vmatmul.mubr.bf16.vlgmr.msra.gmra.mrb[0].mxu1 %v3657_v34  ;;  %3231 = vmatprep.subr.bf16.mxu0 %v3736_v60  ;;  %v3714_v34 = vld [vmem:[%s4035_s5 + $0x2d4] ss:$36 sps:$4 sm:$0xff]   ;;  %v3767_v60 = vld [vmem:[%s4035_s5 + $0x43c] ss:$36 sps:$4 sm:$0xff]  }
  0x29   : > { %1885 = vmatprep.mubr.bf16.mxu1 %v3663_v37  ;;  %3342 = vmatpush3.bf16.msra.mxu1 %v3735_v59  ;;  %v3779_v37 = vld [vmem:[%s4620_s1 + $0x138] sm:$0xff]   ;;  %v3756_v59 = vld [vmem:[%s4035_s5 + $0x3f0] ss:$36 sps:$4 sm:$0xff]  }
  0x2a   : > { %3343 = vmatprep.subr.bf16.mxu1 %v3738_v62  ;;  %v3753_v55 = vld [vmem:[%s4035_s5 + $0x3f4] ss:$36 sps:$4 sm:$0xff]   ;;  %v3772_v62 = vld [vmem:[%s4035_s5 + $0x444] ss:$36 sps:$4 sm:$0xff]  }
  0x2b   : > { %3232 = vmatpush3.bf16.msra.mxu0 %v3737_v61  ;;  %v3761_v61 = vld [vmem:[%s4035_s5 + $0x3f8] ss:$36 sps:$4 sm:$0xff]  }
  0x2c   : > { %3233 = vmatprep.subr.bf16.mxu0 %v3743_v2  ;;  %v3787_v2 = vld [vmem:[%s4035_s5 + $0x1c] ss:$36 sps:$4 sm:$0xff]  }
  0x2d   : > { %3344 = vmatpush3.bf16.msra.mxu1 %v3741_v1  ;;  %v3775_v1 = vld [vmem:[%s4035_s5 + $0x440] ss:$36 sps:$4 sm:$0xff]  }
  0x2e   : > { %1725 = vmatmul.mubr.bf16.gmra.mrb[4].mxu0 %v3662_v38  ;;  %3345 = vmatprep.subr.bf16.mxu1 %v3748_v7  ;;  %v3780_v38 = vld [vmem:[%s4620_s1 + $0x1f8] sm:$0xff]   ;;  %v3791_v7 = vld [vmem:[%s4035_s5 + $0x64] ss:$36 sps:$4 sm:$0xff]  }
  0x2f   : > { %1732 = vmatprep.mubr.bf16.mxu0 %v3666_v39  ;;  %3234 = vmatpush3.bf16.msra.mxu0 %v3746_v4  ;;  %v3713_v39 = vld [vmem:[%s4035_s5 + $0x290] ss:$36 sps:$4 sm:$0xff]   ;;  %v3788_v4 = vld [vmem:[%s4035_s5 + $0x5c] ss:$36 sps:$4 sm:$0xff]  }
  0x30   : > { %1886 = vmatmul.mubr.bf16.gmra.mrb[4].mxu1 %v3665_v40  ;;  %3235 = vmatprep.subr.bf16.mxu0 %v3750_v10  ;;  %v3717_v40 = vld [vmem:[%s4035_s5 + $0x2dc] ss:$36 sps:$4 sm:$0xff]   ;;  %v3794_v10 = vld [vmem:[%s4035_s5 + $0xa4] ss:$36 sps:$4 sm:$0xff]  }
  0x31   : > { %1893 = vmatprep.mubr.bf16.mxu1 %v3669_v41  ;;  %3346 = vmatpush3.bf16.msra.mxu1 %v3749_v9  ;;  %v3784_v41 = vld [vmem:[%s4620_s1 + $0x1b8] sm:$0xff]  }
  0x32   : > { %3347 = vmatprep.subr.bf16.mxu1 %v3752_v12  ;;  %v3790_v9 = vld [vmem:[%s4035_s5 + $0x58] ss:$36 sps:$4 sm:$0xff]   ;;  %v3793_v12 = vld [vmem:[%s4035_s5 + $0x60] ss:$36 sps:$4 sm:$0xff]  }
  0x33   : > { %3236 = vmatpush3.bf16.msra.mxu0 %v3751_v11  ;;  %v3869_v11 = vld [vmem:[%s4620_s1 + $0x218] sm:$0xff]  }
  0x34   : > { %3237 = vmatprep.subr.bf16.mxu0 %v3757_v15  ;;  %v3796_v15 = vld [vmem:[%s4035_s5 + $0xa0] ss:$36 sps:$4 sm:$0xff]  }
  0x35   : > { %3348 = vmatpush3.bf16.msra.mxu1 %v3755_v14  ;;  %v3873_v14 = vld [vmem:[%s4620_s1 + $0x220] sm:$0xff]  }
  0x36   : > { %1733 = vmatmul.mubr.bf16.gmra.mrb[8].mxu0 %v3668_v42  ;;  %3349 = vmatprep.subr.bf16.mxu1 %v3762_v20  ;;  %v3716_v42 = vld [vmem:[%s4035_s5 + $0x2d0] ss:$36 sps:$4 sm:$0xff]  }
  0x37   : > { %1740 = vmatprep.mubr.bf16.mxu0 %v3672_v43  ;;  %3238 = vmatpush3.bf16.msra.mxu0 %v3760_v19  ;;  %v3720_v43 = vld [vmem:[%s4035_s5 + $0x31c] ss:$36 sps:$4 sm:$0xff]   ;;  %v3803_v19 = vld [vmem:[%s4035_s5 + $0xf4] ss:$36 sps:$4 sm:$0xff]  }
  0x38   : > { %1894 = vmatmul.mubr.bf16.gmra.mrb[8].mxu1 %v3671_v44  ;;  %3239 = vmatprep.subr.bf16.mxu0 %v3764_v22  ;;  %v3719_v44 = vld [vmem:[%s4035_s5 + $0x2d8] ss:$36 sps:$4 sm:$0xff]   ;;  %v3881_v20 = vld [vmem:[%s4620_s1 + $0x230] sm:$0xff]  }
  0x39   : > { %1901 = vmatprep.mubr.bf16.mxu1 %v3675_v45  ;;  %3350 = vmatpush3.bf16.msra.mxu1 %v3763_v21  ;;  %v3723_v45 = vld [vmem:[%s4035_s5 + $0x324] ss:$36 sps:$4 sm:$0xff]   ;;  %v3806_v22 = vld [vmem:[%s4035_s5 + $0x134] ss:$36 sps:$4 sm:$0xff]  }
  0x3a   : > { %3351 = vmatprep.subr.bf16.mxu1 %v3766_v25  ;;  %v3802_v21 = vld [vmem:[%s4035_s5 + $0xe8] ss:$36 sps:$4 sm:$0xff]   ;;  %v3809_v25 = vld [vmem:[%s4035_s5 + $0x13c] ss:$36 sps:$4 sm:$0xff]  }
  0x3b   : > { %3240 = vmatpush3.bf16.msra.mxu0 %v3765_v24  ;;  %v3805_v24 = vld [vmem:[%s4035_s5 + $0xf0] ss:$36 sps:$4 sm:$0xff]  }
  0x3c   : > { %3241 = vmatprep.subr.bf16.mxu0 %v3771_v29  ;;  %v3815_v29 = vld [vmem:[%s4035_s5 + $0x184] ss:$36 sps:$4 sm:$0xff]  }
  0x3d   : > { %3352 = vmatpush3.bf16.msra.mxu1 %v3769_v27  ;;  %v3812_v27 = vld [vmem:[%s4035_s5 + $0x17c] ss:$36 sps:$4 sm:$0xff]  }
  0x3e   : > { %1741 = vmatmul.mubr.bf16.gmra.mrb[12].mxu0 %v3674_v46  ;;  %3353 = vmatprep.subr.bf16.mxu1 %v3776_v33  ;;  %v3722_v46 = vld [vmem:[%s4035_s5 + $0x318] ss:$36 sps:$4 sm:$0xff]   ;;  %v3821_v33 = vld [vmem:[%s4035_s5 + $0x1cc] ss:$36 sps:$4 sm:$0xff]  }
  0x3f   : > { %1748 = vmatprep.mubr.bf16.mxu0 %v3678_v47  ;;  %3242 = vmatpush3.bf16.msra.mxu0 %v3774_v31  ;;  %v3726_v47 = vld [vmem:[%s4035_s5 + $0x364] ss:$36 sps:$4 sm:$0xff]  }
  0x40   : > { %1902 = vmatmul.mubr.bf16.gmra.mrb[12].mxu1 %v3677_v48  ;;  %3243 = vmatprep.subr.bf16.mxu0 %v3778_v36  ;;  %v3725_v48 = vld [vmem:[%s4035_s5 + $0x320] ss:$36 sps:$4 sm:$0xff]   ;;  %v3823_v36 = vld [vmem:[%s4035_s5 + $0x1c8] ss:$36 sps:$4 sm:$0xff]  }
  0x41   : > { %1909 = vmatprep.mubr.bf16.mxu1 %v3681_v49  ;;  %3354 = vmatpush3.bf16.msra.mxu1 %v3777_v35  ;;  %v3730_v49 = vld [vmem:[%s4035_s5 + $0x36c] ss:$36 sps:$4 sm:$0xff]   ;;  %v3818_v31 = vld [vmem:[%s4035_s5 + $0x1c4] ss:$36 sps:$4 sm:$0xff]  }
  0x42   : > { %3355 = vmatprep.subr.bf16.mxu1 %v3780_v38  ;;  %v3824_v35 = vld [vmem:[%s4035_s5 + $0x20c] ss:$36 sps:$4 sm:$0xff]  }
  0x43   : > { %3244 = vmatpush3.bf16.msra.mxu0 %v3779_v37  ;;  %v3827_v37 = vld [vmem:[%s4035_s5 + $0x214] ss:$36 sps:$4 sm:$0xff]   ;;  %v3826_v38 = vld [vmem:[%s4035_s5 + $0x208] ss:$36 sps:$4 sm:$0xff]  }
  0x45   : > { %3356 = vmatpush3.bf16.msra.mxu1 %v3784_v41  ;;  %v3833_v41 = vld [vmem:[%s4035_s5 + $0x25c] ss:$36 sps:$4 sm:$0xff]  }
  0x46   : > { %1749 = vmatmul.mubr.bf16.gmra.mrb[16].mxu0 %v3680_v50  ;;  %v3728_v50 = vld [vmem:[%s4035_s5 + $0x360] ss:$36 sps:$4 sm:$0xff]  }
  0x47   : > { %1756 = vmatprep.mubr.bf16.mxu0 %v3684_v51  ;;  %v3739_v51 = vld [vmem:[%s4035_s5 + $0x3ac] ss:$36 sps:$4 sm:$0xff]  }
  0x48   : > { %1910 = vmatmul.mubr.bf16.gmra.mrb[16].mxu1 %v3683_v52  ;;  %v3733_v52 = vld [vmem:[%s4035_s5 + $0x368] ss:$36 sps:$4 sm:$0xff]  }
  0x49   : > { %1917 = vmatprep.mubr.bf16.mxu1 %v3687_v54  ;;  %v3742_v54 = vld [vmem:[%s4035_s5 + $0x3a8] ss:$36 sps:$4 sm:$0xff]  }
  0x4e   : > { %1757 = vmatmul.mubr.bf16.gmra.mrb[20].mxu0 %v3686_v56  ;;  %v3747_v56 = vld [vmem:[%s4035_s5 + $0x3b0] ss:$36 sps:$4 sm:$0xff]  }
  0x4f   : > { %1764 = vmatprep.mubr.bf16.mxu0 %v3690_v58  ;;  %v3857_v58 = vld [vmem:[%s4620_s1 + $0x200] sm:$0xff]  }
  0x50   : > { %1918 = vmatmul.mubr.bf16.gmra.mrb[20].mxu1 %v3689_v63  ;;  %3533 = vmatprep.subr.bf16.mxu0 %v3857_v58  ;;  %v3770_v63 = vld [vmem:[%s4035_s5 + $0x438] ss:$36 sps:$4 sm:$0xff]  }
  0x51   : > { %1925 = vmatprep.mubr.bf16.mxu1 %v3693_v0  ;;  %v3783_v0 = vld [vmem:[%s4035_s5 + $0x14] ss:$36 sps:$4 sm:$0xff]  }
  0x56   : > { %1765 = vmatmul.mubr.bf16.gmra.mrb[24].mxu0 %v3692_v3  ;;  %v3781_v3 = vld [vmem:[%s4035_s5 + $0x10] ss:$36 sps:$4 sm:$0xff]  }
  0x57   : > { %1772 = vmatprep.mubr.bf16.mxu0 %v3696_v5  ;;  %v3785_v5 = vld [vmem:[%s4035_s5 + $0x18] ss:$36 sps:$4 sm:$0xff]  }
  0x58   : > { %1926 = vmatmul.mubr.bf16.gmra.mrb[24].mxu1 %v3695_v6  ;;  %v3861_v6 = vld [vmem:[%s4620_s1 + $0x208] sm:$0xff]  }
  0x59   : > { %1933 = vmatprep.mubr.bf16.mxu1 %v3699_v8  ;;  %v3865_v8 = vld [vmem:[%s4620_s1 + $0x210] sm:$0xff]  }
  0x5e   : > { %1773 = vmatmul.mubr.bf16.gmra.mrb[28].mxu0 %v3698_v13  ;;  %v3797_v13 = vld [vmem:[%s4035_s5 + $0xac] ss:$36 sps:$4 sm:$0xff]  }
  0x5f   : > { %1780 = vmatprep.mubr.bf16.mxu0 %v3702_v17  ;;  %v3877_v17 = vld [vmem:[%s4620_s1 + $0x228] sm:$0xff]  }
  0x60   : > { %1934 = vmatmul.mubr.bf16.gmra.mrb[28].mxu1 %v3701_v16  ;;  %v3800_v16 = vld [vmem:[%s4035_s5 + $0xec] ss:$36 sps:$4 sm:$0xff]  }
  0x61   : > { %1941 = vmatprep.mubr.bf16.mxu1 %v3705_v18  ;;  %v3799_v18 = vld [vmem:[%s4035_s5 + $0xa8] ss:$36 sps:$4 sm:$0xff]  }
  0x66   : > { %1781 = vmatmul.mubr.bf16.gmra.mrb[32].mxu0 %v3704_v23  ;;  %v3885_v23 = vld [vmem:[%s4620_s1 + $0x238] sm:$0xff]  }
  0x67   : > { %1788 = vmatprep.mubr.bf16.mxu0 %v3708_v26  ;;  %v3808_v26 = vld [vmem:[%s4035_s5 + $0x130] ss:$36 sps:$4 sm:$0xff]  }
  0x68   : > { %1942 = vmatmul.mubr.bf16.gmra.mrb[32].mxu1 %v3707_v28  ;;  %v3811_v28 = vld [vmem:[%s4035_s5 + $0x138] ss:$36 sps:$4 sm:$0xff]  }
  0x69   : > { %1949 = vmatprep.mubr.bf16.mxu1 %v3711_v30  ;;  %v3814_v30 = vld [vmem:[%s4035_s5 + $0x178] ss:$36 sps:$4 sm:$0xff]  }
  0x6e   : > { %1789 = vmatmul.mubr.bf16.gmra.mrb[36].mxu0 %v3710_v32  ;;  %v3817_v32 = vld [vmem:[%s4035_s5 + $0x180] ss:$36 sps:$4 sm:$0xff]  }
  0x6f   : > { %1796 = vmatprep.mubr.bf16.mxu0 %v3714_v34  ;;  %v3820_v34 = vld [vmem:[%s4035_s5 + $0x1c0] ss:$36 sps:$4 sm:$0xff]  }
  0x70   : > { %1950 = vmatmul.mubr.bf16.gmra.mrb[36].mxu1 %v3713_v39  ;;  %v3830_v39 = vld [vmem:[%s4035_s5 + $0x254] ss:$36 sps:$4 sm:$0xff]  }
  0x71   : > { %1957 = vmatprep.mubr.bf16.mxu1 %v3717_v40  ;;  %v3829_v40 = vld [vmem:[%s4035_s5 + $0x210] ss:$36 sps:$4 sm:$0xff]  }
  0x76   : > { %1797 = vmatmul.mubr.bf16.gmra.mrb[40].mxu0 %v3716_v42  ;;  %v3832_v42 = vld [vmem:[%s4035_s5 + $0x250] ss:$36 sps:$4 sm:$0xff]  }
  0x77   : > { %1804 = vmatprep.mubr.bf16.mxu0 %v3720_v43  ;;  %v3836_v43 = vld [vmem:[%s4035_s5 + $0x29c] ss:$36 sps:$4 sm:$0xff]  }
  0x78   : > { %1958 = vmatmul.mubr.bf16.gmra.mrb[40].mxu1 %v3719_v44  ;;  %v3835_v44 = vld [vmem:[%s4035_s5 + $0x258] ss:$36 sps:$4 sm:$0xff]  }
  0x79   : > { %1965 = vmatprep.mubr.bf16.mxu1 %v3723_v45  ;;  %v3839_v45 = vld [vmem:[%s4035_s5 + $0x2a4] ss:$36 sps:$4 sm:$0xff]  }
  0x7e   : > { %1805 = vmatmul.mubr.bf16.gmra.mrb[44].mxu0 %v3722_v46  ;;  %v3838_v46 = vld [vmem:[%s4035_s5 + $0x298] ss:$36 sps:$4 sm:$0xff]  }
  0x7f   : > { %1812 = vmatprep.mubr.bf16.mxu0 %v3726_v47  ;;  %v3842_v47 = vld [vmem:[%s4035_s5 + $0x2e4] ss:$36 sps:$4 sm:$0xff]  }
  0x80   : > { %1966 = vmatmul.mubr.bf16.gmra.mrb[44].mxu1 %v3725_v48  ;;  %v3841_v48 = vld [vmem:[%s4035_s5 + $0x2a0] ss:$36 sps:$4 sm:$0xff]  }
  0x81   : > { %1973 = vmatprep.mubr.bf16.mxu1 %v3730_v49  ;;  %v3845_v49 = vld [vmem:[%s4035_s5 + $0x2ec] ss:$36 sps:$4 sm:$0xff]  }
  0x86   : > { %1813 = vmatmul.mubr.bf16.gmra.mrb[48].mxu0 %v3728_v50  ;;  %v3844_v50 = vld [vmem:[%s4035_s5 + $0x2e0] ss:$36 sps:$4 sm:$0xff]  }
  0x87   : > { %1820 = vmatprep.mubr.bf16.mxu0 %v3739_v51  ;;  %v3848_v51 = vld [vmem:[%s4035_s5 + $0x32c] ss:$36 sps:$4 sm:$0xff]  }
  0x88   : > { %1974 = vmatmul.mubr.bf16.gmra.mrb[48].mxu1 %v3733_v52  ;;  %v3847_v52 = vld [vmem:[%s4035_s5 + $0x2e8] ss:$36 sps:$4 sm:$0xff]  }
  0x89   : > { %1981 = vmatprep.mubr.bf16.mxu1 %v3744_v53  ;;  %v3851_v53 = vld [vmem:[%s4035_s5 + $0x334] ss:$36 sps:$4 sm:$0xff]  }
  0x8e   : > { %1821 = vmatmul.mubr.bf16.gmra.mrb[52].mxu0 %v3742_v54 }
  0x8f   : > { %1828 = vmatprep.mubr.bf16.mxu0 %v3753_v55  ;;  %v4279_v55 = vld [vmem:[%s4621_s2] ss:$0 sm:$0xff] }
  0x90   : > { %1982 = vmatmul.mubr.bf16.gmra.mrb[52].mxu1 %v3747_v56 }
  0x91   : > { %1989 = vmatprep.mubr.bf16.mxu1 %v3758_v57  ;;  %v3850_v57 = vld [vmem:[%s4035_s5 + $0x328] ss:$36 sps:$4 sm:$0xff]  }
  0x96   : > { %1829 = vmatmul.mubr.bf16.gmra.mrb[56].mxu0 %v3756_v59 }
  0x97   : > { %1836 = vmatprep.mubr.bf16.mxu0 %v3767_v60  ;;  %v3854_v60 = vld [vmem:[%s4035_s5 + $0x374] ss:$36 sps:$4 sm:$0xff]  }
  0x98   : > { %1990 = vmatmul.mubr.bf16.gmra.mrb[56].mxu1 %v3761_v61 }
  0x99   : > { %1997 = vmatprep.mubr.bf16.mxu1 %v3772_v62 }
  0x9e   : > { %1837 = vmatmul.mubr.bf16.gmra.mrb[60].mxu0 %v3770_v63 }
  0x9f   : > { %2038 = vmatprep.mubr.bf16.mxu0 %v3783_v0 }
  0xa0   : > { %1998 = vmatmul.mubr.bf16.gmra.mrb[60].mxu1 %v3775_v1 }
  0xa1   : > { %2199 = vmatprep.mubr.bf16.mxu1 %v3787_v2  ;;  %v3853_v2 = vld [vmem:[%s4035_s5 + $0x330] ss:$36 sps:$4 sm:$0xff]  }
  0xa6   : > { %2039 = vmatmul.mubr.bf16.vlgmr.msra.gmra.mrb[64].mxu0 %v3781_v3 }
  0xa7   : > { %2046 = vmatprep.mubr.bf16.mxu0 %v3788_v4  ;;  %3534 = vmatpush3.bf16.msra.mxu0 %v3857_v58 }
  0xa8   : > { %3535 = vmatprep.subr.bf16.mxu0 %v3861_v6  ;;  %2200 = vmatmul.mubr.bf16.vlgmr.msra.gmra.mrb[64].mxu1 %v3785_v5  ;;  %v3858_v5 = vld [vmem:[%s4035_s5 + $0x37c] ss:$36 sps:$4 sm:$0xff]  }
  0xa9   : > { %2207 = vmatprep.mubr.bf16.mxu1 %v3791_v7 }
  0xab   : > { %3536 = vmatpush3.bf16.msra.mxu0 %v3861_v6 }
  0xac   : > { %3537 = vmatprep.subr.bf16.mxu0 %v3865_v8 }
  0xae   : > { %2047 = vmatmul.mubr.bf16.gmra.mrb[68].mxu0 %v3790_v9 }
  0xaf   : > { %2054 = vmatprep.mubr.bf16.mxu0 %v3794_v10  ;;  %3538 = vmatpush3.bf16.msra.mxu0 %v3865_v8 }
  0xb0   : > { %3539 = vmatprep.subr.bf16.mxu0 %v3869_v11  ;;  %2208 = vmatmul.mubr.bf16.gmra.mrb[68].mxu1 %v3793_v12 }
  0xb1   : > { %2215 = vmatprep.mubr.bf16.mxu1 %v3797_v13  ;;  %v3856_v13 = vld [vmem:[%s4035_s5 + $0x370] ss:$36 sps:$4 sm:$0xff]  }
  0xb3   : > { %3540 = vmatpush3.bf16.msra.mxu0 %v3869_v11 }
  0xb4   : > { %3541 = vmatprep.subr.bf16.mxu0 %v3873_v14 }
  0xb6   : > { %2055 = vmatmul.mubr.bf16.gmra.mrb[72].mxu0 %v3796_v15 }
  0xb7   : > { %2062 = vmatprep.mubr.bf16.mxu0 %v3800_v16  ;;  %3542 = vmatpush3.bf16.msra.mxu0 %v3873_v14  ;;  %v3862_v16 = vld [vmem:[%s4035_s5 + $0x3bc] ss:$36 sps:$4 sm:$0xff]  }
  0xb8   : > { %3543 = vmatprep.subr.bf16.mxu0 %v3877_v17  ;;  %2216 = vmatmul.mubr.bf16.gmra.mrb[72].mxu1 %v3799_v18 }
  0xb9   : > { %2223 = vmatprep.mubr.bf16.mxu1 %v3803_v19 }
  0xbb   : > { %3544 = vmatpush3.bf16.msra.mxu0 %v3877_v17 }
  0xbc   : > { %3545 = vmatprep.subr.bf16.mxu0 %v3881_v20 }
  0xbe   : > { %2063 = vmatmul.mubr.bf16.gmra.mrb[76].mxu0 %v3802_v21 }
  0xbf   : > { %2070 = vmatprep.mubr.bf16.mxu0 %v3806_v22  ;;  %3546 = vmatpush3.bf16.msra.mxu0 %v3881_v20  ;;  %v3860_v22 = vld [vmem:[%s4035_s5 + $0x378] ss:$36 sps:$4 sm:$0xff]  }
  0xc0   : > { %3547 = vmatprep.subr.bf16.mxu0 %v3885_v23  ;;  %2224 = vmatmul.mubr.bf16.gmra.mrb[76].mxu1 %v3805_v24 }
  0xc1   : > { %2231 = vmatprep.mubr.bf16.mxu1 %v3809_v25  ;;  %v3866_v25 = vld [vmem:[%s4035_s5 + $0x3c4] ss:$36 sps:$4 sm:$0xff]  }
  0xc3   : > { %3548 = vmatpush3.bf16.msra.mxu0 %v3885_v23 }
  0xc6   : > { %2071 = vmatmul.mubr.bf16.gmra.mrb[80].mxu0 %v3808_v26 }
  0xc7   : > { %2078 = vmatprep.mubr.bf16.mxu0 %v3812_v27 }
  0xc8   : > { %2232 = vmatmul.mubr.bf16.gmra.mrb[80].mxu1 %v3811_v28 }
  0xc9   : > { %2239 = vmatprep.mubr.bf16.mxu1 %v3815_v29 }
  0xce   : > { %2079 = vmatmul.mubr.bf16.gmra.mrb[84].mxu0 %v3814_v30 }
  0xcf   : > { %2086 = vmatprep.mubr.bf16.mxu0 %v3818_v31 }
  0xd0   : > { %2240 = vmatmul.mubr.bf16.gmra.mrb[84].mxu1 %v3817_v32 }
  0xd1   : > { %2247 = vmatprep.mubr.bf16.mxu1 %v3821_v33  ;;  %v3864_v33 = vld [vmem:[%s4035_s5 + $0x3b8] ss:$36 sps:$4 sm:$0xff]  }
  0xd6   : > { %2087 = vmatmul.mubr.bf16.gmra.mrb[88].mxu0 %v3820_v34 }
  0xd7   : > { %2094 = vmatprep.mubr.bf16.mxu0 %v3824_v35 }
  0xd8   : > { %2248 = vmatmul.mubr.bf16.gmra.mrb[88].mxu1 %v3823_v36  ;;  %v3870_v36 = vld [vmem:[%s4035_s5 + $0x404] ss:$36 sps:$4 sm:$0xff]  }
  0xd9   : > { %2255 = vmatprep.mubr.bf16.mxu1 %v3827_v37 }
  0xde   : > { %2095 = vmatmul.mubr.bf16.gmra.mrb[92].mxu0 %v3826_v38 }
  0xdf   : > { %2102 = vmatprep.mubr.bf16.mxu0 %v3830_v39 }
  0xe0   : > { %2256 = vmatmul.mubr.bf16.gmra.mrb[92].mxu1 %v3829_v40 }
  0xe1   : > { %2263 = vmatprep.mubr.bf16.mxu1 %v3833_v41 }
  0xe6   : > { %2103 = vmatmul.mubr.bf16.gmra.mrb[96].mxu0 %v3832_v42  ;;  %v3868_v42 = vld [vmem:[%s4035_s5 + $0x3c0] ss:$36 sps:$4 sm:$0xff]  }
  0xe7   : > { %2110 = vmatprep.mubr.bf16.mxu0 %v3836_v43 }
  0xe8   : > { %2264 = vmatmul.mubr.bf16.gmra.mrb[96].mxu1 %v3835_v44 }
  0xe9   : > { %2271 = vmatprep.mubr.bf16.mxu1 %v3839_v45  ;;  %v3874_v45 = vld [vmem:[%s4035_s5 + $0x40c] ss:$36 sps:$4 sm:$0xff]  }
  0xee   : > { %2111 = vmatmul.mubr.bf16.gmra.mrb[100].mxu0 %v3838_v46 }
  0xef   : > { %2118 = vmatprep.mubr.bf16.mxu0 %v3842_v47 }
  0xf0   : > { %2272 = vmatmul.mubr.bf16.gmra.mrb[100].mxu1 %v3841_v48 }
  0xf1   : > { %2279 = vmatprep.mubr.bf16.mxu1 %v3845_v49 }
  0xf6   : > { %2119 = vmatmul.mubr.bf16.gmra.mrb[104].mxu0 %v3844_v50 }
  0xf7   : > { %2126 = vmatprep.mubr.bf16.mxu0 %v3848_v51 }
  0xf8   : > { %2280 = vmatmul.mubr.bf16.gmra.mrb[104].mxu1 %v3847_v52 }
  0xf9   : > { %v3021_v54 = vpop.f32.mrb[0].mxu0  ;;  %2287 = vmatprep.mubr.bf16.mxu1 %v3851_v53  ;;  %v3872_v53 = vld [vmem:[%s4035_s5 + $0x400] ss:$36 sps:$4 sm:$0xff]  }
  0xfa   : > { %v3022_v56 = vpop.f32.mrb[1].mxu0 }
  0xfb   : > { %v3023_v58 = vadd.f32 %v3022_v56, %v3021_v54  ;;  %v3024_v59 = vpop.f32.mrb[2].mxu0  ;;  %v3133_v61 = vpop.f32.mrb[0].mxu1 }
  0xfc   : > { %v3025_v62 = vpop.f32.mrb[3].mxu0  ;;  %v3134_v1 = vpop.f32.mrb[1].mxu1 }
  0xfd   : > { %v1719_v63 = vadd.f32 %v3023_v58, %v4279_v55  ;;  %v3026_v0 = vadd.f32 %v3025_v62, %v3024_v59  ;;  %v3135_v3 = vadd.f32 %v3134_v1, %v3133_v61  ;;  %v3136_v4 = vpop.f32.mrb[2].mxu1 }
  0xfe   : > { %2127 = vmatmul.mubr.bf16.gmra.mrb[108].mxu0 %v3850_v57  ;;  %v3137_v7 = vpop.f32.mrb[3].mxu1  ;;  %v3878_v57 = vld [vmem:[%s4035_s5 + $0x44c] ss:$36 sps:$4 sm:$0xff]  }
  0xff   : > { %v1722_v6 = vadd.f32 %v3026_v0, %v4279_v55  ;;  %2134 = vmatprep.mubr.bf16.mxu0 %v3854_v60  ;;  %v4287_v8 = vadd.f32 %v3135_v3, %v1719_v63  ;;  %v3138_v9 = vadd.f32 %v3137_v7, %v3136_v4  ;;  %v3876_v63 = vld [vmem:[%s4035_s5 + $0x408] ss:$36 sps:$4 sm:$0xff]  }
 0x100   : > { %2288 = vmatmul.mubr.bf16.gmra.mrb[108].mxu1 %v3853_v2  ;;  %v3882_v2 = vld [vmem:[%s4035_s5 + $0x454] ss:$36 sps:$4 sm:$0xff]  }
 0x101   : > { %v3027_v10 = vpop.f32.mrb[4].mxu0  ;;  %v4289_v11 = vadd.f32 %v3138_v9, %v1722_v6  ;;  %2295 = vmatprep.mubr.bf16.mxu1 %v3858_v5 }
 0x102   : > { %v3028_v12 = vpop.f32.mrb[5].mxu0 }
 0x103   : > { %v3029_v14 = vadd.f32 %v3028_v12, %v3027_v10  ;;  %v3030_v15 = vpop.f32.mrb[6].mxu0  ;;  %v3139_v17 = vpop.f32.mrb[4].mxu1  ;;  %v3880_v12 = vld [vmem:[%s4035_s5 + $0x448] ss:$36 sps:$4 sm:$0xff]  }
 0x104   : > { %v3031_v18 = vpop.f32.mrb[7].mxu0  ;;  %v3140_v21 = vpop.f32.mrb[5].mxu1 }
 0x105   : > { %v1727_v19 = vadd.f32 %v3029_v14, %v4279_v55  ;;  %v3032_v20 = vadd.f32 %v3031_v18, %v3030_v15  ;;  %v3141_v23 = vadd.f32 %v3140_v21, %v3139_v17  ;;  %v3142_v24 = vpop.f32.mrb[6].mxu1  ;;  %v3886_v15 = vld [vmem:[%s4035_s5 + $0x20] ss:$36 sps:$4 sm:$0xff]   ;;  %v3884_v21 = vld [vmem:[%s4035_s5 + $0x450] ss:$36 sps:$4 sm:$0xff]  }
 0x106   : > { %2135 = vmatmul.mubr.bf16.gmra.mrb[112].mxu0 %v3856_v13  ;;  %v3143_v27 = vpop.f32.mrb[7].mxu1 }
 0x107   : > { %v1730_v26 = vadd.f32 %v3032_v20, %v4279_v55  ;;  %2142 = vmatprep.mubr.bf16.mxu0 %v3862_v16  ;;  %v4297_v28 = vadd.f32 %v3141_v23, %v1727_v19  ;;  %v3144_v29 = vadd.f32 %v3143_v27, %v3142_v24 }
 0x108   : > { %2296 = vmatmul.mubr.bf16.gmra.mrb[112].mxu1 %v3860_v22 }
 0x109   : > { %v3033_v30 = vpop.f32.mrb[8].mxu0  ;;  %v4299_v31 = vadd.f32 %v3144_v29, %v1730_v26  ;;  %2303 = vmatprep.mubr.bf16.mxu1 %v3866_v25 }
 0x10a   : > { %v3034_v32 = vpop.f32.mrb[9].mxu0 }
 0x10b   : > { %v3035_v34 = vadd.f32 %v3034_v32, %v3033_v30  ;;  %v3036_v35 = vpop.f32.mrb[10].mxu0  ;;  %v3145_v37 = vpop.f32.mrb[8].mxu1 }
 0x10c   : > { %v3037_v38 = vpop.f32.mrb[11].mxu0  ;;  %v3146_v41 = vpop.f32.mrb[9].mxu1 }
 0x10d   : > { %v1735_v39 = vadd.f32 %v3035_v34, %v4279_v55  ;;  %v3038_v40 = vadd.f32 %v3037_v38, %v3036_v35  ;;  %v3147_v43 = vadd.f32 %v3146_v41, %v3145_v37  ;;  %v3148_v44 = vpop.f32.mrb[10].mxu1 }
 0x10e   : > { %2143 = vmatmul.mubr.bf16.gmra.mrb[116].mxu0 %v3864_v33  ;;  %v3149_v47 = vpop.f32.mrb[11].mxu1  ;;  %v3887_v33 = vld [vmem:[%s4035_s5 + $0x68] ss:$36 sps:$4 sm:$0xff]  }
 0x10f   : > { %v1738_v46 = vadd.f32 %v3038_v40, %v4279_v55  ;;  %2150 = vmatprep.mubr.bf16.mxu0 %v3870_v36  ;;  %v4307_v48 = vadd.f32 %v3147_v43, %v1735_v39  ;;  %v3150_v49 = vadd.f32 %v3149_v47, %v3148_v44  ;;  %v3888_v36 = vld [vmem:[%s4035_s5 + $0xb0] ss:$36 sps:$4 sm:$0xff]  }
 0x110   : > { %2304 = vmatmul.mubr.bf16.gmra.mrb[116].mxu1 %v3868_v42 }
 0x111   : > { %v3039_v50 = vpop.f32.mrb[12].mxu0  ;;  %v4309_v51 = vadd.f32 %v3150_v49, %v1738_v46  ;;  %2311 = vmatprep.mubr.bf16.mxu1 %v3874_v45 }
 0x112   : > { %v3040_v52 = vpop.f32.mrb[13].mxu0 }
 0x113   : > { %v3041_v54 = vadd.f32 %v3040_v52, %v3039_v50  ;;  %v3042_v56 = vpop.f32.mrb[14].mxu0  ;;  %v3151_v58 = vpop.f32.mrb[12].mxu1 }
 0x114   : > { %v3043_v59 = vpop.f32.mrb[15].mxu0  ;;  %v3152_v62 = vpop.f32.mrb[13].mxu1 }
 0x115   : > { %v1743_v60 = vadd.f32 %v3041_v54, %v4279_v55  ;;  %v3044_v61 = vadd.f32 %v3043_v59, %v3042_v56  ;;  %v3153_v0 = vadd.f32 %v3152_v62, %v3151_v58  ;;  %v3154_v1 = vpop.f32.mrb[14].mxu1 }
 0x116   : > { %2151 = vmatmul.mubr.bf16.gmra.mrb[120].mxu0 %v3872_v53  ;;  %v3155_v4 = vpop.f32.mrb[15].mxu1  ;;  %v3889_v53 = vld [vmem:[%s4035_s5 + $0xf8] ss:$36 sps:$4 sm:$0xff]  }
 0x117   : > { %v1746_v3 = vadd.f32 %v3044_v61, %v4279_v55  ;;  %2158 = vmatprep.mubr.bf16.mxu0 %v3878_v57  ;;  %v4317_v5 = vadd.f32 %v3153_v0, %v1743_v60  ;;  %v3156_v6 = vadd.f32 %v3155_v4, %v3154_v1  ;;  %v3890_v57 = vld [vmem:[%s4035_s5 + $0x140] ss:$36 sps:$4 sm:$0xff]  }
 0x118   : > { %2312 = vmatmul.mubr.bf16.gmra.mrb[120].mxu1 %v3876_v63 }
 0x119   : > { %v3045_v7 = vpop.f32.mrb[16].mxu0  ;;  %v4319_v9 = vadd.f32 %v3156_v6, %v1746_v3  ;;  %2319 = vmatprep.mubr.bf16.mxu1 %v3882_v2 }
 0x11a   : > { %v3046_v10 = vpop.f32.mrb[17].mxu0 }
 0x11b   : > { %v3047_v13 = vadd.f32 %v3046_v10, %v3045_v7  ;;  %v3048_v14 = vpop.f32.mrb[18].mxu0  ;;  %v3157_v16 = vpop.f32.mrb[16].mxu1 }
 0x11c   : > { %v3049_v17 = vpop.f32.mrb[19].mxu0  ;;  %v3158_v20 = vpop.f32.mrb[17].mxu1 }
 0x11d   : > { %v1751_v18 = vadd.f32 %v3047_v13, %v4279_v55  ;;  %v3050_v19 = vadd.f32 %v3049_v17, %v3048_v14  ;;  %v3159_v22 = vadd.f32 %v3158_v20, %v3157_v16  ;;  %v3160_v23 = vpop.f32.mrb[18].mxu1 }
 0x11e   : > { %2159 = vmatmul.mubr.bf16.gmra.mrb[124].mxu0 %v3880_v12  ;;  %v3161_v25 = vpop.f32.mrb[19].mxu1  ;;  %v3891_v12 = vld [vmem:[%s4035_s5 + $0x188] ss:$36 sps:$4 sm:$0xff]  }
 0x11f   : > { %v1754_v24 = vadd.f32 %v3050_v19, %v4279_v55  ;;  %3549 = vmatprep.mubr.bf16.mxu0 %v3886_v15  ;;  %v4326_v26 = vadd.f32 %v3159_v22, %v1751_v18  ;;  %v3162_v27 = vadd.f32 %v3161_v25, %v3160_v23  ;;  %v3892_v15 = vld [vmem:[%s4035_s5 + $0x1d0] ss:$36 sps:$4 sm:$0xff]  }
 0x120   : > { %2320 = vmatmul.mubr.bf16.gmra.mrb[124].mxu1 %v3884_v21 }
 0x121   : > { %v3051_v29 = vpop.f32.mrb[20].mxu0  ;;  %v4328_v30 = vadd.f32 %v3162_v27, %v1754_v24 }
 0x122   : > { %v3052_v32 = vpop.f32.mrb[21].mxu0 }
 0x123   : > { %v3053_v34 = vadd.f32 %v3052_v32, %v3051_v29  ;;  %v3054_v35 = vpop.f32.mrb[22].mxu0  ;;  %v3163_v37 = vpop.f32.mrb[20].mxu1 }
 0x124   : > { %v3055_v38 = vpop.f32.mrb[23].mxu0  ;;  %v3164_v41 = vpop.f32.mrb[21].mxu1 }
 0x125   : > { %v1759_v39 = vadd.f32 %v3053_v34, %v4279_v55  ;;  %v3056_v40 = vadd.f32 %v3055_v38, %v3054_v35  ;;  %v3165_v42 = vadd.f32 %v3164_v41, %v3163_v37  ;;  %v3166_v43 = vpop.f32.mrb[22].mxu1  ;;  %v3893_v34 = vld [vmem:[%s4035_s5 + $0x218] ss:$36 sps:$4 sm:$0xff]   ;;  %v3894_v37 = vld [vmem:[%s4035_s5 + $0x260] ss:$36 sps:$4 sm:$0xff]  }
 0x126   : > { %3550 = vmatmul.mubr.bf16.vlgmr.msra.gmra.mrb[128].mxu0 %v3887_v33  ;;  %v3167_v45 = vpop.f32.mrb[23].mxu1 }
 0x127   : > { %v1762_v44 = vadd.f32 %v3056_v40, %v4279_v55  ;;  %3553 = vmatprep.mubr.bf16.mxu0 %v3888_v36  ;;  %v4334_v46 = vadd.f32 %v3165_v42, %v1759_v39  ;;  %v3168_v47 = vadd.f32 %v3167_v45, %v3166_v43 }
 0x129   : > { %v3057_v49 = vpop.f32.mrb[24].mxu0  ;;  %v4336_v50 = vadd.f32 %v3168_v47, %v1762_v44 }
 0x12a   : > { %v3058_v52 = vpop.f32.mrb[25].mxu0 }
 0x12b   : > { %v3059_v54 = vadd.f32 %v3058_v52, %v3057_v49  ;;  %v3060_v56 = vpop.f32.mrb[26].mxu0  ;;  %v3169_v58 = vpop.f32.mrb[24].mxu1 }
 0x12c   : > { %v3061_v59 = vpop.f32.mrb[27].mxu0  ;;  %v3170_v62 = vpop.f32.mrb[25].mxu1 }
 0x12d   : > { %v1767_v60 = vadd.f32 %v3059_v54, %v4279_v55  ;;  %v3062_v61 = vadd.f32 %v3061_v59, %v3060_v56  ;;  %v3171_v63 = vadd.f32 %v3170_v62, %v3169_v58  ;;  %v3172_v0 = vpop.f32.mrb[26].mxu1 }
 0x12e   : > { %3554 = vmatmul.mubr.bf16.gmra.mrb[132].mxu0 %v3889_v53  ;;  %v3173_v2 = vpop.f32.mrb[27].mxu1 }
 0x12f   : > { %v1770_v1 = vadd.f32 %v3062_v61, %v4279_v55  ;;  %3557 = vmatprep.mubr.bf16.mxu0 %v3890_v57  ;;  %v4342_v3 = vadd.f32 %v3171_v63, %v1767_v60  ;;  %v3174_v4 = vadd.f32 %v3173_v2, %v3172_v0  ;;  %v3895_v57 = vld [vmem:[%s4035_s5 + $0x2a8] ss:$36 sps:$4 sm:$0xff]   ;;  %v3896_v60 = vld [vmem:[%s4035_s5 + $0x2f0] ss:$36 sps:$4 sm:$0xff]  }
 0x131   : > { %v3063_v6 = vpop.f32.mrb[28].mxu0  ;;  %v4344_v7 = vadd.f32 %v3174_v4, %v1770_v1 }
 0x132   : > { %v3064_v10 = vpop.f32.mrb[29].mxu0 }
 0x133   : > { %v3065_v13 = vadd.f32 %v3064_v10, %v3063_v6  ;;  %v3066_v14 = vpop.f32.mrb[30].mxu0  ;;  %v3175_v16 = vpop.f32.mrb[28].mxu1 }
 0x134   : > { %v3067_v17 = vpop.f32.mrb[31].mxu0  ;;  %v3176_v20 = vpop.f32.mrb[29].mxu1 }
 0x135   : > { %v1775_v18 = vadd.f32 %v3065_v13, %v4279_v55  ;;  %v3068_v19 = vadd.f32 %v3067_v17, %v3066_v14  ;;  %v3177_v21 = vadd.f32 %v3176_v20, %v3175_v16  ;;  %v3178_v22 = vpop.f32.mrb[30].mxu1  ;;  %v3897_v17 = vld [vmem:[%s4035_s5 + $0x338] ss:$36 sps:$4 sm:$0xff]   ;;  %v3898_v20 = vld [vmem:[%s4035_s5 + $0x380] ss:$36 sps:$4 sm:$0xff]  }
 0x136   : > { %3558 = vmatmul.mubr.bf16.gmra.mrb[136].mxu0 %v3891_v12  ;;  %v3179_v24 = vpop.f32.mrb[31].mxu1 }
 0x137   : > { %v1778_v23 = vadd.f32 %v3068_v19, %v4279_v55  ;;  %3561 = vmatprep.mubr.bf16.mxu0 %v3892_v15  ;;  %v4350_v25 = vadd.f32 %v3177_v21, %v1775_v18  ;;  %v3180_v27 = vadd.f32 %v3179_v24, %v3178_v22 }
 0x139   : > { %v3069_v29 = vpop.f32.mrb[32].mxu0  ;;  %v4352_v32 = vadd.f32 %v3180_v27, %v1778_v23 }
 0x13a   : > { %v3070_v33 = vpop.f32.mrb[33].mxu0 }
 0x13b   : > { %v3071_v35 = vadd.f32 %v3070_v33, %v3069_v29  ;;  %v3072_v36 = vpop.f32.mrb[34].mxu0  ;;  %v3181_v38 = vpop.f32.mrb[32].mxu1 }
 0x13c   : > { %v3073_v39 = vpop.f32.mrb[35].mxu0  ;;  %v3182_v42 = vpop.f32.mrb[33].mxu1 }
 0x13d   : > { %v1783_v40 = vadd.f32 %v3071_v35, %v4279_v55  ;;  %v3074_v41 = vadd.f32 %v3073_v39, %v3072_v36  ;;  %v3183_v43 = vadd.f32 %v3182_v42, %v3181_v38  ;;  %v3184_v44 = vpop.f32.mrb[34].mxu1 }
 0x13e   : > { %3562 = vmatmul.mubr.bf16.gmra.mrb[140].mxu0 %v3893_v34  ;;  %v3185_v47 = vpop.f32.mrb[35].mxu1 }
 0x13f   : > { %v1786_v45 = vadd.f32 %v3074_v41, %v4279_v55  ;;  %3565 = vmatprep.mubr.bf16.mxu0 %v3894_v37  ;;  %v4358_v49 = vadd.f32 %v3183_v43, %v1783_v40  ;;  %v3186_v52 = vadd.f32 %v3185_v47, %v3184_v44  ;;  %v3899_v41 = vld [vmem:[%s4035_s5 + $0x3c8] ss:$36 sps:$4 sm:$0xff]   ;;  %v3900_v44 = vld [vmem:[%s4035_s5 + $0x410] ss:$36 sps:$4 sm:$0xff]  }
 0x141   : > { %v3075_v53 = vpop.f32.mrb[36].mxu0  ;;  %v4360_v54 = vadd.f32 %v3186_v52, %v1786_v45 }
 0x142   : > { %v3076_v56 = vpop.f32.mrb[37].mxu0 }
 0x143   : > { %v3077_v58 = vadd.f32 %v3076_v56, %v3075_v53  ;;  %v3078_v59 = vpop.f32.mrb[38].mxu0  ;;  %v3187_v61 = vpop.f32.mrb[36].mxu1 }
 0x144   : > { %v3079_v62 = vpop.f32.mrb[39].mxu0  ;;  %v3188_v1 = vpop.f32.mrb[37].mxu1 }
 0x145   : > { %v1791_v63 = vadd.f32 %v3077_v58, %v4279_v55  ;;  %v3080_v0 = vadd.f32 %v3079_v62, %v3078_v59  ;;  %v3189_v2 = vadd.f32 %v3188_v1, %v3187_v61  ;;  %v3190_v4 = vpop.f32.mrb[38].mxu1 }
 0x146   : > { %3566 = vmatmul.mubr.bf16.gmra.mrb[144].mxu0 %v3895_v57  ;;  %v3191_v10 = vpop.f32.mrb[39].mxu1 }
 0x147   : > { %v1794_v6 = vadd.f32 %v3080_v0, %v4279_v55  ;;  %3569 = vmatprep.mubr.bf16.mxu0 %v3896_v60  ;;  %v4366_v12 = vadd.f32 %v3189_v2, %v1791_v63  ;;  %v3192_v13 = vadd.f32 %v3191_v10, %v3190_v4  ;;  %v3901_v2 = vld [vmem:[%s4035_s5 + $0x458] ss:$36 sps:$4 sm:$0xff]  }
 0x149   : > { %v3081_v14 = vpop.f32.mrb[40].mxu0  ;;  %v4368_v15 = vadd.f32 %v3192_v13, %v1794_v6 }
 0x14a   : > { %v3082_v16 = vpop.f32.mrb[41].mxu0 }
 0x14b   : > { %v3083_v18 = vadd.f32 %v3082_v16, %v3081_v14  ;;  %v3084_v19 = vpop.f32.mrb[42].mxu0  ;;  %v3193_v21 = vpop.f32.mrb[40].mxu1 }
 0x14c   : > { %v3085_v22 = vpop.f32.mrb[43].mxu0  ;;  %v3194_v27 = vpop.f32.mrb[41].mxu1 }
 0x14d   : > { %v1799_v23 = vadd.f32 %v3083_v18, %v4279_v55  ;;  %v3086_v24 = vadd.f32 %v3085_v22, %v3084_v19  ;;  %v3195_v29 = vadd.f32 %v3194_v27, %v3193_v21  ;;  %v3196_v33 = vpop.f32.mrb[42].mxu1 }
 0x14e   : > { %3570 = vmatmul.mubr.bf16.gmra.mrb[148].mxu0 %v3897_v17  ;;  %v3197_v35 = vpop.f32.mrb[43].mxu1 }
 0x14f   : > { %v1802_v34 = vadd.f32 %v3086_v24, %v4279_v55  ;;  %3573 = vmatprep.mubr.bf16.mxu0 %v3898_v20  ;;  %v4374_v36 = vadd.f32 %v3195_v29, %v1799_v23  ;;  %v3198_v37 = vadd.f32 %v3197_v35, %v3196_v33 }
 0x151   : > { %v3087_v38 = vpop.f32.mrb[44].mxu0  ;;  %v4376_v39 = vadd.f32 %v3198_v37, %v1802_v34 }
 0x152   : > { %v3088_v40 = vpop.f32.mrb[45].mxu0 }
 0x153   : > { %v3089_v42 = vadd.f32 %v3088_v40, %v3087_v38  ;;  %v3090_v43 = vpop.f32.mrb[46].mxu0  ;;  %v3199_v45 = vpop.f32.mrb[44].mxu1 }
 0x154   : > { %v3091_v47 = vpop.f32.mrb[47].mxu0  ;;  %v3200_v56 = vpop.f32.mrb[45].mxu1 }
 0x155   : > { %v1807_v52 = vadd.f32 %v3089_v42, %v4279_v55  ;;  %v3092_v53 = vadd.f32 %v3091_v47, %v3090_v43  ;;  %v3201_v57 = vadd.f32 %v3200_v56, %v3199_v45  ;;  %v3202_v58 = vpop.f32.mrb[46].mxu1 }
 0x156   : > { %3574 = vmatmul.mubr.bf16.gmra.mrb[152].mxu0 %v3899_v41  ;;  %v3203_v60 = vpop.f32.mrb[47].mxu1 }
 0x157   : > { %v1810_v59 = vadd.f32 %v3092_v53, %v4279_v55  ;;  %3577 = vmatprep.mubr.bf16.mxu0 %v3900_v44  ;;  %v4382_v61 = vadd.f32 %v3201_v57, %v1807_v52  ;;  %v3204_v62 = vadd.f32 %v3203_v60, %v3202_v58 }
 0x159   : > { %v3093_v63 = vpop.f32.mrb[48].mxu0  ;;  %v4384_v0 = vadd.f32 %v3204_v62, %v1810_v59 }
 0x15a   : > { %v3094_v1 = vpop.f32.mrb[49].mxu0 }
 0x15b   : > { %v3095_v4 = vadd.f32 %v3094_v1, %v3093_v63  ;;  %v3096_v6 = vpop.f32.mrb[50].mxu0  ;;  %v3205_v10 = vpop.f32.mrb[48].mxu1 }
 0x15c   : > { %v3097_v13 = vpop.f32.mrb[51].mxu0  ;;  %v3206_v17 = vpop.f32.mrb[49].mxu1 }
 0x15d   : > { %v1815_v14 = vadd.f32 %v3095_v4, %v4279_v55  ;;  %v3098_v16 = vadd.f32 %v3097_v13, %v3096_v6  ;;  %v3207_v18 = vadd.f32 %v3206_v17, %v3205_v10  ;;  %v3208_v19 = vpop.f32.mrb[50].mxu1 }
 0x15e   : > { %3578 = vmatmul.mubr.bf16.gmra.mrb[156].mxu0 %v3901_v2  ;;  %v3209_v21 = vpop.f32.mrb[51].mxu1 }
 0x15f   : > { %v1818_v20 = vadd.f32 %v3098_v16, %v4279_v55  ;;  %v4389_v22 = vadd.f32 %v3207_v18, %v1815_v14  ;;  %v3210_v23 = vadd.f32 %v3209_v21, %v3208_v19 }
 0x161   : > { %v3099_v24 = vpop.f32.mrb[52].mxu0  ;;  %v4391_v27 = vadd.f32 %v3210_v23, %v1818_v20 }
 0x162   : > { %v3100_v29 = vpop.f32.mrb[53].mxu0 }
 0x163   : > { %v3101_v33 = vadd.f32 %v3100_v29, %v3099_v24  ;;  %v3102_v34 = vpop.f32.mrb[54].mxu0  ;;  %v3211_v35 = vpop.f32.mrb[52].mxu1 }
 0x164   : > { %v3103_v37 = vpop.f32.mrb[55].mxu0  ;;  %v3212_v41 = vpop.f32.mrb[53].mxu1 }
 0x165   : > { %v1823_v38 = vadd.f32 %v3101_v33, %v4279_v55  ;;  %v3104_v40 = vadd.f32 %v3103_v37, %v3102_v34  ;;  %v3213_v42 = vadd.f32 %v3212_v41, %v3211_v35  ;;  %v3214_v43 = vpop.f32.mrb[54].mxu1 }
 0x166   : > { %v3215_v45 = vpop.f32.mrb[55].mxu1 }
 0x167   : > { %v1826_v44 = vadd.f32 %v3104_v40, %v4279_v55  ;;  %v4395_v47 = vadd.f32 %v3213_v42, %v1823_v38  ;;  %v3216_v52 = vadd.f32 %v3215_v45, %v3214_v43 }
 0x169   : > { %v3105_v53 = vpop.f32.mrb[56].mxu0  ;;  %v4397_v56 = vadd.f32 %v3216_v52, %v1826_v44 }
 0x16a   : > { %v3106_v57 = vpop.f32.mrb[57].mxu0 }
 0x16b   : > { %v3107_v58 = vadd.f32 %v3106_v57, %v3105_v53  ;;  %v3108_v59 = vpop.f32.mrb[58].mxu0  ;;  %v3217_v60 = vpop.f32.mrb[56].mxu1 }
 0x16c   : > { %v3109_v62 = vpop.f32.mrb[59].mxu0  ;;  %v3218_v2 = vpop.f32.mrb[57].mxu1 }
 0x16d   : > { %v1831_v63 = vadd.f32 %v3107_v58, %v4279_v55  ;;  %v3110_v1 = vadd.f32 %v3109_v62, %v3108_v59  ;;  %v3219_v4 = vadd.f32 %v3218_v2, %v3217_v60  ;;  %v3220_v6 = vpop.f32.mrb[58].mxu1 }
 0x16e   : > { %v3221_v13 = vpop.f32.mrb[59].mxu1 }
 0x16f   : > { %v1834_v10 = vadd.f32 %v3110_v1, %v4279_v55  ;;  %v4401_v14 = vadd.f32 %v3219_v4, %v1831_v63  ;;  %v3222_v16 = vadd.f32 %v3221_v13, %v3220_v6 }
 0x171   : > { %v3111_v17 = vpop.f32.mrb[60].mxu0  ;;  %v4403_v18 = vadd.f32 %v3222_v16, %v1834_v10 }
 0x172   : > { %v3112_v19 = vpop.f32.mrb[61].mxu0 }
 0x173   : > { %v3113_v20 = vadd.f32 %v3112_v19, %v3111_v17  ;;  %v3114_v21 = vpop.f32.mrb[62].mxu0  ;;  %v3223_v23 = vpop.f32.mrb[60].mxu1 }
 0x174   : > { %v3115_v24 = vpop.f32.mrb[63].mxu0  ;;  %v3224_v34 = vpop.f32.mrb[61].mxu1 }
 0x175   : > { %v1839_v29 = vadd.f32 %v3113_v20, %v4279_v55  ;;  %v3116_v33 = vadd.f32 %v3115_v24, %v3114_v21  ;;  %v3225_v35 = vadd.f32 %v3224_v34, %v3223_v23  ;;  %v3226_v37 = vpop.f32.mrb[62].mxu1 }
 0x176   : > { %v3227_v40 = vpop.f32.mrb[63].mxu1 }
 0x177   : > { %v1842_v38 = vadd.f32 %v3116_v33, %v4279_v55  ;;  %v4407_v41 = vadd.f32 %v3225_v35, %v1839_v29  ;;  %v3228_v42 = vadd.f32 %v3227_v40, %v3226_v37 }
 0x179   : > { %v3245_v43 = vpop.f32.mrb[64].mxu0  ;;  %v4409_v44 = vadd.f32 %v3228_v42, %v1842_v38 }
 0x17a   : > { %v3246_v45 = vpop.f32.mrb[65].mxu0 }
 0x17b   : > { %v3247_v52 = vadd.f32 %v3246_v45, %v3245_v43  ;;  %v3248_v53 = vpop.f32.mrb[66].mxu0  ;;  %v3357_v57 = vpop.f32.mrb[64].mxu1 }
 0x17c   : > { %v3249_v58 = vpop.f32.mrb[67].mxu0  ;;  %v3358_v62 = vpop.f32.mrb[65].mxu1 }
 0x17d   : > { %v2041_v59 = vadd.f32 %v3247_v52, %v4287_v8  ;;  %v3250_v60 = vadd.f32 %v3249_v58, %v3248_v53  ;;  %v3359_v63 = vadd.f32 %v3358_v62, %v3357_v57  ;;  %v3360_v1 = vpop.f32.mrb[66].mxu1 }
 0x17e   : > { %v3361_v2 = vpop.f32.mrb[67].mxu1 }
 0x17f   : > { %v2044_v55 = vadd.f32 %v3250_v60, %v4289_v11  ;;  %v3362_v4 = vadd.f32 %v3361_v2, %v3360_v1  ;;  %v4413_v6 = vadd.f32 %v3359_v63, %v2041_v59 }
 0x181   : > { %v3251_v10 = vpop.f32.mrb[68].mxu0  ;;  %v4415_v16 = vadd.f32 %v3362_v4, %v2044_v55 }
 0x182   : > { %v3252_v13 = vpop.f32.mrb[69].mxu0 }
 0x183   : > { %v3253_v17 = vadd.f32 %v3252_v13, %v3251_v10  ;;  %v3254_v19 = vpop.f32.mrb[70].mxu0  ;;  %v3363_v20 = vpop.f32.mrb[68].mxu1 }
 0x184   : > { %v3255_v21 = vpop.f32.mrb[71].mxu0  ;;  %v3364_v24 = vpop.f32.mrb[69].mxu1 }
 0x185   : > { %v2049_v8 = vadd.f32 %v3253_v17, %v4297_v28  ;;  %v3256_v23 = vadd.f32 %v3255_v21, %v3254_v19  ;;  %v3365_v29 = vadd.f32 %v3364_v24, %v3363_v20  ;;  %v3366_v33 = vpop.f32.mrb[70].mxu1 }
 0x186   : > { %v3367_v34 = vpop.f32.mrb[71].mxu1 }
 0x187   : > { %v2052_v11 = vadd.f32 %v3256_v23, %v4299_v31  ;;  %v3368_v35 = vadd.f32 %v3367_v34, %v3366_v33  ;;  %v4419_v37 = vadd.f32 %v3365_v29, %v2049_v8 }
 0x189   : > { %v3257_v38 = vpop.f32.mrb[72].mxu0  ;;  %v4421_v42 = vadd.f32 %v3368_v35, %v2052_v11 }
 0x18a   : > { %v3258_v40 = vpop.f32.mrb[73].mxu0 }
 0x18b   : > { %v3259_v43 = vadd.f32 %v3258_v40, %v3257_v38  ;;  %v3260_v45 = vpop.f32.mrb[74].mxu0  ;;  %v3369_v52 = vpop.f32.mrb[72].mxu1 }
 0x18c   : > { %v3261_v53 = vpop.f32.mrb[75].mxu0  ;;  %v3370_v58 = vpop.f32.mrb[73].mxu1 }
 0x18d   : > { %v2057_v28 = vadd.f32 %v3259_v43, %v4307_v48  ;;  %v3262_v57 = vadd.f32 %v3261_v53, %v3260_v45  ;;  %v3371_v59 = vadd.f32 %v3370_v58, %v3369_v52  ;;  %v3372_v60 = vpop.f32.mrb[74].mxu1 }
 0x18e   : > { %v3373_v62 = vpop.f32.mrb[75].mxu1 }
 0x18f   : > { %v2060_v31 = vadd.f32 %v3262_v57, %v4309_v51  ;;  %v3374_v63 = vadd.f32 %v3373_v62, %v3372_v60  ;;  %v4425_v1 = vadd.f32 %v3371_v59, %v2057_v28 }
 0x191   : > { %v3263_v55 = vpop.f32.mrb[76].mxu0  ;;  %v4427_v4 = vadd.f32 %v3374_v63, %v2060_v31 }
 0x192   : > { %v3264_v2 = vpop.f32.mrb[77].mxu0 }
 0x193   : > { %v3265_v10 = vadd.f32 %v3264_v2, %v3263_v55  ;;  %v3266_v13 = vpop.f32.mrb[78].mxu0  ;;  %v3375_v17 = vpop.f32.mrb[76].mxu1 }
 0x194   : > { %v3267_v19 = vpop.f32.mrb[79].mxu0  ;;  %v3376_v21 = vpop.f32.mrb[77].mxu1 }
 0x195   : > { %v2065_v48 = vadd.f32 %v3265_v10, %v4317_v5  ;;  %v3268_v20 = vadd.f32 %v3267_v19, %v3266_v13  ;;  %v3377_v8 = vadd.f32 %v3376_v21, %v3375_v17  ;;  %v3378_v23 = vpop.f32.mrb[78].mxu1 }
 0x196   : > { %v3379_v24 = vpop.f32.mrb[79].mxu1 }
 0x197   : > { %v2068_v51 = vadd.f32 %v3268_v20, %v4319_v9  ;;  %v3380_v29 = vadd.f32 %v3379_v24, %v3378_v23  ;;  %v4431_v33 = vadd.f32 %v3377_v8, %v2065_v48 }
 0x199   : > { %v3269_v11 = vpop.f32.mrb[80].mxu0  ;;  %v4433_v35 = vadd.f32 %v3380_v29, %v2068_v51 }
 0x19a   : > { %v3270_v34 = vpop.f32.mrb[81].mxu0 }
 0x19b   : > { %v3271_v38 = vadd.f32 %v3270_v34, %v3269_v11  ;;  %v3272_v40 = vpop.f32.mrb[82].mxu0  ;;  %v3381_v43 = vpop.f32.mrb[80].mxu1 }
 0x19c   : > { %v3273_v45 = vpop.f32.mrb[83].mxu0  ;;  %v3382_v53 = vpop.f32.mrb[81].mxu1 }
 0x19d   : > { %v2073_v5 = vadd.f32 %v3271_v38, %v4326_v26  ;;  %v3274_v52 = vadd.f32 %v3273_v45, %v3272_v40  ;;  %v3383_v28 = vadd.f32 %v3382_v53, %v3381_v43  ;;  %v3384_v57 = vpop.f32.mrb[82].mxu1 }
 0x19e   : > { %v3385_v58 = vpop.f32.mrb[83].mxu1 }
 0x19f   : > { %v2076_v9 = vadd.f32 %v3274_v52, %v4328_v30  ;;  %v3386_v59 = vadd.f32 %v3385_v58, %v3384_v57  ;;  %v4437_v60 = vadd.f32 %v3383_v28, %v2073_v5 }
 0x1a1   : > { %v3275_v31 = vpop.f32.mrb[84].mxu0  ;;  %v4439_v63 = vadd.f32 %v3386_v59, %v2076_v9 }
 0x1a2   : > { %v3276_v62 = vpop.f32.mrb[85].mxu0 }
 0x1a3   : > { %v3277_v55 = vadd.f32 %v3276_v62, %v3275_v31  ;;  %v3278_v2 = vpop.f32.mrb[86].mxu0  ;;  %v3387_v10 = vpop.f32.mrb[84].mxu1 }
 0x1a4   : > { %v3279_v13 = vpop.f32.mrb[87].mxu0  ;;  %v3388_v19 = vpop.f32.mrb[85].mxu1 }
 0x1a5   : > { %v2081_v26 = vadd.f32 %v3277_v55, %v4334_v46  ;;  %v3280_v17 = vadd.f32 %v3279_v13, %v3278_v2  ;;  %v3389_v48 = vadd.f32 %v3388_v19, %v3387_v10  ;;  %v3390_v20 = vpop.f32.mrb[86].mxu1 }
 0x1a6   : > { %v3391_v21 = vpop.f32.mrb[87].mxu1 }
 0x1a7   : > { %v2084_v30 = vadd.f32 %v3280_v17, %v4336_v50  ;;  %v3392_v8 = vadd.f32 %v3391_v21, %v3390_v20  ;;  %v4443_v23 = vadd.f32 %v3389_v48, %v2081_v26 }
 0x1a9   : > { %v3281_v51 = vpop.f32.mrb[88].mxu0  ;;  %v4445_v29 = vadd.f32 %v3392_v8, %v2084_v30 }
 0x1aa   : > { %v3282_v24 = vpop.f32.mrb[89].mxu0 }
 0x1ab   : > { %v3283_v11 = vadd.f32 %v3282_v24, %v3281_v51  ;;  %v3284_v34 = vpop.f32.mrb[90].mxu0  ;;  %v3393_v38 = vpop.f32.mrb[88].mxu1 }
 0x1ac   : > { %v3285_v40 = vpop.f32.mrb[91].mxu0  ;;  %v3394_v45 = vpop.f32.mrb[89].mxu1 }
 0x1ad   : > { %v2089_v46 = vadd.f32 %v3283_v11, %v4342_v3  ;;  %v3286_v43 = vadd.f32 %v3285_v40, %v3284_v34  ;;  %v3395_v5 = vadd.f32 %v3394_v45, %v3393_v38  ;;  %v3396_v52 = vpop.f32.mrb[90].mxu1 }
 0x1ae   : > { %v3397_v53 = vpop.f32.mrb[91].mxu1 }
 0x1af   : > { %v2092_v50 = vadd.f32 %v3286_v43, %v4344_v7  ;;  %v3398_v28 = vadd.f32 %v3397_v53, %v3396_v52  ;;  %v4449_v57 = vadd.f32 %v3395_v5, %v2089_v46 }
 0x1b1   : > { %v3287_v9 = vpop.f32.mrb[92].mxu0  ;;  %v4451_v59 = vadd.f32 %v3398_v28, %v2092_v50  ;;  %v2522_v50 = vld [vmem:[%s4622_s3 + $0x8] sm:$0xff] }
 0x1b2   : > { %v3288_v58 = vpop.f32.mrb[93].mxu0  ;;  %2601 = vmatprep.mubr.f32.mxu1 %v2522_v50 }
 0x1b3   : > { %v3289_v31 = vadd.f32 %v3288_v58, %v3287_v9  ;;  %v3290_v62 = vpop.f32.mrb[94].mxu0  ;;  %v3399_v55 = vpop.f32.mrb[92].mxu1 }
 0x1b4   : > { %v3291_v2 = vpop.f32.mrb[95].mxu0  ;;  %v3400_v13 = vpop.f32.mrb[93].mxu1 }
 0x1b5   : > { %v2097_v3 = vadd.f32 %v3289_v31, %v4350_v25  ;;  %v3292_v10 = vadd.f32 %v3291_v2, %v3290_v62  ;;  %v3401_v26 = vadd.f32 %v3400_v13, %v3399_v55  ;;  %v3402_v17 = vpop.f32.mrb[94].mxu1 }
 0x1b6   : > { %v3403_v19 = vpop.f32.mrb[95].mxu1 }
 0x1b7   : > { %v2100_v7 = vadd.f32 %v3292_v10, %v4352_v32  ;;  %v3404_v48 = vadd.f32 %v3403_v19, %v3402_v17  ;;  %v4455_v20 = vadd.f32 %v3401_v26, %v2097_v3 }
 0x1b9   : > { %v3293_v30 = vpop.f32.mrb[96].mxu0  ;;  %v4457_v8 = vadd.f32 %v3404_v48, %v2100_v7 }
 0x1ba   : > { %v3294_v21 = vpop.f32.mrb[97].mxu0 }
 0x1bb   : > { %v3295_v51 = vadd.f32 %v3294_v21, %v3293_v30  ;;  %v3296_v24 = vpop.f32.mrb[98].mxu0  ;;  %v3405_v11 = vpop.f32.mrb[96].mxu1 }
 0x1bc   : > { %v3297_v34 = vpop.f32.mrb[99].mxu0  ;;  %v3406_v40 = vpop.f32.mrb[97].mxu1 }
 0x1bd   : > { %v2105_v25 = vadd.f32 %v3295_v51, %v4358_v49  ;;  %v3298_v38 = vadd.f32 %v3297_v34, %v3296_v24  ;;  %v3407_v46 = vadd.f32 %v3406_v40, %v3405_v11  ;;  %v3408_v43 = vpop.f32.mrb[98].mxu1 }
 0x1be   : > { %v3409_v45 = vpop.f32.mrb[99].mxu1 }
 0x1bf   : > { %v2108_v32 = vadd.f32 %v3298_v38, %v4360_v54  ;;  %v3410_v5 = vadd.f32 %v3409_v45, %v3408_v43  ;;  %v4461_v52 = vadd.f32 %v3407_v46, %v2105_v25 }
 0x1c1   : > { %v3299_v53 = vpop.f32.mrb[100].mxu0  ;;  %v4466_v9 = vadd.f32 %v3410_v5, %v2108_v32 }
 0x1c2   : > { %v3300_v28 = vpop.f32.mrb[101].mxu0 }
 0x1c3   : > { %v3301_v49 = vadd.f32 %v3300_v28, %v3299_v53  ;;  %v3302_v58 = vpop.f32.mrb[102].mxu0  ;;  %v3411_v31 = vpop.f32.mrb[100].mxu1 }
 0x1c4   : > { %v3303_v62 = vpop.f32.mrb[103].mxu0  ;;  %v3412_v2 = vpop.f32.mrb[101].mxu1 }
 0x1c5   : > { %v2113_v55 = vadd.f32 %v3301_v49, %v4366_v12  ;;  %v3304_v54 = vadd.f32 %v3303_v62, %v3302_v58  ;;  %v3413_v3 = vadd.f32 %v3412_v2, %v3411_v31  ;;  %v3414_v10 = vpop.f32.mrb[102].mxu1 }
 0x1c6   : > { %v3415_v26 = vpop.f32.mrb[103].mxu1 }
 0x1c7   : > { %v2116_v13 = vadd.f32 %v3304_v54, %v4368_v15  ;;  %v3416_v17 = vadd.f32 %v3415_v26, %v3414_v10  ;;  %v4470_v7 = vadd.f32 %v3413_v3, %v2113_v55 }
 0x1c9   : > { %v3305_v19 = vpop.f32.mrb[104].mxu0  ;;  %v4472_v30 = vadd.f32 %v3416_v17, %v2116_v13 }
 0x1ca   : > { %v3306_v48 = vpop.f32.mrb[105].mxu0 }
 0x1cb   : > { %v3307_v21 = vadd.f32 %v3306_v48, %v3305_v19  ;;  %v3308_v51 = vpop.f32.mrb[106].mxu0  ;;  %v3417_v24 = vpop.f32.mrb[104].mxu1 }
 0x1cc   : > { %v3309_v11 = vpop.f32.mrb[107].mxu0  ;;  %v3418_v25 = vpop.f32.mrb[105].mxu1 }
 0x1cd   : > { %v2121_v12 = vadd.f32 %v3307_v21, %v4374_v36  ;;  %v3310_v34 = vadd.f32 %v3309_v11, %v3308_v51  ;;  %v3419_v38 = vadd.f32 %v3418_v25, %v3417_v24  ;;  %v3420_v40 = vpop.f32.mrb[106].mxu1 }
 0x1ce   : > { %v3421_v46 = vpop.f32.mrb[107].mxu1 }
 0x1cf   : > { %v2124_v15 = vadd.f32 %v3310_v34, %v4376_v39  ;;  %v3422_v43 = vadd.f32 %v3421_v46, %v3420_v40  ;;  %v4476_v32 = vadd.f32 %v3419_v38, %v2121_v12 }
 0x1d1   : > { %v3311_v45 = vpop.f32.mrb[108].mxu0  ;;  %v4478_v50 = vadd.f32 %v3422_v43, %v2124_v15 }
 0x1d2   : > { %v3312_v5 = vpop.f32.mrb[109].mxu0 }
 0x1d3   : > { %v3313_v53 = vadd.f32 %v3312_v5, %v3311_v45  ;;  %v3314_v28 = vpop.f32.mrb[110].mxu0  ;;  %v3423_v49 = vpop.f32.mrb[108].mxu1 }
 0x1d4   : > { %v3315_v58 = vpop.f32.mrb[111].mxu0  ;;  %v3424_v62 = vpop.f32.mrb[109].mxu1 }
 0x1d5   : > { %v2129_v36 = vadd.f32 %v3313_v53, %v4382_v61  ;;  %v3316_v31 = vadd.f32 %v3315_v58, %v3314_v28  ;;  %v3425_v55 = vadd.f32 %v3424_v62, %v3423_v49  ;;  %v3426_v54 = vpop.f32.mrb[110].mxu1 }
 0x1d6   : > { %v3427_v2 = vpop.f32.mrb[111].mxu1 }
 0x1d7   : > { %v2132_v39 = vadd.f32 %v3316_v31, %v4384_v0  ;;  %v3428_v3 = vadd.f32 %v3427_v2, %v3426_v54  ;;  %v4482_v10 = vadd.f32 %v3425_v55, %v2129_v36 }
 0x1d9   : > { %v3317_v13 = vpop.f32.mrb[112].mxu0  ;;  %v4484_v17 = vadd.f32 %v3428_v3, %v2132_v39 }
 0x1da   : > { %v3318_v26 = vpop.f32.mrb[113].mxu0 }
 0x1db   : > { %v3319_v19 = vadd.f32 %v3318_v26, %v3317_v13  ;;  %v3320_v48 = vpop.f32.mrb[114].mxu0  ;;  %v3429_v21 = vpop.f32.mrb[112].mxu1 }
 0x1dc   : > { %v3321_v51 = vpop.f32.mrb[115].mxu0  ;;  %v3430_v11 = vpop.f32.mrb[113].mxu1 }
 0x1dd   : > { %v2137_v61 = vadd.f32 %v3319_v19, %v4389_v22  ;;  %v3322_v24 = vadd.f32 %v3321_v51, %v3320_v48  ;;  %v3431_v12 = vadd.f32 %v3430_v11, %v3429_v21  ;;  %v3432_v34 = vpop.f32.mrb[114].mxu1 }
 0x1de   : > { %v3433_v25 = vpop.f32.mrb[115].mxu1 }
 0x1df   : > { %v2140_v0 = vadd.f32 %v3322_v24, %v4391_v27  ;;  %v3434_v38 = vadd.f32 %v3433_v25, %v3432_v34  ;;  %v4488_v40 = vadd.f32 %v3431_v12, %v2137_v61 }
 0x1e1   : > { %v3323_v15 = vpop.f32.mrb[116].mxu0  ;;  %v4490_v43 = vadd.f32 %v3434_v38, %v2140_v0 }
 0x1e2   : > { %v3324_v46 = vpop.f32.mrb[117].mxu0 }
 0x1e3   : > { %v3325_v45 = vadd.f32 %v3324_v46, %v3323_v15  ;;  %v3326_v5 = vpop.f32.mrb[118].mxu0  ;;  %v3435_v53 = vpop.f32.mrb[116].mxu1 }
 0x1e4   : > { %v3327_v28 = vpop.f32.mrb[119].mxu0  ;;  %v3436_v58 = vpop.f32.mrb[117].mxu1 }
 0x1e5   : > { %v2145_v22 = vadd.f32 %v3325_v45, %v4395_v47  ;;  %v3328_v49 = vadd.f32 %v3327_v28, %v3326_v5  ;;  %v3437_v36 = vadd.f32 %v3436_v58, %v3435_v53  ;;  %v3438_v31 = vpop.f32.mrb[118].mxu1 }
 0x1e6   : > { %v3439_v62 = vpop.f32.mrb[119].mxu1 }
 0x1e7   : > { %v2148_v27 = vadd.f32 %v3328_v49, %v4397_v56  ;;  %v3440_v55 = vadd.f32 %v3439_v62, %v3438_v31  ;;  %v4494_v54 = vadd.f32 %v3437_v36, %v2145_v22 }
 0x1e9   : > { %v3329_v39 = vpop.f32.mrb[120].mxu0  ;;  %v4496_v3 = vadd.f32 %v3440_v55, %v2148_v27 }
 0x1ea   : > { %v3330_v2 = vpop.f32.mrb[121].mxu0 }
 0x1eb   : > { %v3331_v13 = vadd.f32 %v3330_v2, %v3329_v39  ;;  %v3332_v26 = vpop.f32.mrb[122].mxu0  ;;  %v3441_v19 = vpop.f32.mrb[120].mxu1 }
 0x1ec   : > { %v3333_v48 = vpop.f32.mrb[123].mxu0  ;;  %v3442_v51 = vpop.f32.mrb[121].mxu1 }
 0x1ed   : > { %v2153_v47 = vadd.f32 %v3331_v13, %v4401_v14  ;;  %v3334_v21 = vadd.f32 %v3333_v48, %v3332_v26  ;;  %v3443_v61 = vadd.f32 %v3442_v51, %v3441_v19  ;;  %v3444_v24 = vpop.f32.mrb[122].mxu1 }
 0x1ee   : > { %v3445_v11 = vpop.f32.mrb[123].mxu1 }
 0x1ef   : > { %v2156_v56 = vadd.f32 %v3334_v21, %v4403_v18  ;;  %v3446_v12 = vadd.f32 %v3445_v11, %v3444_v24  ;;  %v4500_v34 = vadd.f32 %v3443_v61, %v2153_v47 }
 0x1f1   : > { %v3335_v0 = vpop.f32.mrb[124].mxu0  ;;  %v4502_v38 = vadd.f32 %v3446_v12, %v2156_v56 }
 0x1f2   : > { %v3336_v25 = vpop.f32.mrb[125].mxu0 }
 0x1f3   : > { %v3337_v15 = vadd.f32 %v3336_v25, %v3335_v0  ;;  %v3338_v46 = vpop.f32.mrb[126].mxu0  ;;  %v3447_v45 = vpop.f32.mrb[124].mxu1 }
 0x1f4   : > { %v3339_v5 = vpop.f32.mrb[127].mxu0  ;;  %v3448_v28 = vpop.f32.mrb[125].mxu1 }
 0x1f5   : > { %v2161_v14 = vadd.f32 %v3337_v15, %v4407_v41  ;;  %v3340_v53 = vadd.f32 %v3339_v5, %v3338_v46  ;;  %v3449_v22 = vadd.f32 %v3448_v28, %v3447_v45  ;;  %v3450_v49 = vpop.f32.mrb[126].mxu1 }
 0x1f6   : > { %v3451_v58 = vpop.f32.mrb[127].mxu1 }
 0x1f7   : > { %v2164_v18 = vadd.f32 %v3340_v53, %v4409_v44  ;;  %v3452_v36 = vadd.f32 %v3451_v58, %v3450_v49  ;;  %v4506_v31 = vadd.f32 %v3449_v22, %v2161_v14 }
 0x1f9   : > { %v3551_v27 = vpop.f32.mrb[128].mxu0  ;;  %v4509_v39 = vadd.f32 %v3452_v36, %v2164_v18 }
 0x1fa   : > { %v2371_v62 = vadd.f32 %v3551_v27, %v4419_v37  ;;  %v2362_v55 = vpop.f32.mrb[129].mxu0 }
 0x1fb   : > { %v2363_v2 = vadd.f32 %v2362_v55, %v4413_v6  ;;  %v3552_v13 = vpop.f32.mrb[130].mxu0 }
 0x1fc   : > { %v2374_v41 = vadd.f32 %v3552_v13, %v4421_v42  ;;  %v2365_v26 = vpop.f32.mrb[131].mxu0  ;;  %v2491_v48 = vmax.f32 %v2371_v62, 0.0 }
 0x1fd   : > { %v2366_v19 = vadd.f32 %v2365_v26, %v4415_v16  ;;  %v2489_v47 = vmax.f32 %v2363_v2, 0.0 }
 0x1fe   : > { %v2492_v44 = vmax.f32 %v2374_v41, 0.0 }
 0x1ff   : > { %v2490_v21 = vmax.f32 %v2366_v19, 0.0 }
 0x200   : > { %v4514_v51 = vpack.c.bf16 %v2492_v44, %v2491_v48 }
 0x201   : > { %v4516_v61 = vpack.c.bf16 %v2490_v21, %v2489_v47  ;;  %v3555_v37 = vpop.f32.mrb[132].mxu0 }
 0x202   : > { %v2387_v24 = vadd.f32 %v3555_v37, %v4431_v33  ;;  %v2378_v56 = vpop.f32.mrb[133].mxu0 }
 0x203   : > { %v2379_v6 = vadd.f32 %v2378_v56, %v4425_v1  ;;  %v3556_v11 = vpop.f32.mrb[134].mxu0 }
 0x204   : > { %v2390_v42 = vadd.f32 %v3556_v11, %v4433_v35  ;;  %v2381_v12 = vpop.f32.mrb[135].mxu0  ;;  %v2495_v0 = vmax.f32 %v2387_v24, 0.0 }
 0x205   : > { %v2382_v16 = vadd.f32 %v2381_v12, %v4427_v4  ;;  %v2493_v15 = vmax.f32 %v2379_v6, 0.0 }
 0x206   : > { %v2496_v25 = vmax.f32 %v2390_v42, 0.0 }
 0x207   : > { %v2494_v46 = vmax.f32 %v2382_v16, 0.0 }
 0x208   : > { %v4522_v45 = vpack.c.bf16 %v2496_v25, %v2495_v0 }
 0x209   : > { %v4524_v5 = vpack.c.bf16 %v2494_v46, %v2493_v15  ;;  %v3559_v14 = vpop.f32.mrb[136].mxu0 }
 0x20a   : > { %v2403_v33 = vadd.f32 %v3559_v14, %v4443_v23  ;;  %v2394_v53 = vpop.f32.mrb[137].mxu0 }
 0x20b   : > { %v2395_v1 = vadd.f32 %v2394_v53, %v4437_v60  ;;  %v3560_v28 = vpop.f32.mrb[138].mxu0 }
 0x20c   : > { %v2406_v35 = vadd.f32 %v3560_v28, %v4445_v29  ;;  %v2397_v22 = vpop.f32.mrb[139].mxu0  ;;  %v2499_v49 = vmax.f32 %v2403_v33, 0.0 }
 0x20d   : > { %v2398_v4 = vadd.f32 %v2397_v22, %v4439_v63  ;;  %v2497_v58 = vmax.f32 %v2395_v1, 0.0 }
 0x20e   : > { %v2500_v18 = vmax.f32 %v2406_v35, 0.0 }
 0x20f   : > { %v2498_v36 = vmax.f32 %v2398_v4, 0.0 }
 0x210   : > { %v4530_v27 = vpack.c.bf16 %v2500_v18, %v2499_v49 }
 0x211   : > { %v4532_v62 = vpack.c.bf16 %v2498_v36, %v2497_v58  ;;  %v3563_v55 = vpop.f32.mrb[140].mxu0 }
 0x212   : > { %v2419_v23 = vadd.f32 %v3563_v55, %v4455_v20  ;;  %v2410_v2 = vpop.f32.mrb[141].mxu0 }
 0x213   : > { %v2411_v60 = vadd.f32 %v2410_v2, %v4449_v57  ;;  %v3564_v13 = vpop.f32.mrb[142].mxu0 }
 0x214   : > { %v2422_v29 = vadd.f32 %v3564_v13, %v4457_v8  ;;  %v2413_v41 = vpop.f32.mrb[143].mxu0  ;;  %v2503_v26 = vmax.f32 %v2419_v23, 0.0 }
 0x215   : > { %v2414_v63 = vadd.f32 %v2413_v41, %v4451_v59  ;;  %v2501_v48 = vmax.f32 %v2411_v60, 0.0 }
 0x216   : > { %v2504_v19 = vmax.f32 %v2422_v29, 0.0 }
 0x217   : > { %v2502_v44 = vmax.f32 %v2414_v63, 0.0 }
 0x218   : > { %v4538_v47 = vpack.c.bf16 %v2504_v19, %v2503_v26 }
 0x219   : > { %v4540_v21 = vpack.c.bf16 %v2502_v44, %v2501_v48  ;;  %v3567_v37 = vpop.f32.mrb[144].mxu0  ;;  %v2528_v44 = vld [vmem:[%s4622_s3 + $0x38] sm:$0xff] }
 0x21a   : > { %v2435_v20 = vadd.f32 %v3567_v37, %v4470_v7  ;;  %v2426_v24 = vpop.f32.mrb[145].mxu0  ;;  %v2529_v37 = vld [vmem:[%s4622_s3 + $0x40] sm:$0xff] }
 0x21b   : > { %v2427_v57 = vadd.f32 %v2426_v24, %v4461_v52  ;;  %v3568_v56 = vpop.f32.mrb[146].mxu0  ;;  %v2531_v24 = vld [vmem:[%s4622_s3 + $0x50] sm:$0xff] }
 0x21c   : > { %v2438_v8 = vadd.f32 %v3568_v56, %v4472_v30  ;;  %v2429_v6 = vpop.f32.mrb[147].mxu0  ;;  %v2507_v11 = vmax.f32 %v2435_v20, 0.0  ;;  %v2532_v20 = vld [vmem:[%s4622_s3 + $0x58] sm:$0xff]  ;;  %v2533_v56 = vld [vmem:[%s4622_s3 + $0x60] sm:$0xff] }
 0x21d   : > { %v2430_v59 = vadd.f32 %v2429_v6, %v4466_v9  ;;  %v2505_v12 = vmax.f32 %v2427_v57, 0.0  ;;  %v2534_v57 = vld [vmem:[%s4622_s3 + $0x68] sm:$0xff]  ;;  %v2535_v6 = vld [vmem:[%s4622_s3 + $0x70] sm:$0xff] }
 0x21e   : > { %v2508_v42 = vmax.f32 %v2438_v8, 0.0  ;;  %v2536_v8 = vld [vmem:[%s4622_s3 + $0x78] sm:$0xff] }
 0x21f   : > { %v2506_v16 = vmax.f32 %v2430_v59, 0.0 }
 0x220   : > { %v3585_v0 = vpack.c.bf16 %v2508_v42, %v2507_v11 }
 0x221   : > { %v3581_v25 = vpack.c.bf16 %v2506_v16, %v2505_v12  ;;  %v3571_v15 = vpop.f32.mrb[148].mxu0 }
 0x222   : > { %v2451_v46 = vadd.f32 %v3571_v15, %v4482_v10  ;;  %v2442_v14 = vpop.f32.mrb[149].mxu0 }
 0x223   : > { %v2443_v7 = vadd.f32 %v2442_v14, %v4476_v32  ;;  %v3572_v33 = vpop.f32.mrb[150].mxu0  ;;  %3582 = vmatprep.subr.bf16.mxu1 %v3581_v25 }
 0x224   : > { %v2454_v52 = vadd.f32 %v3572_v33, %v4484_v17  ;;  %v2445_v30 = vpop.f32.mrb[151].mxu0  ;;  %3584 = vmatpush3.bf16.msra.mxu1 %v4516_v61  ;;  %v2511_v53 = vmax.f32 %v2451_v46, 0.0 }
 0x225   : > { %v2446_v9 = vadd.f32 %v2445_v30, %v4478_v50  ;;  %3586 = vmatprep.subr.bf16.mxu1 %v3585_v0  ;;  %v2509_v28 = vmax.f32 %v2443_v7, 0.0 }
 0x226   : > { %v2512_v1 = vmax.f32 %v2454_v52, 0.0 }
 0x227   : > { %v2510_v35 = vmax.f32 %v2446_v9, 0.0 }
 0x228   : > { %v3593_v22 = vpack.c.bf16 %v2512_v1, %v2511_v53  ;;  %3588 = vmatpush3.bf16.msra.mxu1 %v4514_v51 }
 0x229   : > { %v3589_v10 = vpack.c.bf16 %v2510_v35, %v2509_v28  ;;  %v3575_v4 = vpop.f32.mrb[152].mxu0 }
 0x22a   : > { %v2467_v32 = vadd.f32 %v3575_v4, %v4494_v54  ;;  %v2458_v49 = vpop.f32.mrb[153].mxu0 }
 0x22b   : > { %v2459_v17 = vadd.f32 %v2458_v49, %v4488_v40  ;;  %v3576_v18 = vpop.f32.mrb[154].mxu0  ;;  %3590 = vmatprep.subr.bf16.mxu1 %v3589_v10 }
 0x22c   : > { %v2470_v61 = vadd.f32 %v3576_v18, %v4496_v3  ;;  %v2461_v50 = vpop.f32.mrb[155].mxu0  ;;  %3592 = vmatpush3.bf16.msra.mxu1 %v4524_v5  ;;  %v2515_v36 = vmax.f32 %v2467_v32, 0.0 }
 0x22d   : > { %v2462_v58 = vadd.f32 %v2461_v50, %v4490_v43  ;;  %3594 = vmatprep.subr.bf16.mxu1 %v3593_v22  ;;  %v2513_v51 = vmax.f32 %v2459_v17, 0.0 }
 0x22e   : > { %v2516_v55 = vmax.f32 %v2470_v61, 0.0 }
 0x22f   : > { %v2514_v23 = vmax.f32 %v2462_v58, 0.0 }
 0x230   : > { %v3601_v2 = vpack.c.bf16 %v2516_v55, %v2515_v36  ;;  %3596 = vmatpush3.bf16.msra.mxu1 %v4522_v45 }
 0x231   : > { %v3597_v54 = vpack.c.bf16 %v2514_v23, %v2513_v51  ;;  %v3579_v60 = vpop.f32.mrb[156].mxu0 }
 0x232   : > { %v2483_v40 = vadd.f32 %v3579_v60, %v4506_v31  ;;  %v2474_v13 = vpop.f32.mrb[157].mxu0 }
 0x233   : > { %v2475_v3 = vadd.f32 %v2474_v13, %v4500_v34  ;;  %v3580_v29 = vpop.f32.mrb[158].mxu0  ;;  %3598 = vmatprep.subr.bf16.mxu1 %v3597_v54  ;;  %v2521_v34 = vld [vmem:[%s4622_s3] sm:$0xff] }
 0x234   : > { %v2486_v5 = vadd.f32 %v3580_v29, %v4509_v39  ;;  %v2477_v43 = vpop.f32.mrb[159].mxu0  ;;  %3600 = vmatpush3.bf16.msra.mxu1 %v4532_v62  ;;  %v2519_v63 = vmax.f32 %v2483_v40, 0.0  ;;  %v2523_v39 = vld [vmem:[%s4622_s3 + $0x10] sm:$0xff]  ;;  %v2525_v62 = vld [vmem:[%s4622_s3 + $0x20] sm:$0xff] }
 0x235   : > { %v2478_v41 = vadd.f32 %v2477_v43, %v4502_v38  ;;  %3602 = vmatprep.subr.bf16.mxu1 %v3601_v2  ;;  %v2517_v45 = vmax.f32 %v2475_v3, 0.0  ;;  %v2524_v38 = vld [vmem:[%s4622_s3 + $0x18] sm:$0xff] }
 0x236   : > { %v2520_v26 = vmax.f32 %v2486_v5, 0.0 }
 0x237   : > { %v2518_v19 = vmax.f32 %v2478_v41, 0.0 }
 0x238   : > { %v3609_v48 = vpack.c.bf16 %v2520_v26, %v2519_v63  ;;  %3604 = vmatpush3.bf16.msra.mxu1 %v4530_v27  ;;  %v2526_v27 = vld [vmem:[%s4622_s3 + $0x28] sm:$0xff] }
 0x239   : > { %v3605_v31 = vpack.c.bf16 %v2518_v19, %v2517_v45 }
 0x23b   : > { %3606 = vmatprep.subr.bf16.mxu1 %v3605_v31 }
 0x23c   : > { %3608 = vmatpush3.bf16.msra.mxu1 %v4540_v21  ;;  %v2530_v21 = vld [vmem:[%s4622_s3 + $0x48] sm:$0xff] }
 0x23d   : > { %3610 = vmatprep.subr.bf16.mxu1 %v3609_v48 }
 0x240   : > { %3612 = vmatpush3.bf16.msra.mxu1 %v4538_v47  ;;  %v2527_v47 = vld [vmem:[%s4622_s3 + $0x30] sm:$0xff] }
 0x243   : > { %2602 = vmatmul.mubr.f32.vlgmr.msra.gmra.mrb[128].mxu1 %v2521_v34 }
 0x244   : > { %2606 = vmatprep.mubr.f32.mxu1 %v2524_v38 }
 0x247   : > { %2607 = vmatmul.mubr.f32.gmra.mrb[130].mxu1 %v2523_v39 }
 0x248   : > { %2611 = vmatprep.mubr.f32.mxu1 %v2526_v27 }
 0x24b   : > { %2612 = vmatmul.mubr.f32.gmra.mrb[132].mxu1 %v2525_v62 }
 0x24c   : > { %2616 = vmatprep.mubr.f32.mxu1 %v2528_v44 }
 0x24f   : > { %2617 = vmatmul.mubr.f32.gmra.mrb[134].mxu1 %v2527_v47 }
 0x250   : > { %2621 = vmatprep.mubr.f32.mxu1 %v2530_v21 }
 0x253   : > { %2622 = vmatmul.mubr.f32.gmra.mrb[136].mxu1 %v2529_v37 }
 0x254   : > { %2626 = vmatprep.mubr.f32.mxu1 %v2532_v20 }
 0x257   : > { %2627 = vmatmul.mubr.f32.gmra.mrb[138].mxu1 %v2531_v24 }
 0x258   : > { %2631 = vmatprep.mubr.f32.mxu1 %v2534_v57 }
 0x25b   : > { %2632 = vmatmul.mubr.f32.gmra.mrb[140].mxu1 %v2533_v56 }
 0x25c   : > { %2636 = vmatprep.mubr.f32.mxu1 %v2536_v8 }
 0x25f   : > { %2637 = vmatmul.mubr.f32.gmra.mrb[142].mxu1 %v2535_v6 }
 0x316   : > { %v3509_v59 = vpop.f32.mrb[128].mxu1 }
 0x317   : > { %v3510_v11 = vpop.f32.mrb[129].mxu1 }
 0x318   : > { %v3511_v42 = vadd.f32 %v3510_v11, %v3509_v59 }
 0x31a   : > { %v3512_v12 = vpop.f32.mrb[130].mxu1 }
 0x31b   : > { %v3513_v16 = vpop.f32.mrb[131].mxu1 }
 0x31c   : > { %v3514_v0 = vadd.f32 %v3513_v16, %v3512_v12 }
 0x31e   : > { %v2985_v25 = vpack.c.bf16 %v3514_v0, %v3511_v42  ;;  %v3515_v15 = vpop.f32.mrb[132].mxu1 }
 0x31f   : > { %v3516_v46 = vpop.f32.mrb[133].mxu1 }
 0x320   : > { %2986 = vst [vmem:[%s202_s13] sm:$0xff] %v2985_v25   ;;  %v3517_v14 = vadd.f32 %v3516_v46, %v3515_v15 }
 0x322   : > { %v3518_v7 = vpop.f32.mrb[134].mxu1 }
 0x323   : > { %v3519_v33 = vpop.f32.mrb[135].mxu1 }
 0x324   : > { %v3520_v52 = vadd.f32 %v3519_v33, %v3518_v7 }
 0x326   : > { %v2990_v30 = vpack.c.bf16 %v3520_v52, %v3517_v14  ;;  %v3521_v9 = vpop.f32.mrb[136].mxu1 }
 0x327   : > { %v3522_v53 = vpop.f32.mrb[137].mxu1 }
 0x328   : > { %3002 = vst [vmem:[%s202_s13 + $0x8] sm:$0xff] %v2990_v30   ;;  %v3523_v1 = vadd.f32 %v3522_v53, %v3521_v9 }
 0x32a   : > { %v3524_v28 = vpop.f32.mrb[138].mxu1 }
 0x32b   : > { %v3525_v35 = vpop.f32.mrb[139].mxu1 }
 0x32c   : > { %v3526_v22 = vadd.f32 %v3525_v35, %v3524_v28 }
 0x32e   : > { %v2995_v10 = vpack.c.bf16 %v3526_v22, %v3523_v1  ;;  %v3527_v4 = vpop.f32.mrb[140].mxu1 }
 0x32f   : > { %v3528_v32 = vpop.f32.mrb[141].mxu1 }
 0x330   : > { %3003 = vst [vmem:[%s202_s13 + $0x10] sm:$0xff] %v2995_v10   ;;  %v3529_v49 = vadd.f32 %v3528_v32, %v3527_v4 }
 0x332   : > { %v3530_v17 = vpop.f32.mrb[142].mxu1 }
 0x333   : > { %v3531_v18 = vpop.f32.mrb[143].mxu1 }
 0x334   : > { %v3532_v61 = vadd.f32 %v3531_v18, %v3530_v17 }
 0x336   : > { %v3000_v50 = vpack.c.bf16 %v3532_v61, %v3529_v49 }
 0x338   : > { %3004 = vst [vmem:[%s202_s13 + $0x18] sm:$0xff] %v3000_v50  }
 0x339 PF: > { %s14_s15 = sadd.s32 1, %s3908_s15  }
 0x33a   : > { %p11_p5 = scmp.ge.s32.totalorder %s14_s15, 4  }
 0x33c   :  { %13 = sbr.rel (!%p11_p5) target bundleno = 1 (0x1), region = 66 }

// kernel: mshe_b_forward.6
= control target key start
LH: loop header
LB: loop body
LE: loop exit
PB: predicated region body
PF: predicated region fallthrough
CT: control target
= control target key end

     0   :  { %s2033_s15 = smov 0   ;;  %s2319_s0 = inlined_call_operand.vmem [shape: bf16[128,1152], index: 0, kind: input, shape index: {}]   ;;  %s2320_s1 = inlined_call_operand.vmem [shape: bf16[1152,128], index: 1, kind: input, shape index: {}]   ;;  %s2321_s2 = inlined_call_operand.vmem [shape: f32[1,128], index: 2, kind: input, shape index: {}]   ;;  %s2322_s3 = inlined_call_operand.vmem [shape: f32[16,64], index: 3, kind: input, shape index: {}]   ;;  %s2323_s4 = inlined_call_operand.vmem [shape: bf16[32,128], index: 4, kind: output, shape index: {}]  }
   0x1 LB: > { %s1495_s16 = sadd.s32 4294967295, %s2006_s15   ;;  %p1499_p0 = scmp.ge.s32.totalorder %s2006_s15, 1  ;;  %s2006_s15 = sphi %s2033_s15, %s14_s15  }
   0x2   : > { %p164_p1 = scmp.lt.s32.totalorder %s2006_s15, 3 }
   0x4   : > { %p165_p2 = pnand %p1499_p0, %p164_p1 }
   0x5   : > { %v1876_v0 = vld [vmem:[%s2320_s1 + $0x40] sm:$0xff] (!%p165_p2)   ;;  %v1880_v4 = vld [vmem:[%s2320_s1 + $0x48] sm:$0xff] (!%p165_p2)   ;;  %v1884_v8 = vld [vmem:[%s2320_s1 + $0x50] sm:$0xff] (!%p165_p2)   ;;  %s1500_s21 = sshll.u32 (!%p165_p2), %s1495_s16, 3  ;;  %vm1347_vm0 = vcmask (!%p165_p2), 523264   ;;  %s1502_s30 = sshll.u32 (!%p165_p2), %s1495_s16, 1 }
   0x6   : > { %168 = sbr.rel (%p165_p2) target bundleno = 555 (0x22b), region = 36  ;;  %v1877_v1 = vld [vmem:[%s2320_s1] sm:$0xff] (!%p165_p2)   ;;  %1626 = vmatprep.subr.bf16.mxu0 (!%p165_p2), %v1876_v0  ;;  %v1881_v5 = vld [vmem:[%s2320_s1 + $0x8] sm:$0xff] (!%p165_p2)   ;;  %v1885_v9 = vld [vmem:[%s2320_s1 + $0x10] sm:$0xff] (!%p165_p2)   ;;  %p192_p3 = scmp.lt.s32.totalorder (!%p165_p2), %s1500_s21, 15 }
   0x7   : > { %v1878_v2 = vld [vmem:[%s2320_s1 + $0xc0] sm:$0xff] (!%p165_p2)   ;;  %1627 = vmatpush3.bf16.msra.mxu0 (!%p165_p2), %v1877_v1  ;;  %v1882_v6 = vld [vmem:[%s2320_s1 + $0xc8] sm:$0xff] (!%p165_p2)   ;;  %v1886_v10 = vld [vmem:[%s2320_s1 + $0xd0] sm:$0xff] (!%p165_p2)   ;;  %p199_p4 = scmp.lt.s32.totalorder (!%p165_p2), %s1502_s30, 3 }
   0x8   : > { %v1879_v3 = vld [vmem:[%s2320_s1 + $0x80] sm:$0xff] (!%p165_p2)   ;;  %1666 = vmatprep.subr.bf16.mxu1 (!%p165_p2), %v1878_v2  ;;  %1628 = vmatprep.subr.bf16.mxu0 (!%p165_p2), %v1880_v4  ;;  %v1883_v7 = vld [vmem:[%s2320_s1 + $0x88] sm:$0xff] (!%p165_p2)   ;;  %v1887_v11 = vld [vmem:[%s2320_s1 + $0x90] sm:$0xff] (!%p165_p2)  }
   0x9   : > { %1667 = vmatpush3.bf16.msra.mxu1 (!%p165_p2), %v1879_v3  ;;  %v1888_v12 = vld [vmem:[%s2320_s1 + $0x58] sm:$0xff] (!%p165_p2)   ;;  %v1892_v16 = vld [vmem:[%s2320_s1 + $0x60] sm:$0xff] (!%p165_p2)   ;;  %v1896_v20 = vld [vmem:[%s2320_s1 + $0x68] sm:$0xff] (!%p165_p2)  }
   0xa   : > { %1668 = vmatprep.subr.bf16.mxu1 (!%p165_p2), %v1882_v6  ;;  %v1889_v13 = vld [vmem:[%s2320_s1 + $0x18] sm:$0xff] (!%p165_p2)   ;;  %v1893_v17 = vld [vmem:[%s2320_s1 + $0x20] sm:$0xff] (!%p165_p2)   ;;  %v1897_v21 = vld [vmem:[%s2320_s1 + $0x28] sm:$0xff] (!%p165_p2)  }
   0xb   : > { %1629 = vmatpush3.bf16.msra.mxu0 (!%p165_p2), %v1881_v5  ;;  %v1890_v14 = vld [vmem:[%s2320_s1 + $0xd8] sm:$0xff] (!%p165_p2)   ;;  %v1894_v18 = vld [vmem:[%s2320_s1 + $0xe0] sm:$0xff] (!%p165_p2)   ;;  %v1898_v22 = vld [vmem:[%s2320_s1 + $0xe8] sm:$0xff] (!%p165_p2)  }
   0xc   : > { %1630 = vmatprep.subr.bf16.mxu0 (!%p165_p2), %v1884_v8  ;;  %v1891_v15 = vld [vmem:[%s2320_s1 + $0x98] sm:$0xff] (!%p165_p2)   ;;  %v1895_v19 = vld [vmem:[%s2320_s1 + $0xa0] sm:$0xff] (!%p165_p2)   ;;  %v1899_v23 = vld [vmem:[%s2320_s1 + $0xa8] sm:$0xff] (!%p165_p2)  }
   0xd   : > { %1669 = vmatpush3.bf16.msra.mxu1 %v1883_v7  ;;  %s2325_s21 = smov (!%p192_p3, %s1500_s21), 15  ;;  %v1900_v24 = vld [vmem:[%s2320_s1 + $0x70] sm:$0xff]   ;;  %v1904_v28 = vld [vmem:[%s2320_s1 + $0x78] sm:$0xff]   ;;  %v1911_v34 = vld [vmem:[%s2320_s1 + $0x140] sm:$0xff]   ;;  %s2327_s30 = smov (!%p199_p4, %s1502_s30), 3 }
   0xe   : > { %1670 = vmatprep.subr.bf16.mxu1 %v1886_v10  ;;  %s1867_s20 = smul.u32 36, %s2325_s21  ;;  %v1901_v25 = vld [vmem:[%s2320_s1 + $0x30] sm:$0xff]   ;;  %v1905_v29 = vld [vmem:[%s2320_s1 + $0x38] sm:$0xff]   ;;  %v1915_v37 = vld [vmem:[%s2320_s1 + $0x100] sm:$0xff]   ;;  %s1503_s6 = sshll.u32 %s2327_s30, 2 }
   0xf   : > { %1631 = vmatpush3.bf16.msra.mxu0 %v1885_v9  ;;  %v1902_v26 = vld [vmem:[%s2320_s1 + $0xf0] sm:$0xff]   ;;  %v1906_v30 = vld [vmem:[%s2320_s1 + $0xf8] sm:$0xff]   ;;  %v1916_v38 = vld [vmem:[%s2320_s1 + $0x1c0] sm:$0xff]   ;;  %s202_s9 = scalar_lea.vmem %s2323_s4, %s1503_s6 }
  0x10   : > { %1632 = vmatprep.subr.bf16.mxu0 %v1888_v12  ;;  %v1903_v27 = vld [vmem:[%s2320_s1 + $0xb0] sm:$0xff]   ;;  %s2133_s5 = scalar_lea.vmem %s2319_s0, %s1867_s20  ;;  %v1910_v33 = vld [vmem:[%s2320_s1 + $0xb8] sm:$0xff]   ;;  %v1917_v39 = vld [vmem:[%s2320_s1 + $0x180] sm:$0xff]  }
  0x11   : > { %1671 = vmatpush3.bf16.msra.mxu1 %v1887_v11  ;;  %v1907_v31 = vld [vmem:[%s2133_s5] ss:$36 sps:$4 sm:$0xff]   ;;  %v1912_v35 = vld [vmem:[%s2133_s5 + $0x8] ss:$36 sps:$4 sm:$0xff]   ;;  %v1925_v46 = vld [vmem:[%s2320_s1 + $0x150] sm:$0xff]  }
  0x12   : > { %1672 = vmatprep.subr.bf16.mxu1 %v1890_v14  ;;  %v1909_v32 = vld [vmem:[%s2133_s5 + $0x4] ss:$36 sps:$4 sm:$0xff]   ;;  %v1914_v36 = vld [vmem:[%s2133_s5 + $0xc] ss:$36 sps:$4 sm:$0xff]   ;;  %v1926_v47 = vld [vmem:[%s2133_s5 + $0x54] ss:$36 sps:$4 sm:$0xff]  }
  0x13   : > { %1633 = vmatpush3.bf16.msra.mxu0 %v1889_v13  ;;  %1044 = vmatprep.mubr.bf16.mxu0 %v1909_v32  ;;  %v1918_v40 = vld [vmem:[%s2320_s1 + $0x148] sm:$0xff]   ;;  %v1928_v48 = vld [vmem:[%s2320_s1 + $0x110] sm:$0xff]   ;;  %v1932_v52 = vld [vmem:[%s2320_s1 + $0x158] sm:$0xff]  }
  0x14   : > { %1634 = vmatprep.subr.bf16.mxu0 %v1892_v16  ;;  %1109 = vmatprep.mubr.bf16.mxu1 %v1914_v36  ;;  %v1919_v41 = vld [vmem:[%s2320_s1 + $0x108] sm:$0xff]   ;;  %v1929_v49 = vld [vmem:[%s2133_s5 + $0x50] ss:$36 sps:$4 sm:$0xff]   ;;  %v1933_v53 = vld [vmem:[%s2320_s1 + $0x118] sm:$0xff]  }
  0x15   : > { %1673 = vmatpush3.bf16.msra.mxu1 %v1891_v15  ;;  %v1920_v42 = vld [vmem:[%s2320_s1 + $0x1c8] sm:$0xff]   ;;  %v1930_v50 = vld [vmem:[%s2320_s1 + $0x1d0] sm:$0xff]   ;;  %v1934_v54 = vld [vmem:[%s2320_s1 + $0x1d8] sm:$0xff]  }
  0x16   : > { %1674 = vmatprep.subr.bf16.mxu1 %v1894_v18  ;;  %v1921_v43 = vld [vmem:[%s2133_s5 + $0x4c] ss:$36 sps:$4 sm:$0xff]   ;;  %v1935_v55 = vld [vmem:[%s2133_s5 + $0x94] ss:$36 sps:$4 sm:$0xff]   ;;  %v1939_v58 = vld [vmem:[%s2320_s1 + $0x160] sm:$0xff]  }
  0x17   : > { %1635 = vmatpush3.bf16.msra.mxu0 %v1893_v17  ;;  %v1923_v44 = vld [vmem:[%s2320_s1 + $0x188] sm:$0xff]   ;;  %v1931_v51 = vld [vmem:[%s2320_s1 + $0x190] sm:$0xff]   ;;  %v1937_v56 = vld [vmem:[%s2320_s1 + $0x198] sm:$0xff]  }
  0x18   : > { %1636 = vmatprep.subr.bf16.mxu0 %v1896_v20  ;;  %v1924_v45 = vld [vmem:[%s2133_s5 + $0x48] ss:$36 sps:$4 sm:$0xff]   ;;  %v1938_v57 = vld [vmem:[%s2133_s5 + $0x90] ss:$36 sps:$4 sm:$0xff]   ;;  %v1940_v59 = vld [vmem:[%s2133_s5 + $0x9c] ss:$36 sps:$4 sm:$0xff]  }
  0x19   : > { %1675 = vmatpush3.bf16.msra.mxu1 %v1895_v19  ;;  %v1942_v60 = vld [vmem:[%s2320_s1 + $0x120] sm:$0xff]   ;;  %v1943_v61 = vld [vmem:[%s2133_s5 + $0x98] ss:$36 sps:$4 sm:$0xff]   ;;  %v1946_v0 = vld [vmem:[%s2320_s1 + $0x168] sm:$0xff]  }
  0x1a   : > { %1676 = vmatprep.subr.bf16.mxu1 %v1898_v22  ;;  %v1944_v62 = vld [vmem:[%s2320_s1 + $0x1e0] sm:$0xff]   ;;  %v1947_v1 = vld [vmem:[%s2320_s1 + $0x128] sm:$0xff]   ;;  %v1952_v5 = vld [vmem:[%s2133_s5 + $0xd8] ss:$36 sps:$4 sm:$0xff]  }
  0x1b   : > { %1637 = vmatpush3.bf16.msra.mxu0 %v1897_v21  ;;  %v1945_v63 = vld [vmem:[%s2320_s1 + $0x1a0] sm:$0xff]   ;;  %v1948_v2 = vld [vmem:[%s2320_s1 + $0x1e8] sm:$0xff]   ;;  %v1953_v6 = vld [vmem:[%s2320_s1 + $0x170] sm:$0xff]  }
  0x1c   : > { %1638 = vmatprep.subr.bf16.mxu0 %v1900_v24  ;;  %v1949_v3 = vld [vmem:[%s2133_s5 + $0xdc] ss:$36 sps:$4 sm:$0xff]   ;;  %v1951_v4 = vld [vmem:[%s2320_s1 + $0x1a8] sm:$0xff]   ;;  %v1956_v8 = vld [vmem:[%s2320_s1 + $0x130] sm:$0xff]  }
  0x1d   : > { %1677 = vmatpush3.bf16.msra.mxu1 %v1899_v23  ;;  %v1954_v7 = vld [vmem:[%s2133_s5 + $0xe4] ss:$36 sps:$4 sm:$0xff]   ;;  %v1958_v10 = vld [vmem:[%s2320_s1 + $0x1f0] sm:$0xff]   ;;  %v1960_v12 = vld [vmem:[%s2320_s1 + $0x178] sm:$0xff]  }
  0x1e   : > { %1678 = vmatprep.subr.bf16.mxu1 %v1902_v26  ;;  %v1957_v9 = vld [vmem:[%s2133_s5 + $0xe0] ss:$36 sps:$4 sm:$0xff]   ;;  %v1959_v11 = vld [vmem:[%s2320_s1 + $0x1b0] sm:$0xff]   ;;  %v1961_v13 = vld [vmem:[%s2320_s1 + $0x138] sm:$0xff]  }
  0x1f   : > { %1639 = vmatpush3.bf16.msra.mxu0 %v1901_v25  ;;  %v1962_v14 = vld [vmem:[%s2320_s1 + $0x1f8] sm:$0xff]   ;;  %v1963_v15 = vld [vmem:[%s2133_s5 + $0x10] ss:$36 sps:$4 sm:$0xff]   ;;  %v1967_v18 = vld [vmem:[%s2320_s1 + $0x200] sm:$0xff]  }
  0x20   : > { %1640 = vmatprep.subr.bf16.mxu0 %v1904_v28  ;;  %v1965_v16 = vld [vmem:[%s2133_s5 + $0x14] ss:$36 sps:$4 sm:$0xff]   ;;  %v1970_v20 = vld [vmem:[%s2133_s5 + $0x1c] ss:$36 sps:$4 sm:$0xff]   ;;  %v1971_v21 = vld [vmem:[%s2320_s1 + $0x208] sm:$0xff]  }
  0x21   : > { %1679 = vmatpush3.bf16.msra.mxu1 %v1903_v27  ;;  %v1966_v17 = vld [vmem:[%s2320_s1 + $0x1b8] sm:$0xff]   ;;  %v1975_v24 = vld [vmem:[%s2320_s1 + $0x210] sm:$0xff]   ;;  %v1976_v25 = vld [vmem:[%s2133_s5 + $0x64] ss:$36 sps:$4 sm:$0xff]  }
  0x22   : > { %1680 = vmatprep.subr.bf16.mxu1 %v1906_v30  ;;  %v1968_v19 = vld [vmem:[%s2133_s5 + $0x18] ss:$36 sps:$4 sm:$0xff]   ;;  %v1980_v27 = vld [vmem:[%s2133_s5 + $0xa4] ss:$36 sps:$4 sm:$0xff]   ;;  %v1988_v32 = vld [vmem:[%s2133_s5 + $0xec] ss:$36 sps:$4 sm:$0xff]  }
  0x23   : > { %1641 = vmatpush3.bf16.msra.mxu0 %v1905_v29  ;;  %v1972_v22 = vld [vmem:[%s2133_s5 + $0x5c] ss:$36 sps:$4 sm:$0xff]   ;;  %v1984_v29 = vld [vmem:[%s2133_s5 + $0xac] ss:$36 sps:$4 sm:$0xff]  }
  0x24   : > { %1706 = vmatprep.subr.bf16.mxu0 %v1911_v34  ;;  %v1974_v23 = vld [vmem:[%s2133_s5 + $0x58] ss:$36 sps:$4 sm:$0xff]   ;;  %v1978_v28 = vld [vmem:[%s2133_s5 + $0x60] ss:$36 sps:$4 sm:$0xff]   ;;  %v1986_v34 = vld [vmem:[%s2133_s5 + $0xa8] ss:$36 sps:$4 sm:$0xff]  }
  0x25   : > { %1681 = vmatpush3.bf16.msra.mxu1 %v1910_v33  ;;  %v1979_v26 = vld [vmem:[%s2320_s1 + $0x218] sm:$0xff]   ;;  %v1983_v30 = vld [vmem:[%s2320_s1 + $0x220] sm:$0xff]   ;;  %v1987_v33 = vld [vmem:[%s2320_s1 + $0x228] sm:$0xff]  }
  0x26   : > { %1045 = vmatmul.mubr.bf16.vlgmr.msra.gmra.mrb[0].mxu0 %v1907_v31  ;;  %1746 = vmatprep.subr.bf16.mxu1 %v1916_v38  ;;  %v1982_v31 = vld [vmem:[%s2133_s5 + $0xa0] ss:$36 sps:$4 sm:$0xff]   ;;  %v1991_v36 = vld [vmem:[%s2320_s1 + $0x230] sm:$0xff]  }
  0x27   : > { %1707 = vmatpush3.bf16.msra.mxu0 %v1915_v37  ;;  %1052 = vmatprep.mubr.bf16.mxu0 %v1921_v43  ;;  %v1990_v37 = vld [vmem:[%s2133_s5 + $0xe8] ss:$36 sps:$4 sm:$0xff]   ;;  %v1996_v38 = vld [vmem:[%s2133_s5 + $0x20] ss:$36 sps:$4 sm:$0xff]   ;;  %v1999_v43 = vld [vmem:[%s2133_s5 + $0xf8] ss:$36 sps:$4 sm:$0xff]  }
  0x28   : > { %1110 = vmatmul.mubr.bf16.vlgmr.msra.gmra.mrb[0].mxu1 %v1912_v35  ;;  %1708 = vmatprep.subr.bf16.mxu0 %v1918_v40  ;;  %v1992_v35 = vld [vmem:[%s2133_s5 + $0xf4] ss:$36 sps:$4 sm:$0xff]  }
  0x29   : > { %1747 = vmatpush3.bf16.msra.mxu1 %v1917_v39  ;;  %1117 = vmatprep.mubr.bf16.mxu1 %v1926_v47  ;;  %v1995_v39 = vld [vmem:[%s2320_s1 + $0x238] sm:$0xff]   ;;  %v1994_v40 = vld [vmem:[%s2133_s5 + $0xf0] ss:$36 sps:$4 sm:$0xff]  }
  0x2a   : > { %1748 = vmatprep.subr.bf16.mxu1 %v1920_v42  ;;  %v1998_v42 = vld [vmem:[%s2133_s5 + $0xb0] ss:$36 sps:$4 sm:$0xff]  }
  0x2b   : > { %1709 = vmatpush3.bf16.msra.mxu0 %v1919_v41  ;;  %v1997_v41 = vld [vmem:[%s2133_s5 + $0x68] ss:$36 sps:$4 sm:$0xff]  }
  0x2c   : > { %1710 = vmatprep.subr.bf16.mxu0 %v1925_v46  ;;  %v1504_v46 = vld [vmem:[%s2321_s2] ss:$0 sm:$0xff] }
  0x2d   : > { %1749 = vmatpush3.bf16.msra.mxu1 %v1923_v44  ;;  %v1345_v44 = vld [vmem:[%s2322_s3] sm:$0xff] }
  0x2e   : > { %1053 = vmatmul.mubr.bf16.gmra.mrb[4].mxu0 %v1924_v45  ;;  %1750 = vmatprep.subr.bf16.mxu1 %v1930_v50 }
  0x2f   : > { %1711 = vmatpush3.bf16.msra.mxu0 %v1928_v48  ;;  %1060 = vmatprep.mubr.bf16.mxu0 %v1935_v55 }
  0x30   : > { %1118 = vmatmul.mubr.bf16.gmra.mrb[4].mxu1 %v1929_v49  ;;  %1712 = vmatprep.subr.bf16.mxu0 %v1932_v52 }
  0x31   : > { %1751 = vmatpush3.bf16.msra.mxu1 %v1931_v51  ;;  %1125 = vmatprep.mubr.bf16.mxu1 %v1940_v59 }
  0x32   : > { %1752 = vmatprep.subr.bf16.mxu1 %v1934_v54 }
  0x33   : > { %1713 = vmatpush3.bf16.msra.mxu0 %v1933_v53 }
  0x34   : > { %1714 = vmatprep.subr.bf16.mxu0 %v1939_v58 }
  0x35   : > { %1753 = vmatpush3.bf16.msra.mxu1 %v1937_v56 }
  0x36   : > { %1061 = vmatmul.mubr.bf16.gmra.mrb[8].mxu0 %v1938_v57  ;;  %1754 = vmatprep.subr.bf16.mxu1 %v1944_v62 }
  0x37   : > { %1715 = vmatpush3.bf16.msra.mxu0 %v1942_v60  ;;  %1068 = vmatprep.mubr.bf16.mxu0 %v1949_v3 }
  0x38   : > { %1126 = vmatmul.mubr.bf16.gmra.mrb[8].mxu1 %v1943_v61  ;;  %1716 = vmatprep.subr.bf16.mxu0 %v1946_v0 }
  0x39   : > { %1755 = vmatpush3.bf16.msra.mxu1 %v1945_v63  ;;  %1133 = vmatprep.mubr.bf16.mxu1 %v1954_v7 }
  0x3a   : > { %1756 = vmatprep.subr.bf16.mxu1 %v1948_v2 }
  0x3b   : > { %1717 = vmatpush3.bf16.msra.mxu0 %v1947_v1 }
  0x3c   : > { %1718 = vmatprep.subr.bf16.mxu0 %v1953_v6 }
  0x3d   : > { %1757 = vmatpush3.bf16.msra.mxu1 %v1951_v4 }
  0x3e   : > { %1069 = vmatmul.mubr.bf16.gmra.mrb[12].mxu0 %v1952_v5  ;;  %1758 = vmatprep.subr.bf16.mxu1 %v1958_v10 }
  0x3f   : > { %1719 = vmatpush3.bf16.msra.mxu0 %v1956_v8  ;;  %1174 = vmatprep.mubr.bf16.mxu0 %v1965_v16 }
  0x40   : > { %1134 = vmatmul.mubr.bf16.gmra.mrb[12].mxu1 %v1957_v9  ;;  %1720 = vmatprep.subr.bf16.mxu0 %v1960_v12 }
  0x41   : > { %1759 = vmatpush3.bf16.msra.mxu1 %v1959_v11  ;;  %1239 = vmatprep.mubr.bf16.mxu1 %v1970_v20 }
  0x42   : > { %1760 = vmatprep.subr.bf16.mxu1 %v1962_v14 }
  0x43   : > { %1721 = vmatpush3.bf16.msra.mxu0 %v1961_v13 }
  0x44   : > { %1808 = vmatprep.subr.bf16.mxu0 %v1967_v18 }
  0x45   : > { %1761 = vmatpush3.bf16.msra.mxu1 %v1966_v17 }
  0x46   : > { %1175 = vmatmul.mubr.bf16.vlgmr.msra.gmra.mrb[16].mxu0 %v1963_v15 }
  0x47   : > { %1809 = vmatpush3.bf16.msra.mxu0 %v1967_v18  ;;  %1182 = vmatprep.mubr.bf16.mxu0 %v1972_v22 }
  0x48   : > { %1240 = vmatmul.mubr.bf16.vlgmr.msra.gmra.mrb[16].mxu1 %v1968_v19  ;;  %1810 = vmatprep.subr.bf16.mxu0 %v1971_v21 }
  0x49   : > { %1247 = vmatprep.mubr.bf16.mxu1 %v1976_v25 }
  0x4b   : > { %1811 = vmatpush3.bf16.msra.mxu0 %v1971_v21 }
  0x4c   : > { %1812 = vmatprep.subr.bf16.mxu0 %v1975_v24 }
  0x4e   : > { %1183 = vmatmul.mubr.bf16.gmra.mrb[20].mxu0 %v1974_v23 }
  0x4f   : > { %1190 = vmatprep.mubr.bf16.mxu0 %v1980_v27  ;;  %1813 = vmatpush3.bf16.msra.mxu0 %v1975_v24 }
  0x50   : > { %1814 = vmatprep.subr.bf16.mxu0 %v1979_v26  ;;  %1248 = vmatmul.mubr.bf16.gmra.mrb[20].mxu1 %v1978_v28 }
  0x51   : > { %1255 = vmatprep.mubr.bf16.mxu1 %v1984_v29 }
  0x53   : > { %1815 = vmatpush3.bf16.msra.mxu0 %v1979_v26 }
  0x54   : > { %1816 = vmatprep.subr.bf16.mxu0 %v1983_v30 }
  0x56   : > { %1191 = vmatmul.mubr.bf16.gmra.mrb[24].mxu0 %v1982_v31 }
  0x57   : > { %1198 = vmatprep.mubr.bf16.mxu0 %v1988_v32  ;;  %1817 = vmatpush3.bf16.msra.mxu0 %v1983_v30 }
  0x58   : > { %1818 = vmatprep.subr.bf16.mxu0 %v1987_v33  ;;  %1256 = vmatmul.mubr.bf16.gmra.mrb[24].mxu1 %v1986_v34 }
  0x59   : > { %1263 = vmatprep.mubr.bf16.mxu1 %v1992_v35 }
  0x5b   : > { %1819 = vmatpush3.bf16.msra.mxu0 %v1987_v33 }
  0x5c   : > { %1820 = vmatprep.subr.bf16.mxu0 %v1991_v36 }
  0x5e   : > { %1199 = vmatmul.mubr.bf16.gmra.mrb[28].mxu0 %v1990_v37 }
  0x5f   : > { %1824 = vmatprep.mubr.bf16.mxu0 %v1996_v38  ;;  %1821 = vmatpush3.bf16.msra.mxu0 %v1991_v36 }
  0x60   : > { %1822 = vmatprep.subr.bf16.mxu0 %v1995_v39  ;;  %1264 = vmatmul.mubr.bf16.gmra.mrb[28].mxu1 %v1994_v40 }
  0x61   : > { %1848 = vmatprep.mubr.msk.f32.mxu1 %vm1347_vm0, %v1345_v44 }
  0x63   : > { %1823 = vmatpush3.bf16.msra.mxu0 %v1995_v39 }
  0x66   : > { %1825 = vmatmul.mubr.bf16.vlgmr.msra.gmra.mrb[32].mxu0 %v1997_v41 }
  0x67   : > { %1828 = vmatprep.mubr.bf16.mxu0 %v1998_v42 }
  0x6e   : > { %1829 = vmatmul.mubr.bf16.gmra.mrb[36].mxu0 %v1999_v43 }
  0xf9   : > { %v1642_v45 = vpop.f32.mrb[0].mxu0 }
  0xfa   : > { %v1643_v47 = vpop.f32.mrb[1].mxu0 }
  0xfb   : > { %v1644_v48 = vadd.f32 %v1643_v47, %v1642_v45  ;;  %v1645_v49 = vpop.f32.mrb[2].mxu0  ;;  %v1682_v50 = vpop.f32.mrb[0].mxu1 }
  0xfc   : > { %v1646_v51 = vpop.f32.mrb[3].mxu0  ;;  %v1683_v54 = vpop.f32.mrb[1].mxu1 }
  0xfd   : > { %v1047_v52 = vadd.f32 %v1644_v48, %v1504_v46  ;;  %v1647_v53 = vadd.f32 %v1646_v51, %v1645_v49  ;;  %v1684_v55 = vadd.f32 %v1683_v54, %v1682_v50  ;;  %v1685_v56 = vpop.f32.mrb[2].mxu1 }
  0xfe   : > { %v1686_v58 = vpop.f32.mrb[3].mxu1 }
  0xff   : > { %v1050_v57 = vadd.f32 %v1647_v53, %v1504_v46  ;;  %v1112_v59 = vadd.f32 %v1684_v55, %v1047_v52  ;;  %v1687_v60 = vadd.f32 %v1686_v58, %v1685_v56 }
 0x101   : > { %v1115_v61 = vadd.f32 %v1687_v60, %v1050_v57  ;;  %v1648_v62 = vpop.f32.mrb[4].mxu0 }
 0x102   : > { %v1649_v63 = vpop.f32.mrb[5].mxu0 }
 0x103   : > { %v1650_v0 = vadd.f32 %v1649_v63, %v1648_v62  ;;  %v1651_v1 = vpop.f32.mrb[6].mxu0  ;;  %v1688_v4 = vpop.f32.mrb[4].mxu1 }
 0x104   : > { %v1652_v2 = vpop.f32.mrb[7].mxu0  ;;  %v1689_v6 = vpop.f32.mrb[5].mxu1 }
 0x105   : > { %v1055_v3 = vadd.f32 %v1650_v0, %v1504_v46  ;;  %v1653_v5 = vadd.f32 %v1652_v2, %v1651_v1  ;;  %v1690_v8 = vadd.f32 %v1689_v6, %v1688_v4  ;;  %v1691_v9 = vpop.f32.mrb[6].mxu1 }
 0x106   : > { %v1692_v10 = vpop.f32.mrb[7].mxu1 }
 0x107   : > { %v1058_v7 = vadd.f32 %v1653_v5, %v1504_v46  ;;  %v1120_v11 = vadd.f32 %v1690_v8, %v1055_v3  ;;  %v1693_v12 = vadd.f32 %v1692_v10, %v1691_v9 }
 0x109   : > { %v1123_v13 = vadd.f32 %v1693_v12, %v1058_v7  ;;  %v1654_v14 = vpop.f32.mrb[8].mxu0 }
 0x10a   : > { %v1655_v15 = vpop.f32.mrb[9].mxu0 }
 0x10b   : > { %v1656_v16 = vadd.f32 %v1655_v15, %v1654_v14  ;;  %v1657_v17 = vpop.f32.mrb[10].mxu0  ;;  %v1694_v18 = vpop.f32.mrb[8].mxu1 }
 0x10c   : > { %v1658_v19 = vpop.f32.mrb[11].mxu0  ;;  %v1695_v22 = vpop.f32.mrb[9].mxu1 }
 0x10d   : > { %v1063_v20 = vadd.f32 %v1656_v16, %v1504_v46  ;;  %v1659_v21 = vadd.f32 %v1658_v19, %v1657_v17  ;;  %v1696_v23 = vadd.f32 %v1695_v22, %v1694_v18  ;;  %v1697_v24 = vpop.f32.mrb[10].mxu1 }
 0x10e   : > { %v1698_v26 = vpop.f32.mrb[11].mxu1 }
 0x10f   : > { %v1066_v25 = vadd.f32 %v1659_v21, %v1504_v46  ;;  %v1128_v27 = vadd.f32 %v1696_v23, %v1063_v20  ;;  %v1699_v28 = vadd.f32 %v1698_v26, %v1697_v24 }
 0x111   : > { %v1131_v29 = vadd.f32 %v1699_v28, %v1066_v25  ;;  %v1660_v30 = vpop.f32.mrb[12].mxu0 }
 0x112   : > { %v1661_v31 = vpop.f32.mrb[13].mxu0 }
 0x113   : > { %v1662_v32 = vadd.f32 %v1661_v31, %v1660_v30  ;;  %v1663_v33 = vpop.f32.mrb[14].mxu0  ;;  %v1700_v34 = vpop.f32.mrb[12].mxu1 }
 0x114   : > { %v1664_v35 = vpop.f32.mrb[15].mxu0  ;;  %v1701_v38 = vpop.f32.mrb[13].mxu1 }
 0x115   : > { %v1071_v36 = vadd.f32 %v1662_v32, %v1504_v46  ;;  %v1665_v37 = vadd.f32 %v1664_v35, %v1663_v33  ;;  %v1702_v39 = vadd.f32 %v1701_v38, %v1700_v34  ;;  %v1703_v40 = vpop.f32.mrb[14].mxu1 }
 0x116   : > { %v1704_v42 = vpop.f32.mrb[15].mxu1 }
 0x117   : > { %v1074_v41 = vadd.f32 %v1665_v37, %v1504_v46  ;;  %v1136_v43 = vadd.f32 %v1702_v39, %v1071_v36  ;;  %v1705_v44 = vadd.f32 %v1704_v42, %v1703_v40 }
 0x119   : > { %v1139_v45 = vadd.f32 %v1705_v44, %v1074_v41  ;;  %v1722_v47 = vpop.f32.mrb[16].mxu0 }
 0x11a   : > { %v1723_v48 = vpop.f32.mrb[17].mxu0 }
 0x11b   : > { %v1724_v49 = vadd.f32 %v1723_v48, %v1722_v47  ;;  %v1725_v50 = vpop.f32.mrb[18].mxu0  ;;  %v1762_v53 = vpop.f32.mrb[16].mxu1 }
 0x11c   : > { %v1726_v51 = vpop.f32.mrb[19].mxu0  ;;  %v1763_v55 = vpop.f32.mrb[17].mxu1 }
 0x11d   : > { %v1177_v52 = vadd.f32 %v1724_v49, %v1112_v59  ;;  %v1727_v54 = vadd.f32 %v1726_v51, %v1725_v50  ;;  %v1764_v57 = vadd.f32 %v1763_v55, %v1762_v53  ;;  %v1765_v58 = vpop.f32.mrb[18].mxu1 }
 0x11e   : > { %v1766_v60 = vpop.f32.mrb[19].mxu1 }
 0x11f   : > { %v1180_v56 = vadd.f32 %v1727_v54, %v1115_v61  ;;  %v1767_v62 = vadd.f32 %v1766_v60, %v1765_v58  ;;  %v1242_v46 = vadd.f32 %v1764_v57, %v1177_v52 }
 0x121   : > { %v1728_v63 = vpop.f32.mrb[20].mxu0  ;;  %v1245_v3 = vadd.f32 %v1767_v62, %v1180_v56 }
 0x122   : > { %v1729_v0 = vpop.f32.mrb[21].mxu0 }
 0x123   : > { %v1730_v1 = vadd.f32 %v1729_v0, %v1728_v63  ;;  %v1731_v2 = vpop.f32.mrb[22].mxu0  ;;  %v1768_v6 = vpop.f32.mrb[20].mxu1 }
 0x124   : > { %v1732_v4 = vpop.f32.mrb[23].mxu0  ;;  %v1769_v8 = vpop.f32.mrb[21].mxu1 }
 0x125   : > { %v1185_v5 = vadd.f32 %v1730_v1, %v1120_v11  ;;  %v1733_v7 = vadd.f32 %v1732_v4, %v1731_v2  ;;  %v1770_v9 = vadd.f32 %v1769_v8, %v1768_v6  ;;  %v1771_v10 = vpop.f32.mrb[22].mxu1 }
 0x126   : > { %v1772_v12 = vpop.f32.mrb[23].mxu1 }
 0x127   : > { %v1188_v59 = vadd.f32 %v1733_v7, %v1123_v13  ;;  %v1773_v61 = vadd.f32 %v1772_v12, %v1771_v10  ;;  %v1250_v15 = vadd.f32 %v1770_v9, %v1185_v5  ;;  %v1346_v12 = vld [vmem:[%s2322_s3 + $0x8] sm:$0xff] }
 0x129   : > { %v1734_v14 = vpop.f32.mrb[24].mxu0  ;;  %v1253_v19 = vadd.f32 %v1773_v61, %v1188_v59 }
 0x12a   : > { %v1735_v16 = vpop.f32.mrb[25].mxu0 }
 0x12b   : > { %v1736_v17 = vadd.f32 %v1735_v16, %v1734_v14  ;;  %v1737_v18 = vpop.f32.mrb[26].mxu0  ;;  %v1774_v22 = vpop.f32.mrb[24].mxu1 }
 0x12c   : > { %v1738_v20 = vpop.f32.mrb[27].mxu0  ;;  %v1775_v24 = vpop.f32.mrb[25].mxu1 }
 0x12d   : > { %v1193_v21 = vadd.f32 %v1736_v17, %v1128_v27  ;;  %v1739_v23 = vadd.f32 %v1738_v20, %v1737_v18  ;;  %v1776_v25 = vadd.f32 %v1775_v24, %v1774_v22  ;;  %v1777_v26 = vpop.f32.mrb[26].mxu1 }
 0x12e   : > { %v1778_v28 = vpop.f32.mrb[27].mxu1 }
 0x12f   : > { %v1196_v11 = vadd.f32 %v1739_v23, %v1131_v29  ;;  %v1779_v13 = vadd.f32 %v1778_v28, %v1777_v26  ;;  %v1258_v31 = vadd.f32 %v1776_v25, %v1193_v21 }
 0x131   : > { %v1740_v30 = vpop.f32.mrb[28].mxu0  ;;  %v1261_v35 = vadd.f32 %v1779_v13, %v1196_v11 }
 0x132   : > { %v1741_v32 = vpop.f32.mrb[29].mxu0 }
 0x133   : > { %v1742_v33 = vadd.f32 %v1741_v32, %v1740_v30  ;;  %v1743_v34 = vpop.f32.mrb[30].mxu0  ;;  %v1780_v38 = vpop.f32.mrb[28].mxu1 }
 0x134   : > { %v1744_v36 = vpop.f32.mrb[31].mxu0  ;;  %v1781_v40 = vpop.f32.mrb[29].mxu1 }
 0x135   : > { %v1201_v37 = vadd.f32 %v1742_v33, %v1136_v43  ;;  %v1745_v39 = vadd.f32 %v1744_v36, %v1743_v34  ;;  %v1782_v41 = vadd.f32 %v1781_v40, %v1780_v38  ;;  %v1783_v42 = vpop.f32.mrb[30].mxu1 }
 0x136   : > { %v1784_v44 = vpop.f32.mrb[31].mxu1 }
 0x137   : > { %v1204_v27 = vadd.f32 %v1745_v39, %v1139_v45  ;;  %v1785_v29 = vadd.f32 %v1784_v44, %v1783_v42  ;;  %v1266_v47 = vadd.f32 %v1782_v41, %v1201_v37 }
 0x139   : > { %v1826_v48 = vpop.f32.mrb[32].mxu0  ;;  %v1269_v51 = vadd.f32 %v1785_v29, %v1204_v27 }
 0x13a   : > { %v1315_v49 = vadd.f32 %v1826_v48, %v1250_v15  ;;  %v1306_v50 = vpop.f32.mrb[33].mxu0 }
 0x13b   : > { %v1307_v52 = vadd.f32 %v1306_v50, %v1242_v46  ;;  %v1827_v53 = vpop.f32.mrb[34].mxu0 }
 0x13c   : > { %v1318_v54 = vadd.f32 %v1827_v53, %v1253_v19  ;;  %v1309_v55 = vpop.f32.mrb[35].mxu0  ;;  %v1339_v57 = vmax.f32 %v1315_v49, 0.0 }
 0x13d   : > { %v1310_v56 = vadd.f32 %v1309_v55, %v1245_v3  ;;  %v1337_v58 = vmax.f32 %v1307_v52, 0.0 }
 0x13e   : > { %v1340_v43 = vmax.f32 %v1318_v54, 0.0 }
 0x13f   : > { %v1338_v60 = vmax.f32 %v1310_v56, 0.0 }
 0x140   : > { %v1855_v62 = vpack.c.bf16 %v1340_v43, %v1339_v57 }
 0x141   : > { %v1851_v45 = vpack.c.bf16 %v1338_v60, %v1337_v58  ;;  %v1830_v63 = vpop.f32.mrb[36].mxu0 }
 0x142   : > { %v1331_v0 = vadd.f32 %v1830_v63, %v1266_v47  ;;  %v1322_v1 = vpop.f32.mrb[37].mxu0 }
 0x143   : > { %v1323_v2 = vadd.f32 %v1322_v1, %v1258_v31  ;;  %v1831_v4 = vpop.f32.mrb[38].mxu0  ;;  %1852 = vmatprep.subr.bf16.mxu1 %v1851_v45 }
 0x144   : > { %v1334_v5 = vadd.f32 %v1831_v4, %v1269_v51  ;;  %v1325_v6 = vpop.f32.mrb[39].mxu0  ;;  %1854 = vmatpush3.bf16.msra.mxu1 %v1851_v45  ;;  %v1343_v7 = vmax.f32 %v1331_v0, 0.0 }
 0x145   : > { %v1326_v46 = vadd.f32 %v1325_v6, %v1261_v35  ;;  %1856 = vmatprep.subr.bf16.mxu1 %v1855_v62  ;;  %v1341_v8 = vmax.f32 %v1323_v2, 0.0 }
 0x146   : > { %v1344_v3 = vmax.f32 %v1334_v5, 0.0 }
 0x147   : > { %v1342_v59 = vmax.f32 %v1326_v46, 0.0 }
 0x148   : > { %v1863_v9 = vpack.c.bf16 %v1344_v3, %v1343_v7  ;;  %1858 = vmatpush3.bf16.msra.mxu1 %v1855_v62 }
 0x149   : > { %v1859_v10 = vpack.c.bf16 %v1342_v59, %v1341_v8 }
 0x14b   : > { %1860 = vmatprep.subr.bf16.mxu1 %v1859_v10 }
 0x14c   : > { %1862 = vmatpush3.bf16.msra.mxu1 %v1859_v10 }
 0x14d   : > { %1864 = vmatprep.subr.bf16.mxu1 %v1863_v9 }
 0x150   : > { %1866 = vmatpush3.bf16.msra.mxu1 %v1863_v9 }
 0x153   : > { %1849 = vmatmul.mubr.msk.f32.vlgmr.msra.gmra.mrb[32].mxu1 %vm1347_vm0, %v1346_v12 }
 0x226   : > { %v1850_v61 = vpop.f32.mrb[32].mxu1 }
 0x227   : > { %v1420_v14 = vpop.f32.mrb[33].mxu1 }
 0x228   : > { %v1624_v15 = vpack.c.bf16 %v1850_v61, %v1420_v14 }
 0x22a   : > { %1625 = vst [vmem:[%s202_s9] sm:$0xff] %v1624_v15  }
 0x22b PF: > { %s14_s15 = sadd.s32 1, %s2006_s15  }
 0x22c   : > { %p11_p5 = scmp.ge.s32.totalorder %s14_s15, 4  }
 0x22e   :  { %13 = sbr.rel (!%p11_p5) target bundleno = 1 (0x1), region = 66 }

// kernel: mshe_b_forward.9
= control target key start
LH: loop header
LB: loop body
LE: loop exit
PB: predicated region body
PF: predicated region fallthrough
CT: control target
= control target key end

     0   :  { %10 = vsyncpa [#allocation3], 0  ;;  %s932_s0 = inlined_call_operand.vmem [shape: bf16[32,128], index: 0, kind: input, shape index: {}]   ;;  %s933_s1 = inlined_call_operand.vmem [shape: bf16[128,128], index: 1, kind: input, shape index: {}]   ;;  %s934_s2 = inlined_call_operand.vmem [shape: f32[1,128], index: 2, kind: input, shape index: {}]   ;;  %s935_s3 = inlined_call_operand.vmem [shape: bf16[128,128], index: 3, kind: input, shape index: {}]   ;;  %s936_s4 = inlined_call_operand.vmem [shape: f32[1,128], index: 4, kind: input, shape index: {}]   ;;  %s937_s5 = inlined_call_operand.hbm [shape: f32[2,1,128], index: 5, kind: output, shape index: {}]  }
   0x1   :  { %12 = vsyncpa [#allocation3 + $0x1], 0  ;;  %s761_s18 = smov 0   ;;  %s763_s19 = smov 0  }
   0x2   :  { %s765_s20 = smov 0   ;;  %s767_s21 = smov 0  }
   0x3 LB: > { %s782_s22 = sadd.s32 4294967295, %s726_s21   ;;  %s520_s23 = sadd.s32 4294967294, %s726_s21   ;;  %s726_s21 = sphi %s767_s21, %s943_s21   ;;  %s722_s20 = sphi %s765_s20, %s942_s20   ;;  %s718_s19 = sphi %s763_s19, %s941_s19   ;;  %s714_s18 = sphi %s761_s18, %s940_s18  }
   0x4   : > { %s786_s24 = sadd.s32 1, %s726_s21   ;;  %s135_s25 = sadd.s32 1, %s722_s20 }
   0x5   : > { %s132_s26 = ssub.s32 %s726_s21, %s786_s24  ;;  %p145_p0 = scmp.ne.s32.totalorder %s722_s20, %s718_s19 }
   0x6   : > { %p133_p1 = scmp.eq.s32.totalorder %s132_s26, 0  ;;  %p146_p2 = scmp.eq.s32.totalorder %s782_s22, 1 }
   0x7   : > { %p151_p3 = scmp.ne.s32.totalorder %s718_s19, %s714_s18  ;;  %p152_p4 = scmp.eq.s32.totalorder %s520_s23, 1 }
   0x8   : > { %s797_s27 = scalar_select %p133_p1, %s722_s20, %s135_s25  }
   0x9   : > { %p799_p5 = por %p146_p2, %p145_p0  ;;  %p803_p6 = por %p152_p4, %p151_p3 }
   0xa   : > { %p523_p7 = scmp.ge.s32.totalorder %s726_s21, 1  ;;  %p191_p8 = scmp.lt.s32.totalorder %s726_s21, 3 }
   0xc   : > { %p192_p9 = pnand %p523_p7, %p191_p8 }
   0xd   : > { %v648_v0 = vld [vmem:[%s933_s1] sm:$0xff] (!%p192_p9)   ;;  %v728_v1 = vmov (!%p192_p9), 0.0   ;;  %v649_v2 = vld [vmem:[%s933_s1 + $0x8] sm:$0xff] (!%p192_p9)   ;;  %vm729_vm0 = vmmov (!%p192_p9), 0   ;;  %s524_s9 = sshll.u32 (!%p192_p9), %s782_s22, 1  ;;  %v650_v3 = vld [vmem:[%s933_s1 + $0x10] sm:$0xff] (!%p192_p9)  }
   0xe   : > { %195 = sbr.rel (%p192_p9) target bundleno = 492 (0x1ec), region = 40  ;;  %567 = vmatprep.subr.bf16.mxu0 (!%p192_p9), %v728_v1  ;;  %587 = vmatprep.subr.bf16.mxu1 (!%p192_p9), %v728_v1  ;;  %p219_p10 = scmp.lt.s32.totalorder (!%p192_p9), %s524_s9, 3  ;;  %v651_v4 = vld [vmem:[%s933_s1 + $0x18] sm:$0xff] (!%p192_p9)   ;;  %v656_v5 = vld [vmem:[%s935_s3] sm:$0xff] (!%p192_p9)   ;;  %v657_v9 = vld [vmem:[%s935_s3 + $0x8] sm:$0xff] (!%p192_p9)  }
   0xf   : > { %568 = vmatpush3.bf16.msra.mxu0 (!%p192_p9), %v648_v0  ;;  %583 = vmatprep.mubr.msk.bf16.mxu0 (!%p192_p9), %vm729_vm0, %v728_v1  ;;  %v652_v11 = vld [vmem:[%s933_s1 + $0x20] sm:$0xff] (!%p192_p9)   ;;  %v658_v13 = vld [vmem:[%s935_s3 + $0x10] sm:$0xff] (!%p192_p9)   ;;  %v653_v15 = vld [vmem:[%s933_s1 + $0x28] sm:$0xff] (!%p192_p9)   ;;  %s542_s15 = sshll.u32 (!%p192_p9), %s782_s22, 4  ;;  %s730_s6 = smov (!%p192_p9), [#allocation2]  }
  0x10   : > { %569 = vmatprep.subr.bf16.mxu0 (!%p192_p9), %v728_v1  ;;  %603 = vmatprep.mubr.msk.bf16.mxu1 (!%p192_p9), %vm729_vm0, %v728_v1  ;;  %v659_v17 = vld [vmem:[%s935_s3 + $0x18] sm:$0xff] (!%p192_p9)   ;;  %v654_v19 = vld [vmem:[%s933_s1 + $0x30] sm:$0xff] (!%p192_p9)   ;;  %v660_v21 = vld [vmem:[%s935_s3 + $0x20] sm:$0xff] (!%p192_p9)   ;;  %s890_s26 = scalar_lea.hbm (!%p192_p9), %s937_s5, %s542_s15  ;;  %s668_s7 = sshll.u32 (!%p192_p9), %s730_s6, 4  ;;  %s669_s7 = int_to_ptr.vmem [resolvable:$false] %s668_s7 }
  0x11   : > { %588 = vmatpush3.bf16.msra.mxu1 (!%p192_p9), %v656_v5  ;;  %v655_v23 = vld [vmem:[%s933_s1 + $0x38] sm:$0xff] (!%p192_p9)   ;;  %v661_v25 = vld [vmem:[%s935_s3 + $0x28] sm:$0xff] (!%p192_p9)   ;;  %v662_v27 = vld [vmem:[%s935_s3 + $0x30] sm:$0xff] (!%p192_p9)   ;;  %s670_s8 = scalar_lea.vmem (!%p192_p9), %s669_s7, 32 }
  0x12   : > { %589 = vmatprep.subr.bf16.mxu1 (!%p192_p9), %v728_v1  ;;  %v663_v28 = vld [vmem:[%s935_s3 + $0x38] sm:$0xff] (!%p192_p9)   ;;  %v255_v29 = vld [vmem:[%s934_s2] sm:$0x1] (!%p192_p9) }
  0x13   : > { %570 = vmatpush3.bf16.msra.mxu0 (!%p192_p9), %v649_v2  ;;  %v362_v37 = vld [vmem:[%s936_s4] sm:$0x1] (!%p192_p9) }
  0x14   : > { %571 = vmatprep.subr.bf16.mxu0 (!%p192_p9), %v728_v1 }
  0x15   : > { %s945_s9 = smov (!%p219_p10, %s524_s9), 3  ;;  %590 = vmatpush3.bf16.msra.mxu1 %v657_v9 }
  0x16   : > { %s525_s12 = sshll.u32 %s945_s9, 2  ;;  %591 = vmatprep.subr.bf16.mxu1 %v728_v1 }
  0x17   : > { %s222_s17 = scalar_lea.vmem %s932_s0, %s525_s12  ;;  %572 = vmatpush3.bf16.msra.mxu0 %v650_v3  ;;  %s216_s12 = sand.u32 1, %s718_s19  }
  0x18   : > { %v546_v6 = vld [vmem:[%s222_s17] sm:$0xff]   ;;  %573 = vmatprep.subr.bf16.mxu0 %v728_v1  ;;  %s217_s16 = scalar_lea.vmem [#allocation2], %s216_s12  ;;  %s453_s30 = scalar_lea.sflag [#allocation3], %s216_s12 }
  0x19   : > { %v547_v7 = vunpack.c.l.bf16 %v546_v6  ;;  %v548_v8 = vunpack.c.h.bf16 %v546_v6  ;;  %592 = vmatpush3.bf16.msra.mxu1 %v658_v13  ;;  %s465_s17 = sshll.u32 %s217_s16, 4  ;;  %s892_s17 = int_to_ptr.vmem [resolvable:$true] %s465_s17 }
  0x1a   : > { %593 = vmatprep.subr.bf16.mxu1 %v728_v1  ;;  %s664_s22 = scalar_lea.vmem %s892_s17, 16  ;;  %p671_p0 = scmp.lt.s32.totalorder %s892_s17, %s669_s7 }
  0x1b   : > { %v229_v10 = vadd.f32 %v548_v8, %v547_v7  ;;  %574 = vmatpush3.bf16.msra.mxu0 %v651_v4  ;;  %p665_p11 = scmp.ne.s32.totalorder %s892_s17, %s664_s22  ;;  %p672_p1 = scmp.lt.s32.totalorder %s670_s8, %s664_s22 }
  0x1c   : > { %575 = vmatprep.subr.bf16.mxu0 %v728_v1 }
  0x1d   : > { %v230_v12 = vrot.slane %v229_v10, 4  ;;  %594 = vmatpush3.bf16.msra.mxu1 %v659_v17  ;;  %p666_p12 = pnand %p665_p11, %p799_p5  ;;  %p673_p2 = por %p672_p1, %p671_p0 }
  0x1e   : > { %595 = vmatprep.subr.bf16.mxu1 %v728_v1 }
  0x1f   : > { %v231_v14 = vadd.f32 %v230_v12, %v229_v10  ;;  %576 = vmatpush3.bf16.msra.mxu0 %v652_v11  ;;  %p667_p13 = pneg %p666_p12 }
  0x20   : > { %577 = vmatprep.subr.bf16.mxu0 %v728_v1 }
  0x21   : > { %v232_v16 = vrot.slane %v231_v14, 2  ;;  %596 = vmatpush3.bf16.msra.mxu1 %v660_v21  ;;  %p674_p3 = pnand %p673_p2, %p667_p13 }
  0x22   : > { %597 = vmatprep.subr.bf16.mxu1 %v728_v1 }
  0x23   : > { %v233_v18 = vadd.f32 %v232_v16, %v231_v14  ;;  %578 = vmatpush3.bf16.msra.mxu0 %v653_v15 }
  0x24   : > { %579 = vmatprep.subr.bf16.mxu0 %v728_v1 }
  0x25   : > { %v234_v20 = vrot.slane %v233_v18, 1  ;;  %598 = vmatpush3.bf16.msra.mxu1 %v661_v25 }
  0x26   : > { %599 = vmatprep.subr.bf16.mxu1 %v728_v1 }
  0x27   : > { %v235_v22 = vadd.f32 %v234_v20, %v233_v18  ;;  %580 = vmatpush3.bf16.msra.mxu0 %v654_v19 }
  0x28   : > { %581 = vmatprep.subr.bf16.mxu0 %v728_v1 }
  0x29   : > { %v237_v24 = vmul.f32 0.0625, %v235_v22  ;;  %600 = vmatpush3.bf16.msra.mxu1 %v662_v27 }
  0x2a   : > { %601 = vmatprep.subr.bf16.mxu1 %v728_v1 }
  0x2b   : > { %v238_v26 = vpack.c.bf16 %v237_v24, %v237_v24  ;;  %582 = vmatpush3.bf16.msra.mxu0 %v655_v23 }
  0x2d   : > { %602 = vmatpush3.bf16.msra.mxu1 %v663_v28 }
  0x2e   : > { %584 = vmatmul.mubr.bf16.vlgmr.msra.gmra.mrb[0].mxu0 %v238_v26 }
 0x101   : > { %v338_v30 = vpop.f32.mrb[0].mxu0 }
 0x102   : > { %v339_v31 = vadd.f32 %v338_v30, %v255_v29  ;;  %v585_v32 = vpop.f32.mrb[1].mxu0 }
 0x103   : > { %v341_v33 = vpop.f32.mrb[2].mxu0 }
 0x104   : > { %v344_v34 = vmax.f32 %v339_v31, 0.0  ;;  %v586_v35 = vpop.f32.mrb[3].mxu0 }
 0x106   : > { %v345_v36 = vpack.c.bf16 %v344_v34, %v344_v34 }
 0x108   : > { %604 = vmatmul.mubr.bf16.vlgmr.msra.gmra.mrb[0].mxu1 %v345_v36 }
 0x1db   : > { %v445_v38 = vpop.f32.mrb[0].mxu1 }
 0x1dc   : > { %v446_v39 = vadd.f32 %v445_v38, %v362_v37  ;;  %v605_v40 = vpop.f32.mrb[1].mxu1 }
 0x1dd   : > { %v448_v41 = vpop.f32.mrb[2].mxu1 }
 0x1de   : > { %451 = vst [vmem:[%s217_s16] sm:$0x1] %v446_v39  ;;  %v606_v42 = vpop.f32.mrb[3].mxu1 }
 0x1df   : > { %677 = shalt.err (!%p674_p3)
}
 0x1e0   : > { %s678_s9 = scalar_lea.hbm %s890_s26, 16  ;;  %s682_s12 = scalar_lea.hbm %s937_s5, 32 }
 0x1e1   : > { %p679_p4 = scmp.ne.s32.totalorder %s890_s26, %s678_s9  ;;  %p683_p9 = scmp.lt.u32.totalorder %s890_s26, %s937_s5 }
 0x1e2   : > { %p684_p10 = scmp.lt.u32.totalorder %s682_s12, %s678_s9  ;;  %p686_p12 = scmp.lt.u32.totalorder %s678_s9, %s890_s26 }
 0x1e3   : > { %p680_p7 = pnand %p679_p4, %p799_p5 }
 0x1e4   : > { %p685_p11 = por %p684_p10, %p683_p9 }
 0x1e5   : > { %p681_p8 = pneg %p680_p7 }
 0x1e6   : > { %p687_p13 = por %p686_p12, %p685_p11 }
 0x1e8   : > { %p688_p0 = pnand %p687_p13, %p681_p8 }
 0x1ea   : > { %691 = shalt.err (!%p688_p0)
}
 0x1eb   : > { %607 = dma.vmem_to_hbm [thread:$0]  (%p799_p5), %s892_s17, 16, %s890_s26, %s453_s30  }
 0x1ec PF: > { %p613_p1 = scmp.ge.s32.totalorder %s726_s21, 2  ;;  %s477_s15 = sand.u32 1, %s714_s18  }
 0x1ed   : > { %s478_s16 = scalar_lea.sflag [#allocation3], %s477_s15 }
 0x1ee   : > { %p610_p2 = pnand %p613_p1, %p803_p6 }
 0x1f0   : > { %709 = dma.done.wait (!%p610_p2), %s478_s16, 16  }
 0x1f1   : > { %711 = vsyncadd (!%p610_p2), %s478_s16, 4294967280  ;;  %p15_p3 = scmp.ge.s32.totalorder %s786_s24, 4   ;;  %s940_s18 = smov %s718_s19 }
 0x1f2   : > { %s941_s19 = smov %s722_s20  ;;  %s942_s20 = smov %s797_s27 }
 0x1f3   : > { %s943_s21 = smov %s786_s24  ;;  %17 = sbr.rel (!%p15_p3) target bundleno = 3 (0x3), region = 75 }
 0x1fa   :  { %482 = vsyncpa [#allocation3], 1 }
 0x1fb   :  { %484 = vsyncpa [#allocation3 + $0x1], 1 }

// kernel: mshe_b_forward.7
= control target key start
LH: loop header
LB: loop body
LE: loop exit
PB: predicated region body
PF: predicated region fallthrough
CT: control target
= control target key end

     0   :  { %s1435_s12 = smov 0   ;;  %s1688_s0 = inlined_call_operand.vmem [shape: bf16[32,1152], index: 0, kind: input, shape index: {}]   ;;  %s1689_s1 = inlined_call_operand.vmem [shape: bf16[1152,128], index: 1, kind: input, shape index: {}]   ;;  %s1690_s2 = inlined_call_operand.vmem [shape: f32[1,128], index: 2, kind: input, shape index: {}]   ;;  %s1691_s3 = inlined_call_operand.vmem [shape: bf16[32,128], index: 3, kind: output, shape index: {}]  }
   0x1 LB: > { %s1090_s13 = sadd.s32 4294967295, %s1411_s12   ;;  %p1094_p0 = scmp.ge.s32.totalorder %s1411_s12, 1  ;;  %s1411_s12 = sphi %s1435_s12, %s13_s12  }
   0x2   : > { %p139_p1 = scmp.lt.s32.totalorder %s1411_s12, 3 }
   0x4   : > { %p140_p2 = pnand %p1094_p0, %p139_p1 }
   0x5   : > { %v1320_v0 = vld [vmem:[%s1689_s1 + $0x40] sm:$0xff] (!%p140_p2)   ;;  %v1324_v4 = vld [vmem:[%s1689_s1 + $0x48] sm:$0xff] (!%p140_p2)   ;;  %v1328_v8 = vld [vmem:[%s1689_s1 + $0x50] sm:$0xff] (!%p140_p2)   ;;  %s1095_s17 = sshll.u32 (!%p140_p2), %s1090_s13, 1  ;;  %vm1414_vm0 = vmmov (!%p140_p2), 0  }
   0x6   : > { %143 = sbr.rel (%p140_p2) target bundleno = 323 (0x143), region = 32  ;;  %v1321_v1 = vld [vmem:[%s1689_s1] sm:$0xff] (!%p140_p2)   ;;  %1192 = vmatprep.subr.bf16.mxu0 (!%p140_p2), %v1320_v0  ;;  %v1325_v5 = vld [vmem:[%s1689_s1 + $0x8] sm:$0xff] (!%p140_p2)   ;;  %v1329_v9 = vld [vmem:[%s1689_s1 + $0x10] sm:$0xff] (!%p140_p2)   ;;  %p165_p3 = scmp.lt.s32.totalorder (!%p140_p2), %s1095_s17, 3 }
   0x7   : > { %v1322_v2 = vld [vmem:[%s1689_s1 + $0xc0] sm:$0xff] (!%p140_p2)   ;;  %1193 = vmatpush3.bf16.msra.mxu0 (!%p140_p2), %v1321_v1  ;;  %v1326_v6 = vld [vmem:[%s1689_s1 + $0xc8] sm:$0xff] (!%p140_p2)   ;;  %v1330_v10 = vld [vmem:[%s1689_s1 + $0xd0] sm:$0xff] (!%p140_p2)  }
   0x8   : > { %v1323_v3 = vld [vmem:[%s1689_s1 + $0x80] sm:$0xff] (!%p140_p2)   ;;  %1214 = vmatprep.subr.bf16.mxu1 (!%p140_p2), %v1322_v2  ;;  %1194 = vmatprep.subr.bf16.mxu0 (!%p140_p2), %v1324_v4  ;;  %v1327_v7 = vld [vmem:[%s1689_s1 + $0x88] sm:$0xff] (!%p140_p2)   ;;  %v1331_v11 = vld [vmem:[%s1689_s1 + $0x90] sm:$0xff] (!%p140_p2)  }
   0x9   : > { %1215 = vmatpush3.bf16.msra.mxu1 (!%p140_p2), %v1323_v3  ;;  %v1332_v12 = vld [vmem:[%s1689_s1 + $0x58] sm:$0xff] (!%p140_p2)   ;;  %v1336_v16 = vld [vmem:[%s1689_s1 + $0x60] sm:$0xff] (!%p140_p2)   ;;  %v1340_v20 = vld [vmem:[%s1689_s1 + $0x68] sm:$0xff] (!%p140_p2)  }
   0xa   : > { %1216 = vmatprep.subr.bf16.mxu1 (!%p140_p2), %v1326_v6  ;;  %v1333_v13 = vld [vmem:[%s1689_s1 + $0x18] sm:$0xff] (!%p140_p2)   ;;  %v1337_v17 = vld [vmem:[%s1689_s1 + $0x20] sm:$0xff] (!%p140_p2)   ;;  %v1341_v21 = vld [vmem:[%s1689_s1 + $0x28] sm:$0xff] (!%p140_p2)   ;;  %v1413_v6 = vmov (!%p140_p2), 0.0  }
   0xb   : > { %1195 = vmatpush3.bf16.msra.mxu0 (!%p140_p2), %v1325_v5  ;;  %v1334_v14 = vld [vmem:[%s1689_s1 + $0xd8] sm:$0xff] (!%p140_p2)   ;;  %v1338_v18 = vld [vmem:[%s1689_s1 + $0xe0] sm:$0xff] (!%p140_p2)   ;;  %v1342_v22 = vld [vmem:[%s1689_s1 + $0xe8] sm:$0xff] (!%p140_p2)  }
   0xc   : > { %1196 = vmatprep.subr.bf16.mxu0 (!%p140_p2), %v1328_v8  ;;  %v1335_v15 = vld [vmem:[%s1689_s1 + $0x98] sm:$0xff] (!%p140_p2)   ;;  %v1339_v19 = vld [vmem:[%s1689_s1 + $0xa0] sm:$0xff] (!%p140_p2)   ;;  %v1343_v23 = vld [vmem:[%s1689_s1 + $0xa8] sm:$0xff] (!%p140_p2)  }
   0xd   : > { %1217 = vmatpush3.bf16.msra.mxu1 %v1327_v7  ;;  %s1693_s17 = smov (!%p165_p3, %s1095_s17), 3  ;;  %v1344_v24 = vld [vmem:[%s1689_s1 + $0x70] sm:$0xff]   ;;  %v1348_v28 = vld [vmem:[%s1689_s1 + $0x78] sm:$0xff]   ;;  %v1355_v34 = vld [vmem:[%s1689_s1 + $0x140] sm:$0xff]  }
   0xe   : > { %1218 = vmatprep.subr.bf16.mxu1 %v1330_v10  ;;  %s1309_s14 = smul.u32 36, %s1693_s17  ;;  %v1345_v25 = vld [vmem:[%s1689_s1 + $0x30] sm:$0xff]   ;;  %v1349_v29 = vld [vmem:[%s1689_s1 + $0x38] sm:$0xff]   ;;  %v1359_v37 = vld [vmem:[%s1689_s1 + $0x100] sm:$0xff]  }
   0xf   : > { %1197 = vmatpush3.bf16.msra.mxu0 %v1329_v9  ;;  %v1346_v26 = vld [vmem:[%s1689_s1 + $0xf0] sm:$0xff]   ;;  %v1350_v30 = vld [vmem:[%s1689_s1 + $0xf8] sm:$0xff]   ;;  %v1360_v38 = vld [vmem:[%s1689_s1 + $0x1c0] sm:$0xff]  }
  0x10   : > { %1198 = vmatprep.subr.bf16.mxu0 %v1332_v12  ;;  %v1347_v27 = vld [vmem:[%s1689_s1 + $0xb0] sm:$0xff]   ;;  %s1538_s13 = scalar_lea.vmem %s1688_s0, %s1309_s14  ;;  %v1354_v33 = vld [vmem:[%s1689_s1 + $0xb8] sm:$0xff]   ;;  %v1361_v39 = vld [vmem:[%s1689_s1 + $0x180] sm:$0xff]  }
  0x11   : > { %1219 = vmatpush3.bf16.msra.mxu1 %v1331_v11  ;;  %v1351_v31 = vld [vmem:[%s1538_s13] ss:$36 sps:$4 sm:$0xff]   ;;  %v1356_v35 = vld [vmem:[%s1538_s13 + $0x8] ss:$36 sps:$4 sm:$0xff]   ;;  %v1366_v44 = vld [vmem:[%s1689_s1 + $0x150] sm:$0xff]  }
  0x12   : > { %1220 = vmatprep.subr.bf16.mxu1 %v1334_v14  ;;  %v1353_v32 = vld [vmem:[%s1538_s13 + $0x4] ss:$36 sps:$4 sm:$0xff]   ;;  %v1358_v36 = vld [vmem:[%s1538_s13 + $0xc] ss:$36 sps:$4 sm:$0xff]   ;;  %v1370_v48 = vld [vmem:[%s1689_s1 + $0x158] sm:$0xff]  }
  0x13   : > { %1199 = vmatpush3.bf16.msra.mxu0 %v1333_v13  ;;  %849 = vmatprep.mubr.bf16.mxu0 %v1353_v32  ;;  %v1362_v40 = vld [vmem:[%s1689_s1 + $0x148] sm:$0xff]   ;;  %v1367_v45 = vld [vmem:[%s1689_s1 + $0x110] sm:$0xff]   ;;  %v1371_v49 = vld [vmem:[%s1689_s1 + $0x118] sm:$0xff]  }
  0x14   : > { %1200 = vmatprep.subr.bf16.mxu0 %v1336_v16  ;;  %890 = vmatprep.mubr.bf16.mxu1 %v1358_v36  ;;  %v1363_v41 = vld [vmem:[%s1689_s1 + $0x108] sm:$0xff]   ;;  %v1368_v46 = vld [vmem:[%s1689_s1 + $0x1d0] sm:$0xff]   ;;  %v1372_v50 = vld [vmem:[%s1689_s1 + $0x1d8] sm:$0xff]  }
  0x15   : > { %1221 = vmatpush3.bf16.msra.mxu1 %v1335_v15  ;;  %v1364_v42 = vld [vmem:[%s1689_s1 + $0x1c8] sm:$0xff]   ;;  %v1369_v47 = vld [vmem:[%s1689_s1 + $0x190] sm:$0xff]   ;;  %v1373_v51 = vld [vmem:[%s1689_s1 + $0x198] sm:$0xff]  }
  0x16   : > { %1222 = vmatprep.subr.bf16.mxu1 %v1338_v18  ;;  %v1365_v43 = vld [vmem:[%s1689_s1 + $0x188] sm:$0xff]   ;;  %v1374_v52 = vld [vmem:[%s1689_s1 + $0x160] sm:$0xff]   ;;  %v1382_v60 = vld [vmem:[%s1689_s1 + $0x170] sm:$0xff]  }
  0x17   : > { %1201 = vmatpush3.bf16.msra.mxu0 %v1337_v17  ;;  %v1375_v53 = vld [vmem:[%s1689_s1 + $0x120] sm:$0xff]   ;;  %v1378_v56 = vld [vmem:[%s1689_s1 + $0x168] sm:$0xff]   ;;  %v1383_v61 = vld [vmem:[%s1689_s1 + $0x130] sm:$0xff]  }
  0x18   : > { %1202 = vmatprep.subr.bf16.mxu0 %v1340_v20  ;;  %v1376_v54 = vld [vmem:[%s1689_s1 + $0x1e0] sm:$0xff]   ;;  %v1379_v57 = vld [vmem:[%s1689_s1 + $0x128] sm:$0xff]   ;;  %v1384_v62 = vld [vmem:[%s1689_s1 + $0x1f0] sm:$0xff]  }
  0x19   : > { %1223 = vmatpush3.bf16.msra.mxu1 %v1339_v19  ;;  %v1377_v55 = vld [vmem:[%s1689_s1 + $0x1a0] sm:$0xff]   ;;  %v1380_v58 = vld [vmem:[%s1689_s1 + $0x1e8] sm:$0xff]   ;;  %v1385_v63 = vld [vmem:[%s1689_s1 + $0x1b0] sm:$0xff]  }
  0x1a   : > { %1224 = vmatprep.subr.bf16.mxu1 %v1342_v22  ;;  %v1381_v59 = vld [vmem:[%s1689_s1 + $0x1a8] sm:$0xff]   ;;  %v1386_v0 = vld [vmem:[%s1689_s1 + $0x178] sm:$0xff]   ;;  %v1389_v3 = vld [vmem:[%s1538_s13 + $0x10] ss:$36 sps:$4 sm:$0xff]  }
  0x1b   : > { %1203 = vmatpush3.bf16.msra.mxu0 %v1341_v21  ;;  %v1387_v1 = vld [vmem:[%s1689_s1 + $0x138] sm:$0xff]   ;;  %v1396_v9 = vld [vmem:[%s1689_s1 + $0x200] sm:$0xff]   ;;  %v1397_v10 = vld [vmem:[%s1689_s1 + $0x208] sm:$0xff]  }
  0x1c   : > { %1204 = vmatprep.subr.bf16.mxu0 %v1344_v24  ;;  %v1388_v2 = vld [vmem:[%s1689_s1 + $0x1f8] sm:$0xff]   ;;  %v1398_v11 = vld [vmem:[%s1689_s1 + $0x210] sm:$0xff]   ;;  %v1400_v13 = vld [vmem:[%s1689_s1 + $0x220] sm:$0xff]  }
  0x1d   : > { %1225 = vmatpush3.bf16.msra.mxu1 %v1343_v23  ;;  %v1391_v4 = vld [vmem:[%s1538_s13 + $0x14] ss:$36 sps:$4 sm:$0xff]   ;;  %v1395_v8 = vld [vmem:[%s1538_s13 + $0x1c] ss:$36 sps:$4 sm:$0xff]   ;;  %v1401_v14 = vld [vmem:[%s1689_s1 + $0x228] sm:$0xff]  }
  0x1e   : > { %1226 = vmatprep.subr.bf16.mxu1 %v1346_v26  ;;  %v1392_v5 = vld [vmem:[%s1689_s1 + $0x1b8] sm:$0xff]   ;;  %v1402_v15 = vld [vmem:[%s1689_s1 + $0x230] sm:$0xff]   ;;  %v1404_v17 = vld [vmem:[%s1538_s13 + $0x20] ss:$36 sps:$4 sm:$0xff]  }
  0x1f   : > { %1205 = vmatpush3.bf16.msra.mxu0 %v1345_v25  ;;  %v1393_v7 = vld [vmem:[%s1538_s13 + $0x18] ss:$36 sps:$4 sm:$0xff]   ;;  %v1099_v19 = vld [vmem:[%s1690_s2] ss:$0 sm:$0xff]  ;;  %s1098_s13 = sshll.u32 %s1693_s17, 2 }
  0x20   : > { %1206 = vmatprep.subr.bf16.mxu0 %v1348_v28  ;;  %v1399_v12 = vld [vmem:[%s1689_s1 + $0x218] sm:$0xff]   ;;  %s175_s20 = scalar_lea.vmem %s1691_s3, %s1098_s13 }
  0x21   : > { %1227 = vmatpush3.bf16.msra.mxu1 %v1347_v27  ;;  %v1403_v16 = vld [vmem:[%s1689_s1 + $0x238] sm:$0xff]  }
  0x22   : > { %1228 = vmatprep.subr.bf16.mxu1 %v1350_v30 }
  0x23   : > { %1207 = vmatpush3.bf16.msra.mxu0 %v1349_v29 }
  0x24   : > { %1236 = vmatprep.subr.bf16.mxu0 %v1355_v34 }
  0x25   : > { %1229 = vmatpush3.bf16.msra.mxu1 %v1354_v33 }
  0x26   : > { %850 = vmatmul.mubr.bf16.vlgmr.msra.gmra.mrb[0].mxu0 %v1351_v31  ;;  %1258 = vmatprep.subr.bf16.mxu1 %v1360_v38 }
  0x27   : > { %1237 = vmatpush3.bf16.msra.mxu0 %v1359_v37  ;;  %931 = vmatprep.mubr.bf16.mxu0 %v1391_v4 }
  0x28   : > { %891 = vmatmul.mubr.bf16.vlgmr.msra.gmra.mrb[0].mxu1 %v1356_v35  ;;  %1238 = vmatprep.subr.bf16.mxu0 %v1362_v40 }
  0x29   : > { %1259 = vmatpush3.bf16.msra.mxu1 %v1361_v39  ;;  %972 = vmatprep.mubr.bf16.mxu1 %v1395_v8 }
  0x2a   : > { %1260 = vmatprep.subr.bf16.mxu1 %v1364_v42 }
  0x2b   : > { %1239 = vmatpush3.bf16.msra.mxu0 %v1363_v41 }
  0x2c   : > { %1240 = vmatprep.subr.bf16.mxu0 %v1366_v44 }
  0x2d   : > { %1261 = vmatpush3.bf16.msra.mxu1 %v1365_v43 }
  0x2e   : > { %1262 = vmatprep.subr.bf16.mxu1 %v1368_v46 }
  0x2f   : > { %1241 = vmatpush3.bf16.msra.mxu0 %v1367_v45 }
  0x30   : > { %1242 = vmatprep.subr.bf16.mxu0 %v1370_v48 }
  0x31   : > { %1263 = vmatpush3.bf16.msra.mxu1 %v1369_v47 }
  0x32   : > { %1264 = vmatprep.subr.bf16.mxu1 %v1372_v50 }
  0x33   : > { %1243 = vmatpush3.bf16.msra.mxu0 %v1371_v49 }
  0x34   : > { %1244 = vmatprep.subr.bf16.mxu0 %v1374_v52 }
  0x35   : > { %1265 = vmatpush3.bf16.msra.mxu1 %v1373_v51 }
  0x36   : > { %1266 = vmatprep.subr.bf16.mxu1 %v1376_v54 }
  0x37   : > { %1245 = vmatpush3.bf16.msra.mxu0 %v1375_v53 }
  0x38   : > { %1246 = vmatprep.subr.bf16.mxu0 %v1378_v56 }
  0x39   : > { %1267 = vmatpush3.bf16.msra.mxu1 %v1377_v55 }
  0x3a   : > { %1268 = vmatprep.subr.bf16.mxu1 %v1380_v58 }
  0x3b   : > { %1247 = vmatpush3.bf16.msra.mxu0 %v1379_v57 }
  0x3c   : > { %1248 = vmatprep.subr.bf16.mxu0 %v1382_v60 }
  0x3d   : > { %1269 = vmatpush3.bf16.msra.mxu1 %v1381_v59 }
  0x3e   : > { %1270 = vmatprep.subr.bf16.mxu1 %v1384_v62 }
  0x3f   : > { %1249 = vmatpush3.bf16.msra.mxu0 %v1383_v61 }
  0x40   : > { %1250 = vmatprep.subr.bf16.mxu0 %v1386_v0 }
  0x41   : > { %1271 = vmatpush3.bf16.msra.mxu1 %v1385_v63 }
  0x42   : > { %1272 = vmatprep.subr.bf16.mxu1 %v1388_v2 }
  0x43   : > { %1251 = vmatpush3.bf16.msra.mxu0 %v1387_v1 }
  0x44   : > { %1289 = vmatprep.subr.bf16.mxu0 %v1413_v6 }
  0x45   : > { %1273 = vmatpush3.bf16.msra.mxu1 %v1392_v5 }
  0x46   : > { %932 = vmatmul.mubr.bf16.vlgmr.msra.gmra.mrb[4].mxu0 %v1389_v3 }
  0x47   : > { %1305 = vmatprep.mubr.msk.bf16.mxu0 %vm1414_vm0, %v1413_v6  ;;  %1290 = vmatpush3.bf16.msra.mxu0 %v1396_v9 }
  0x48   : > { %973 = vmatmul.mubr.bf16.vlgmr.msra.gmra.mrb[4].mxu1 %v1393_v7  ;;  %1291 = vmatprep.subr.bf16.mxu0 %v1413_v6 }
  0x4b   : > { %1292 = vmatpush3.bf16.msra.mxu0 %v1397_v10 }
  0x4c   : > { %1293 = vmatprep.subr.bf16.mxu0 %v1413_v6 }
  0x4f   : > { %1294 = vmatpush3.bf16.msra.mxu0 %v1398_v11 }
  0x50   : > { %1295 = vmatprep.subr.bf16.mxu0 %v1413_v6 }
  0x53   : > { %1296 = vmatpush3.bf16.msra.mxu0 %v1399_v12 }
  0x54   : > { %1297 = vmatprep.subr.bf16.mxu0 %v1413_v6 }
  0x57   : > { %1298 = vmatpush3.bf16.msra.mxu0 %v1400_v13 }
  0x58   : > { %1299 = vmatprep.subr.bf16.mxu0 %v1413_v6 }
  0x5b   : > { %1300 = vmatpush3.bf16.msra.mxu0 %v1401_v14 }
  0x5c   : > { %1301 = vmatprep.subr.bf16.mxu0 %v1413_v6 }
  0x5f   : > { %1302 = vmatpush3.bf16.msra.mxu0 %v1402_v15 }
  0x60   : > { %1303 = vmatprep.subr.bf16.mxu0 %v1413_v6 }
  0x63   : > { %1304 = vmatpush3.bf16.msra.mxu0 %v1403_v16 }
  0x66   : > { %1306 = vmatmul.mubr.bf16.vlgmr.msra.gmra.mrb[8].mxu0 %v1404_v17 }
  0xf9   : > { %v1208_v18 = vpop.f32.mrb[0].mxu0 }
  0xfa   : > { %v1209_v20 = vpop.f32.mrb[1].mxu0 }
  0xfb   : > { %v1210_v21 = vadd.f32 %v1209_v20, %v1208_v18  ;;  %v1211_v22 = vpop.f32.mrb[2].mxu0  ;;  %v1230_v23 = vpop.f32.mrb[0].mxu1 }
  0xfc   : > { %v1212_v24 = vpop.f32.mrb[3].mxu0  ;;  %v1231_v27 = vpop.f32.mrb[1].mxu1 }
  0xfd   : > { %v852_v25 = vadd.f32 %v1210_v21, %v1099_v19  ;;  %v1213_v26 = vadd.f32 %v1212_v24, %v1211_v22  ;;  %v1232_v28 = vadd.f32 %v1231_v27, %v1230_v23  ;;  %v1233_v29 = vpop.f32.mrb[2].mxu1 }
  0xfe   : > { %v1234_v31 = vpop.f32.mrb[3].mxu1 }
  0xff   : > { %v855_v30 = vadd.f32 %v1213_v26, %v1099_v19  ;;  %v893_v32 = vadd.f32 %v1232_v28, %v852_v25  ;;  %v1235_v33 = vadd.f32 %v1234_v31, %v1233_v29 }
 0x101   : > { %v896_v34 = vadd.f32 %v1235_v33, %v855_v30 }
 0x119   : > { %v1252_v35 = vpop.f32.mrb[4].mxu0 }
 0x11a   : > { %v1253_v36 = vpop.f32.mrb[5].mxu0 }
 0x11b   : > { %v1254_v37 = vadd.f32 %v1253_v36, %v1252_v35  ;;  %v1255_v38 = vpop.f32.mrb[6].mxu0  ;;  %v1274_v39 = vpop.f32.mrb[4].mxu1 }
 0x11c   : > { %v1256_v40 = vpop.f32.mrb[7].mxu0  ;;  %v1275_v43 = vpop.f32.mrb[5].mxu1 }
 0x11d   : > { %v934_v41 = vadd.f32 %v1254_v37, %v893_v32  ;;  %v1257_v42 = vadd.f32 %v1256_v40, %v1255_v38  ;;  %v1276_v44 = vadd.f32 %v1275_v43, %v1274_v39  ;;  %v1277_v45 = vpop.f32.mrb[6].mxu1 }
 0x11e   : > { %v1278_v47 = vpop.f32.mrb[7].mxu1 }
 0x11f   : > { %v937_v46 = vadd.f32 %v1257_v42, %v896_v34  ;;  %v1279_v48 = vadd.f32 %v1278_v47, %v1277_v45  ;;  %v975_v49 = vadd.f32 %v1276_v44, %v934_v41 }
 0x121   : > { %v978_v50 = vadd.f32 %v1279_v48, %v937_v46 }
 0x139   : > { %v1015_v51 = vpop.f32.mrb[8].mxu0 }
 0x13a   : > { %v1016_v52 = vadd.f32 %v1015_v51, %v975_v49  ;;  %v1307_v53 = vpop.f32.mrb[9].mxu0 }
 0x13b   : > { %v1018_v54 = vpop.f32.mrb[10].mxu0 }
 0x13c   : > { %v1019_v55 = vadd.f32 %v1018_v54, %v978_v50  ;;  %v1308_v56 = vpop.f32.mrb[11].mxu0  ;;  %v1022_v57 = vmax.f32 %v1016_v52, 0.0 }
 0x13e   : > { %v1023_v58 = vmax.f32 %v1019_v55, 0.0 }
 0x140   : > { %v1190_v59 = vpack.c.bf16 %v1023_v58, %v1022_v57 }
 0x142   : > { %1191 = vst [vmem:[%s175_s20] sm:$0xff] %v1190_v59  }
 0x143 PF: > { %s13_s12 = sadd.s32 1, %s1411_s12  }
 0x144   : > { %p10_p4 = scmp.ge.s32.totalorder %s13_s12, 4  }
 0x146   :  { %12 = sbr.rel (!%p10_p4) target bundleno = 1 (0x1), region = 62 }

// kernel: mshe_b_forward.8
= control target key start
LH: loop header
LB: loop body
LE: loop exit
PB: predicated region body
PF: predicated region fallthrough
CT: control target
= control target key end

     0   :  { %11 = vsyncpa [#allocation3], 0  ;;  %s1054_s0 = inlined_call_operand.vmem [shape: bf16[32,128], index: 0, kind: input, shape index: {}]   ;;  %s1055_s1 = inlined_call_operand.vmem [shape: bf16[4,16], index: 1, kind: input, shape index: {}]   ;;  %s1056_s2 = inlined_call_operand.vmem [shape: bf16[128,128], index: 2, kind: input, shape index: {}]   ;;  %s1057_s3 = inlined_call_operand.vmem [shape: f32[1,128], index: 3, kind: input, shape index: {}]   ;;  %s1058_s4 = inlined_call_operand.vmem [shape: bf16[128,128], index: 4, kind: input, shape index: {}]   ;;  %s1059_s5 = inlined_call_operand.vmem [shape: f32[1,128], index: 5, kind: input, shape index: {}]   ;;  %s1060_s6 = inlined_call_operand.hbm [shape: f32[2,4,128], index: 6, kind: output, shape index: {}]  }
   0x1   :  { %13 = vsyncpa [#allocation3 + $0x1], 0  ;;  %s875_s21 = smov 0   ;;  %s877_s22 = smov 0  }
   0x2   :  { %s879_s23 = smov 0   ;;  %s881_s24 = smov 0  }
   0x3 LB: > { %s896_s25 = sadd.s32 4294967295, %s835_s24   ;;  %s611_s26 = sadd.s32 4294967294, %s835_s24   ;;  %s835_s24 = sphi %s881_s24, %s1066_s24   ;;  %s831_s23 = sphi %s879_s23, %s1065_s23   ;;  %s827_s22 = sphi %s877_s22, %s1064_s22   ;;  %s823_s21 = sphi %s875_s21, %s1063_s21  }
   0x4   : > { %s900_s27 = sadd.s32 1, %s835_s24   ;;  %s157_s28 = sadd.s32 1, %s831_s23 }
   0x5   : > { %s154_s29 = ssub.s32 %s835_s24, %s900_s27  ;;  %p167_p0 = scmp.ne.s32.totalorder %s831_s23, %s827_s22 }
   0x6   : > { %p155_p1 = scmp.eq.s32.totalorder %s154_s29, 0  ;;  %p168_p2 = scmp.eq.s32.totalorder %s896_s25, 1 }
   0x7   : > { %p173_p3 = scmp.ne.s32.totalorder %s827_s22, %s823_s21  ;;  %p174_p4 = scmp.eq.s32.totalorder %s611_s26, 1 }
   0x8   : > { %s911_s30 = scalar_select %p155_p1, %s831_s23, %s157_s28  }
   0x9   : > { %p913_p5 = por %p168_p2, %p167_p0  ;;  %p917_p6 = por %p174_p4, %p173_p3 }
   0xa   : > { %p614_p7 = scmp.ge.s32.totalorder %s835_s24, 1  ;;  %p216_p8 = scmp.lt.s32.totalorder %s835_s24, 3 }
   0xc   : > { %p217_p9 = pnand %p614_p7, %p216_p8 }
   0xd   : > { %s616_s9 = sshll.u32 (!%p217_p9), %s896_s25, 1  ;;  %v837_v0 = vmov (!%p217_p9), 0.0   ;;  %vm838_vm0 = vmmov (!%p217_p9), 0   ;;  %v751_v1 = vld [vmem:[%s1056_s2] sm:$0xff] (!%p217_p9)   ;;  %v752_v2 = vld [vmem:[%s1056_s2 + $0x8] sm:$0xff] (!%p217_p9)   ;;  %v753_v3 = vld [vmem:[%s1056_s2 + $0x10] sm:$0xff] (!%p217_p9)  }
   0xe   : > { %220 = sbr.rel (%p217_p9) target bundleno = 723 (0x2d3), region = 44  ;;  %663 = vmatprep.subr.bf16.mxu0 (!%p217_p9), %v837_v0  ;;  %p247_p10 = scmp.lt.s32.totalorder (!%p217_p9), %s616_s9, 3  ;;  %665 = vmatprep.mubr.msk.bf16.mxu0 (!%p217_p9), %vm838_vm0, %v837_v0  ;;  %v255_v5 = vld [vmem:[%s1055_s1] sm:$0x3] (!%p217_p9)  ;;  %vm262_vm1 = vcmask (!%p217_p9), 130048   ;;  %v754_v6 = vld [vmem:[%s1056_s2 + $0x18] sm:$0xff] (!%p217_p9)  }
   0xf   : > { %669 = vmatprep.subr.bf16.mxu1 (!%p217_p9), %v837_v0  ;;  %685 = vmatprep.mubr.msk.bf16.mxu1 (!%p217_p9), %vm838_vm0, %v837_v0  ;;  %v755_v7 = vld [vmem:[%s1056_s2 + $0x20] sm:$0xff] (!%p217_p9)   ;;  %v756_v8 = vld [vmem:[%s1056_s2 + $0x28] sm:$0xff] (!%p217_p9)   ;;  %v757_v9 = vld [vmem:[%s1056_s2 + $0x30] sm:$0xff] (!%p217_p9)   ;;  %s243_s28 = sand.u32 (!%p217_p9), 1, %s827_s22  }
  0x10   : > { %670 = vmatpush3.bf16.msra.mxu1 (!%p217_p9), %v751_v1  ;;  %v758_v10 = vld [vmem:[%s1056_s2 + $0x38] sm:$0xff] (!%p217_p9)   ;;  %v759_v11 = vld [vmem:[%s1058_s4] sm:$0xff] (!%p217_p9)   ;;  %v760_v12 = vld [vmem:[%s1058_s4 + $0x8] sm:$0xff] (!%p217_p9)   ;;  %s615_s29 = sshll.u32 (!%p217_p9), %s243_s28, 2  ;;  %s539_s15 = scalar_lea.sflag (!%p217_p9), [#allocation3], %s243_s28 }
  0x11   : > { %671 = vmatprep.subr.bf16.mxu1 (!%p217_p9), %v837_v0  ;;  %v761_v13 = vld [vmem:[%s1058_s4 + $0x10] sm:$0xff] (!%p217_p9)   ;;  %v762_v14 = vld [vmem:[%s1058_s4 + $0x18] sm:$0xff] (!%p217_p9)   ;;  %v763_v20 = vld [vmem:[%s1058_s4 + $0x20] sm:$0xff] (!%p217_p9)   ;;  %s245_s10 = scalar_lea.vmem (!%p217_p9), [#allocation2], %s615_s29 }
  0x12   : > { %v764_v21 = vld [vmem:[%s1058_s4 + $0x28] sm:$0xff] (!%p217_p9)   ;;  %v765_v22 = vld [vmem:[%s1058_s4 + $0x30] sm:$0xff] (!%p217_p9)   ;;  %v766_v23 = vld [vmem:[%s1058_s4 + $0x38] sm:$0xff] (!%p217_p9)   ;;  %s552_s11 = sshll.u32 (!%p217_p9), %s245_s10, 4  ;;  %s1014_s11 = int_to_ptr.vmem [resolvable:$true] %s552_s11 }
  0x13   : > { %v620_v24 = vld [vmem:[%s1057_s3] ss:$0 sm:$0xff] (!%p217_p9)  ;;  %s773_s16 = scalar_lea.vmem (!%p217_p9), %s1014_s11, 64 }
  0x14   : > { %672 = vmatpush3.bf16.msra.mxu1 (!%p217_p9), %v752_v2  ;;  %v629_v32 = vld [vmem:[%s1059_s5] ss:$0 sm:$0xff] (!%p217_p9)  ;;  %p774_p11 = scmp.ne.s32.totalorder (!%p217_p9), %s1014_s11, %s773_s16 }
  0x15   : > { %s1068_s9 = smov (!%p247_p10, %s616_s9), 3  ;;  %673 = vmatprep.subr.bf16.mxu1 %v837_v0 }
  0x16   : > { %s617_s14 = sshll.u32 %s1068_s9, 2  ;;  %s640_s9 = sshll.u32 %s896_s25, 6 }
  0x17   : > { %s250_s17 = scalar_lea.vmem %s1054_s0, %s617_s14  ;;  %s1012_s14 = scalar_lea.hbm %s1060_s6, %s640_s9 }
  0x18   : > { %v750_v4 = vld [vmem:[%s250_s17] sm:$0xff]   ;;  %674 = vmatpush3.bf16.msra.mxu1 %v753_v3  ;;  %p775_p12 = pnand %p774_p11, %p913_p5  ;;  %s839_s25 = smov [#allocation2]  }
  0x19   : > { %664 = vmatpush3.bf16.msra.mxu0 %v750_v4  ;;  %675 = vmatprep.subr.bf16.mxu1 %v837_v0  ;;  %s777_s17 = sshll.u32 %s839_s25, 4  ;;  %s778_s17 = int_to_ptr.vmem [resolvable:$false] %s777_s17 }
  0x1a   : > { %689 = vmatprep.subr.bf16.mxu0 %v837_v0  ;;  %p776_p13 = pneg %p775_p12  ;;  %s779_s18 = scalar_lea.vmem %s778_s17, 128 }
  0x1b   : > { %p780_p0 = scmp.lt.s32.totalorder %s1014_s11, %s778_s17  ;;  %p781_p1 = scmp.lt.s32.totalorder %s779_s18, %s773_s16 }
  0x1c   : > { %666 = vmatmul.mubr.msk.bf16.vlgmr.msra.gmra.mrb[0].mxu0 %vm262_vm1, %v255_v5  ;;  %676 = vmatpush3.bf16.msra.mxu1 %v754_v6 }
  0x1d   : > { %705 = vmatprep.mubr.msk.bf16.mxu0 %vm838_vm0, %v837_v0  ;;  %677 = vmatprep.subr.bf16.mxu1 %v837_v0  ;;  %p782_p2 = por %p781_p1, %p780_p0 }
  0x1e   : > { %690 = vmatpush3.bf16.msra.mxu0 %v759_v11 }
  0x1f   : > { %691 = vmatprep.subr.bf16.mxu0 %v837_v0  ;;  %p783_p3 = pnand %p782_p2, %p776_p13 }
  0x20   : > { %678 = vmatpush3.bf16.msra.mxu1 %v755_v7 }
  0x21   : > { %679 = vmatprep.subr.bf16.mxu1 %v837_v0 }
  0x22   : > { %692 = vmatpush3.bf16.msra.mxu0 %v760_v12 }
  0x23   : > { %693 = vmatprep.subr.bf16.mxu0 %v837_v0 }
  0x24   : > { %680 = vmatpush3.bf16.msra.mxu1 %v756_v8 }
  0x25   : > { %681 = vmatprep.subr.bf16.mxu1 %v837_v0 }
  0x26   : > { %694 = vmatpush3.bf16.msra.mxu0 %v761_v13 }
  0x27   : > { %695 = vmatprep.subr.bf16.mxu0 %v837_v0 }
  0x28   : > { %682 = vmatpush3.bf16.msra.mxu1 %v757_v9 }
  0x29   : > { %683 = vmatprep.subr.bf16.mxu1 %v837_v0 }
  0x2a   : > { %696 = vmatpush3.bf16.msra.mxu0 %v762_v14 }
  0x2b   : > { %697 = vmatprep.subr.bf16.mxu0 %v837_v0 }
  0x2c   : > { %684 = vmatpush3.bf16.msra.mxu1 %v758_v10 }
  0x2e   : > { %698 = vmatpush3.bf16.msra.mxu0 %v763_v20 }
  0x2f   : > { %699 = vmatprep.subr.bf16.mxu0 %v837_v0 }
  0x32   : > { %700 = vmatpush3.bf16.msra.mxu0 %v764_v21 }
  0x33   : > { %701 = vmatprep.subr.bf16.mxu0 %v837_v0 }
  0x36   : > { %702 = vmatpush3.bf16.msra.mxu0 %v765_v22 }
  0x37   : > { %703 = vmatprep.subr.bf16.mxu0 %v837_v0 }
  0x3a   : > { %704 = vmatpush3.bf16.msra.mxu0 %v766_v23 }
  0xef   : > { %v300_v15 = vpop.f32.mrb[0].mxu0 }
  0xf0   : > { %v306_v16 = vpack.c.bf16 %v300_v15, %v300_v15  ;;  %v667_v17 = vpop.f32.mrb[1].mxu0 }
  0xf1   : > { %v303_v18 = vpop.f32.mrb[2].mxu0 }
  0xf2   : > { %v668_v19 = vpop.f32.mrb[3].mxu0  ;;  %686 = vmatmul.mubr.bf16.vlgmr.msra.gmra.mrb[0].mxu1 %v306_v16 }
 0x1c5   : > { %v412_v25 = vpop.f32.mrb[0].mxu1 }
 0x1c6   : > { %v413_v26 = vadd.f32 %v620_v24, %v412_v25  ;;  %v687_v27 = vpop.f32.mrb[1].mxu1 }
 0x1c7   : > { %v415_v28 = vpop.f32.mrb[2].mxu1 }
 0x1c8   : > { %767 = vtanh.f32 %v413_v26  ;;  %v688_v29 = vpop.f32.mrb[3].mxu1 }
 0x1d2   : > { %v768_v30 = vpop.eup %767 }
 0x1d3   : > { %v419_v31 = vpack.c.bf16 %v768_v30, %v768_v30 }
 0x1d5   : > { %706 = vmatmul.mubr.bf16.vlgmr.msra.gmra.mrb[4].mxu0 %v419_v31 }
 0x2a8   : > { %v525_v33 = vpop.f32.mrb[4].mxu0 }
 0x2a9   : > { %v526_v34 = vadd.f32 %v629_v32, %v525_v33  ;;  %v707_v35 = vpop.f32.mrb[5].mxu0 }
 0x2aa   : > { %v528_v36 = vpop.f32.mrb[6].mxu0 }
 0x2ab   : > { %v638_v37 = vmul.f32 -1.442695, %v526_v34  ;;  %v708_v38 = vpop.f32.mrb[7].mxu0 }
 0x2ad   : > { %769 = vpow2.f32 %v638_v37 }
 0x2b7   : > { %v770_v39 = vpop.eup %769 }
 0x2b8   : > { %v534_v40 = vadd.f32 1.0, %v770_v39 }
 0x2ba   : > { %771 = vrcp.f32 %v534_v40 }
 0x2c4   : > { %v772_v41 = vpop.eup %771 }
 0x2c5   : > { %537 = vst [vmem:[%s245_s10] sm:$0xf] %v772_v41 }
 0x2c6   : > { %786 = shalt.err (!%p783_p3)
}
 0x2c7   : > { %s787_s19 = scalar_lea.hbm %s1012_s14, 64  ;;  %s791_s28 = scalar_lea.hbm %s1060_s6, 128 }
 0x2c8   : > { %p788_p4 = scmp.ne.s32.totalorder %s1012_s14, %s787_s19  ;;  %p792_p9 = scmp.lt.u32.totalorder %s1012_s14, %s1060_s6 }
 0x2c9   : > { %p793_p10 = scmp.lt.u32.totalorder %s791_s28, %s787_s19  ;;  %p795_p12 = scmp.lt.u32.totalorder %s787_s19, %s1012_s14 }
 0x2ca   : > { %p789_p7 = pnand %p788_p4, %p913_p5 }
 0x2cb   : > { %p794_p11 = por %p793_p10, %p792_p9 }
 0x2cc   : > { %p790_p8 = pneg %p789_p7 }
 0x2cd   : > { %p796_p13 = por %p795_p12, %p794_p11 }
 0x2cf   : > { %p797_p0 = pnand %p796_p13, %p790_p8 }
 0x2d1   : > { %800 = shalt.err (!%p797_p0)
}
 0x2d2   : > { %709 = dma.vmem_to_hbm [thread:$0]  (%p913_p5), %s1014_s11, 64, %s1012_s14, %s539_s15  }
 0x2d3 PF: > { %p715_p1 = scmp.ge.s32.totalorder %s835_s24, 2  ;;  %s564_s10 = sand.u32 1, %s823_s21  }
 0x2d4   : > { %s565_s12 = scalar_lea.sflag [#allocation3], %s564_s10 }
 0x2d5   : > { %p712_p2 = pnand %p715_p1, %p917_p6 }
 0x2d7   : > { %818 = dma.done.wait (!%p712_p2), %s565_s12, 64  }
 0x2d8   : > { %820 = vsyncadd (!%p712_p2), %s565_s12, 4294967232  ;;  %p16_p3 = scmp.ge.s32.totalorder %s900_s27, 4   ;;  %s1063_s21 = smov %s827_s22 }
 0x2d9   : > { %s1064_s22 = smov %s831_s23  ;;  %s1065_s23 = smov %s911_s30 }
 0x2da   : > { %s1066_s24 = smov %s900_s27  ;;  %18 = sbr.rel (!%p16_p3) target bundleno = 3 (0x3), region = 79 }
 0x2e1   :  { %570 = vsyncpa [#allocation3], 1 }
 0x2e2   :  { %572 = vsyncpa [#allocation3 + $0x1], 1 }

</bundles_post_ra>
